<compile_context>
chip_gen: v7x
topology: tpu7x:2x2x1
jax: 0.10.0
libtpu: 0.0.40
codegen_flags: <defaults>
</compile_context>

<pallas_src>
import math

import numpy as np
import jax
import jax.numpy as jnp
from jax import lax
from jax.experimental import pallas as pl
from jax.experimental.pallas import tpu as pltpu

BN_EPS = 1e-5
BN_SCALE = 1.0 / math.sqrt(1.0 + BN_EPS)   # BatchNorm1d in eval with fresh running stats


def _dot(a, b):
    return jnp.dot(a, b, preferred_element_type=jnp.float32)


def _elu(x):
    return jnp.where(x > 0, x, jnp.exp(jnp.minimum(x, 0.0)) - 1.0)


# ----------------------------------------------------------------------------
# Pallas kernels
# ----------------------------------------------------------------------------
def _make_vs_kernel(mX):
    """Fused VariableSelection: flat GRN -> softmax -> mX var GRNs -> weighted sum."""
    def kernel(xf_ref, xv_ref, ctx_ref,
               fw1, fb1, fwc, fbc, fw2, fb2, fwg1, fbg1, fwg2, fbg2, fws, fbs,
               vw1, vb1, vw2, vb2, vwg1, vbg1, vwg2, vbg2, vws, vbs,
               out_ref, sw_ref):
        xf = xf_ref[...]                                    # (N, mX*E)
        ctx = ctx_ref[...]                                  # (N, ctx)

        # --- flat GRN (context + skip), output size mX ---
        res = _dot(xf, fws[...]) + fbs[...]
        h = _dot(xf, fw1[...]) + fb1[...] + _dot(ctx, fwc[...]) + fbc[...]
        h = _elu(h)
        h = _dot(h, fw2[...]) + fb2[...]
        gate = jax.nn.sigmoid(_dot(h, fwg1[...]) + fbg1[...])
        lin = _dot(h, fwg2[...]) + fbg2[...]
        sparse = (gate * lin + res) * BN_SCALE              # (N, mX)
        m = jnp.max(sparse, axis=-1, keepdims=True)
        e = jnp.exp(sparse - m)
        sw = e / jnp.sum(e, axis=-1, keepdims=True)
        sw_ref[...] = sw

        # --- per-variable GRNs (stacked weights, skip E->H), weighted sum ---
        acc = None
        for i in range(mX):                                 # static unroll, all in VMEM
            xm = xv_ref[i]                                  # (N, E)
            r = _dot(xm, vws[i]) + vbs[i]
            hv = _elu(_dot(xm, vw1[i]) + vb1[i])
            hv = _dot(hv, vw2[i]) + vb2[i]
            g = jax.nn.sigmoid(_dot(hv, vwg1[i]) + vbg1[i])
            li = _dot(hv, vwg2[i]) + vbg2[i]
            vo = (g * li + r) * BN_SCALE                    # (N, H)
            term = vo * sw[:, i:i + 1]
            acc = term if acc is None else acc + term
        out_ref[...] = acc
    return kernel


def _make_lstm_kernel(num_layers, T_enc, T_dec, H):
    """Two-phase (encoder then decoder) multi-layer LSTM.

    Layer-0 input projections (x @ Wih0 + bih0 + bhh0) are precomputed outside the kernel
    (xpe/xpd), so the serial recurrence only does h @ Whh per layer-0 step.
    """
    def kernel(xpe_ref, xpd_ref,
               wih_e, whh_e, b_e, wih_d, whh_d, b_d,
               ye_ref, yd_ref, h_scr, c_scr):
        h_scr[...] = jnp.zeros_like(h_scr)
        c_scr[...] = jnp.zeros_like(c_scr)

        def make_step(xp_ref, wih_ref, whh_ref, b_ref, y_ref):
            def step(t, carry):
                inp = None
                for l in range(num_layers):                 # static unroll over layers
                    h_prev = h_scr[l]
                    c_prev = c_scr[l]
                    if l == 0:
                        gates = xp_ref[pl.ds(t, 1)][0] + _dot(h_prev, whh_ref[l])
                    else:
                        gates = (_dot(inp, wih_ref[l]) + _dot(h_prev, whh_ref[l]) + b_ref[l])
                    i_g = jax.nn.sigmoid(gates[:, 0 * H:1 * H])
                    f_g = jax.nn.sigmoid(gates[:, 1 * H:2 * H])
                    g_g = jnp.tanh(gates[:, 2 * H:3 * H])
                    o_g = jax.nn.sigmoid(gates[:, 3 * H:4 * H])
                    c_new = f_g * c_prev + i_g * g_g
                    h_new = o_g * jnp.tanh(c_new)
                    h_scr[l] = h_new
                    c_scr[l] = c_new
                    inp = h_new
                y_ref[pl.ds(t, 1)] = inp[None]
                return carry
            return step

        lax.fori_loop(0, T_enc, make_step(xpe_ref, wih_e, whh_e, b_e, ye_ref), 0)
        # decoder initial state is (hidden, hidden) exactly like the reference decode()
        c_scr[...] = h_scr[...]
        lax.fori_loop(0, T_dec, make_step(xpd_ref, wih_d, whh_d, b_d, yd_ref), 0)
    return kernel


def _post_lstm_kernel(y_ref, xin_ref, gw1, gb1, gw2, gb2, inw, inb,
                      gated_ref, proj_ref):
    """post_lstm_gate GLU on (lstm_output + lstm_input), fused with the MHA in-projection
    applied to attn_input = BN(gated)."""
    s = y_ref[...] + xin_ref[...]
    gate = jax.nn.sigmoid(_dot(s, gw1[...]) + gb1[...])
    lin = _dot(s, gw2[...]) + gb2[...]
    gated = gate * lin
    gated_ref[...] = gated
    attn_in = gated * BN_SCALE                              # post_lstm_norm (BN eval)
    proj_ref[...] = _dot(attn_in, inw[...]) + inb[...]      # (N, 3H) q/k/v projection


def _make_attn_core_kernel(B, nh, scale):
    def kernel(q_ref, k_ref, v_ref, ctx_ref, w_ref):
        q = q_ref[...] * scale                              # (B*nh, L, dh)
        k = k_ref[...]
        v = v_ref[...]
        scores = jnp.einsum("bld,bsd->bls", q, k, preferred_element_type=jnp.float32)
        m = jnp.max(scores, axis=-1, keepdims=True)
        e = jnp.exp(scores - m)
        w = e / jnp.sum(e, axis=-1, keepdims=True)
        ctx_ref[...] = jnp.einsum("bls,bsd->bld", w, v, preferred_element_type=jnp.float32)
        inv = 1.0 / nh                                      # head-averaged attention weights
        for b in range(B):
            acc = w[b * nh]
            for h in range(1, nh):
                acc = acc + w[b * nh + h]
            w_ref[b] = acc * inv
    return kernel


def _post_attn_kernel(ctx_ref, gated_dec_ref,
                      ow, ob, agw1, agb1, agw2, agb2,
                      pw1, pb1, pw2, pb2, pgw1, pgb1, pgw2, pgb2,
                      ogw1, ogb1, ogw2, ogb2, fw, fb,
                      attn_ref, out_ref):
    """out_proj + post_attn GLU + residual + BN + pos_wise_ff GRN + pre_output GLU
    + residual + BN + final quantile projection."""
    ctx = ctx_ref[...]                                      # (Ld*B, H)
    gated_dec = gated_dec_ref[...]                          # lstm_output[T_enc:]
    attn_in_dec = gated_dec * BN_SCALE                      # attn_input[T_enc:]

    y = _dot(ctx, ow[...]) + ob[...]                        # MHA out_proj
    g = jax.nn.sigmoid(_dot(y, agw1[...]) + agb1[...]) * (_dot(y, agw2[...]) + agb2[...])
    a = (g + attn_in_dec) * BN_SCALE                        # post_attn_norm
    attn_ref[...] = a

    # pos_wise_ff GRN (no context, in==out so residual = a)
    h = _elu(_dot(a, pw1[...]) + pb1[...])
    h = _dot(h, pw2[...]) + pb2[...]
    gg = jax.nn.sigmoid(_dot(h, pgw1[...]) + pgb1[...]) * (_dot(h, pgw2[...]) + pgb2[...])
    o = (gg + a) * BN_SCALE

    # pre_output_gate GLU + residual with lstm_output[T_enc:] + pre_output_norm + output layer
    o2 = jax.nn.sigmoid(_dot(o, ogw1[...]) + ogb1[...]) * (_dot(o, ogw2[...]) + ogb2[...])
    o2 = (o2 + gated_dec) * BN_SCALE
    out_ref[...] = _dot(o2, fw[...]) + fb[...]


# ----------------------------------------------------------------------------
# Parameter initialization (deterministic, synthetic, pre-transposed f32)
# ----------------------------------------------------------------------------
def _init(key, shape, scale=0.1):
    return (scale * jax.random.normal(key, shape)).astype(jnp.float32)


def make_grn_params(kit, in_size, hidden, out_size, ctx_size=None):
    p = {
        "w1": _init(next(kit), (in_size, hidden)),  "b1": _init(next(kit), (1, hidden)),
        "w2": _init(next(kit), (hidden, out_size)), "b2": _init(next(kit), (1, out_size)),
        "wg1": _init(next(kit), (out_size, out_size)), "bg1": _init(next(kit), (1, out_size)),
        "wg2": _init(next(kit), (out_size, out_size)), "bg2": _init(next(kit), (1, out_size)),
    }
    if ctx_size is not None:
        p["wc"] = _init(next(kit), (ctx_size, hidden))
        p["bc"] = _init(next(kit), (1, hidden))
    if in_size != out_size:
        p["ws"] = _init(next(kit), (in_size, out_size))
        p["bs"] = _init(next(kit), (1, out_size))
    return p


def make_glu_params(kit, size):
    return {"w1": _init(next(kit), (size, size)), "b1": _init(next(kit), (1, size)),
            "w2": _init(next(kit), (size, size)), "b2": _init(next(kit), (1, size))}


def make_lstm_params(kit, num_layers, H):
    wih = jnp.stack([_init(next(kit), (H, 4 * H)) for _ in range(num_layers)])   # (L, H, 4H)
    whh = jnp.stack([_init(next(kit), (H, 4 * H)) for _ in range(num_layers)])
    # bih + bhh combined
    b = jnp.stack([_init(next(kit), (1, 4 * H)) + _init(next(kit), (1, 4 * H))
                   for _ in range(num_layers)])                                  # (L, 1, 4H)
    return {"wih": wih, "whh": whh, "b": b}


def make_vs_params(kit, E, mX, H, ctx_size):
    flat = make_grn_params(kit, mX * E, H, mX, ctx_size)

    def stk(shape):
        return jnp.stack([_init(next(kit), shape) for _ in range(mX)])

    var = {"w1": stk((E, H)), "b1": stk((1, H)),
           "w2": stk((H, H)), "b2": stk((1, H)),
           "wg1": stk((H, H)), "bg1": stk((1, H)),
           "wg2": stk((H, H)), "bg2": stk((1, H)),
           "ws": stk((E, H)), "bs": stk((1, H))}
    return {"flat": flat, "var": var}


def positional_encoding(seq_len, d_model):
    pe = np.zeros((seq_len, d_model), dtype=np.float64)
    for pos in range(seq_len):
        for i in range(0, d_model, 2):
            pe[pos, i] = math.sin(pos / (10000 ** ((2 * i) / d_model)))
            if i + 1 < d_model:
                pe[pos, i + 1] = math.cos(pos / (10000 ** ((2 * (i + 1)) / d_model)))
    return jnp.asarray(pe, jnp.float32)[:, None, :]          # (seq, 1, d_model)


def make_tft_params(key, cfg):
    kit = iter(jax.random.split(key, 512))
    E, H, Lly = cfg["embedding_dim"], cfg["hidden_size"], cfg["lstm_layers"]
    n_past = cfg["n_past_covariates"]
    n_fut = cfg["n_future_covariates"]
    n_cat = cfg["n_past_categorical_covariates"]
    n_static = cfg["static_variables"]
    ctx = E * n_static
    n_lin = n_past + n_fut
    params = {
        "static_emb": [_init(next(kit), (cfg["static_vocab"], E)) for _ in range(n_static)],
        "tv_emb": [_init(next(kit), (cfg["tv_vocab"], E)) for _ in range(n_cat)],
        "tv_lin_w": jnp.stack([_init(next(kit), (E,)) for _ in range(n_lin)]),   # (n_lin, E)
        "tv_lin_b": jnp.stack([_init(next(kit), (E,)) for _ in range(n_lin)]),
        "enc_vs": make_vs_params(kit, E, n_past + n_cat, H, ctx),
        "dec_vs": make_vs_params(kit, E, n_fut + n_cat, H, ctx),
        "lstm_enc": make_lstm_params(kit, Lly, H),
        "lstm_dec": make_lstm_params(kit, Lly, H),
        "post_lstm_gate": make_glu_params(kit, H),
        "post_attn_gate": make_glu_params(kit, H),
        "pre_output_gate": make_glu_params(kit, H),
        "mha": {"in_w": _init(next(kit), (H, 3 * H)), "in_b": _init(next(kit), (1, 3 * H)),
                "out_w": _init(next(kit), (H, H)), "out_b": _init(next(kit), (1, H))},
        "pos_wise_ff": make_grn_params(kit, H, H, H, None),
        "out_w": _init(next(kit), (H, cfg["num_quantiles"])),
        "out_b": _init(next(kit), (1, cfg["num_quantiles"])),
        "pe": positional_encoding(cfg["seq_length"], H),
    }
    return params


# ----------------------------------------------------------------------------
# TFT forward (glue in XLA, compute in fused Pallas kernels)
# ----------------------------------------------------------------------------
def variable_selection(embedding, context, vsp, mX, E, H):
    T, B, _ = embedding.shape
    N = T * B
    x_flat = embedding.reshape(N, mX * E)
    ctx = context.reshape(N, -1)
    x_var = x_flat.reshape(N, mX, E).transpose(1, 0, 2)     # (mX, N, E) for stacked var-GRNs
    f, v = vsp["flat"], vsp["var"]
    out, sw = pl.pallas_call(
        _make_vs_kernel(mX),
        out_shape=(jax.ShapeDtypeStruct((N, H), jnp.float32),
                   jax.ShapeDtypeStruct((N, mX), jnp.float32)),
    )(x_flat, x_var, ctx,
      f["w1"], f["b1"], f["wc"], f["bc"], f["w2"], f["b2"],
      f["wg1"], f["bg1"], f["wg2"], f["bg2"], f["ws"], f["bs"],
      v["w1"], v["b1"], v["w2"], v["b2"],
      v["wg1"], v["bg1"], v["wg2"], v["bg2"], v["ws"], v["bs"])
    return out.reshape(T, B, H), sw.reshape(T, B, 1, mX)


def tft_forward(params, x_identifier, x_inputs, cfg):
    B = cfg["batch_size"]
    E = cfg["embedding_dim"]
    H = cfg["hidden_size"]
    Q = cfg["num_quantiles"]
    nh = cfg["attn_heads"]
    dh = H // nh
    n_static = cfg["static_variables"]
    n_past = cfg["n_past_covariates"]
    n_fut = cfg["n_future_covariates"]
    n_cat = cfg["n_past_categorical_covariates"]
    n_mask = cfg["num_masked_series"]
    Lly = cfg["lstm_layers"]
    T_enc = cfg["encode_length"]
    T_total = cfg["seq_length"]
    T_dec = T_total - T_enc
    S_emb = E * n_static

    # ---- static embeddings (gathers stay in XLA glue) ----
    emb_vecs = [params["static_emb"][i][x_identifier[:, 0, i].astype(jnp.int32)]
                for i in range(n_static)]
    static_embedding = jnp.concatenate(emb_vecs, axis=1)                     # (B, n_static*E)

    x_f = x_inputs.astype(jnp.float32)

    def apply_embedding(x_slice, apply_masking):
        Bx, T, _ = x_slice.shape
        if apply_masking:
            cols = x_slice[:, :, n_mask:n_mask + n_fut]
            w = params["tv_lin_w"][n_mask:n_mask + n_fut]
            b = params["tv_lin_b"][n_mask:n_mask + n_fut]
        else:
            cols = x_slice[:, :, :n_past]
            w = params["tv_lin_w"][:n_past]
            b = params["tv_lin_b"][:n_past]
        # batched "Linear(1, E)" as one broadcast multiply-add (no per-column kernel launches)
        real_emb = (cols[:, :, :, None] * w[None, None] + b[None, None]).reshape(Bx, T, -1)
        cat_vecs = [params["tv_emb"][i][x_slice[:, :, n_past + i].astype(jnp.int32)]
                    for i in range(n_cat)]
        cat_emb = jnp.concatenate(cat_vecs, axis=2)
        # reproduce torch.cat(T*[static_embedding]).view(B, T, -1) exactly
        static_rep = jnp.tile(static_embedding, (T, 1)).reshape(Bx, T, -1)
        embeddings = jnp.concatenate([static_rep, cat_emb, real_emb], axis=2)
        # reproduce embeddings.view(-1, B, D) exactly (row-major reshape, not transpose)
        return embeddings.reshape(-1, Bx, embeddings.shape[2])

    emb_enc = apply_embedding(x_f[:, :T_enc, :], False)
    emb_dec = apply_embedding(x_f[:, T_enc:, :], True)

    enc_sel, enc_sw = variable_selection(
        emb_enc[:, :, :-S_emb], emb_enc[:, :, -S_emb:], params["enc_vs"], n_past + n_cat, E, H)
    dec_sel, dec_sw = variable_selection(
        emb_dec[:, :, :-S_emb], emb_dec[:, :, -S_emb:], params["dec_vs"], n_fut + n_cat, E, H)

    pe = params["pe"]
    x_enc2 = enc_sel + pe[:T_enc]
    x_dec2 = dec_sel + pe[T_enc:T_total]
    lstm_input = jnp.concatenate([x_enc2, x_dec2], axis=0)

    # layer-0 input projection (+ combined bias) hoisted out of the serial recurrence
    le, ld = params["lstm_enc"], params["lstm_dec"]
    xpe = (x_enc2.reshape(T_enc * B, H) @ le["wih"][0] + le["b"][0]).reshape(T_enc, B, 4 * H)
    xpd = (x_dec2.reshape(T_dec * B, H) @ ld["wih"][0] + ld["b"][0]).reshape(T_dec, B, 4 * H)

    # ---- one fused two-phase LSTM kernel (encoder then decoder) ----
    y_enc, y_dec = pl.pallas_call(
        _make_lstm_kernel(Lly, T_enc, T_dec, H),
        out_shape=(jax.ShapeDtypeStruct((T_enc, B, H), jnp.float32),
                   jax.ShapeDtypeStruct((T_dec, B, H), jnp.float32)),
        scratch_shapes=[pltpu.VMEM((Lly, B, H), jnp.float32),
                        pltpu.VMEM((Lly, B, H), jnp.float32)],
    )(xpe, xpd, le["wih"], le["whh"], le["b"], ld["wih"], ld["whh"], ld["b"])

    # ---- post-LSTM GLU fused with the attention Q/K/V projection ----
    lstm_out_flat = jnp.concatenate([y_enc, y_dec], axis=0).reshape(T_total * B, H)
    lstm_in_flat = lstm_input.reshape(T_total * B, H)
    pg, mha = params["post_lstm_gate"], params["mha"]
    gated_flat, proj_flat = pl.pallas_call(
        _post_lstm_kernel,
        out_shape=(jax.ShapeDtypeStruct((T_total * B, H), jnp.float32),
                   jax.ShapeDtypeStruct((T_total * B, 3 * H), jnp.float32)),
    )(lstm_out_flat, lstm_in_flat, pg["w1"], pg["b1"], pg["w2"], pg["b2"],
      mha["in_w"], mha["in_b"])

    # TODO(synk): reference computes static_enrichment(lstm_output, static_embedding) and
    # immediately overwrites it with post_lstm_norm(lstm_output); dead code skipped.

    # head split (cheap XLA layout glue between fused kernels, matches nn.MultiheadAttention)
    q = proj_flat[T_enc * B:, 0 * H:1 * H].reshape(T_dec, B * nh, dh).transpose(1, 0, 2)
    k = proj_flat[:T_enc * B, 1 * H:2 * H].reshape(T_enc, B * nh, dh).transpose(1, 0, 2)
    v = proj_flat[:T_enc * B, 2 * H:3 * H].reshape(T_enc, B * nh, dh).transpose(1, 0, 2)

    ctx_h, attn_w = pl.pallas_call(
        _make_attn_core_kernel(B, nh, 1.0 / math.sqrt(dh)),
        out_shape=(jax.ShapeDtypeStruct((B * nh, T_dec, dh), jnp.float32),
                   jax.ShapeDtypeStruct((B, T_dec, T_enc), jnp.float32)),
    )(q, k, v)
    ctx_flat = ctx_h.transpose(1, 0, 2).reshape(T_dec * B, H)

    # ---- out_proj + post_attn GLU/norm + pos_wise_ff + pre_output GLU/norm + quantile head ----
    gated_dec_flat = gated_flat[T_enc * B:]
    pa, ff, og = params["post_attn_gate"], params["pos_wise_ff"], params["pre_output_gate"]
    attn_out_flat, final_flat = pl.pallas_call(
        _post_attn_kernel,
        out_shape=(jax.ShapeDtypeStruct((T_dec * B, H), jnp.float32),
                   jax.ShapeDtypeStruct((T_dec * B, Q), jnp.float32)),
    )(ctx_flat, gated_dec_flat,
      mha["out_w"], mha["out_b"],
      pa["w1"], pa["b1"], pa["w2"], pa["b2"],
      ff["w1"], ff["b1"], ff["w2"], ff["b2"],
      ff["wg1"], ff["bg1"], ff["wg2"], ff["bg2"],
      og["w1"], og["b1"], og["w2"], og["b2"],
      params["out_w"], params["out_b"])

    attn_output = attn_out_flat.reshape(T_dec, B, H)
    # reproduce output.view(batch_size, -1, hidden) row-major reinterpretation exactly
    output = final_flat.reshape(B, T_dec, Q)
    return (output, y_enc, y_dec, attn_output, attn_w, enc_sw, dec_sw)


# ----------------------------------------------------------------------------
# Main
# ----------------------------------------------------------------------------
if __name__ == "__main__":
    cfg = dict(
        batch_size=2,
        static_variables=2,
        n_past_categorical_covariates=1,
        n_past_covariates=3,
        n_future_covariates=2,
        num_masked_series=1,
        hidden_size=32,
        lstm_layers=2,
        embedding_dim=8,
        encode_length=8,
        seq_length=12,
        attn_heads=4,
        num_quantiles=3,
        static_vocab=32,
        tv_vocab=32,
    )

    key = jax.random.PRNGKey(0)
    k_par, k_id, k_real, k_cat = jax.random.split(key, 4)

    params = make_tft_params(k_par, cfg)

    B, S = cfg["batch_size"], cfg["seq_length"]
    x_identifier = jax.random.randint(
        k_id, (B, 1, cfg["static_variables"]), 0, cfg["static_vocab"]).astype(jnp.float32)
    real_part = jax.random.normal(k_real, (B, S, cfg["n_past_covariates"]), jnp.float32)
    cat_part = jax.random.randint(
        k_cat, (B, S, cfg["n_past_categorical_covariates"]), 0, cfg["tv_vocab"]).astype(jnp.float32)
    x_inputs = jnp.concatenate([real_part, cat_part], axis=2)   # (B, seq, n_past + n_cat)

    fwd = jax.jit(lambda p, xi, xin: tft_forward(p, xi, xin, cfg))
    outs = fwd(params, x_identifier, x_inputs)
    outs = jax.block_until_ready(outs)

    # light sanity checks on shapes / values
    out, enc_o, dec_o, attn_o, attn_w, enc_sw, dec_sw = outs
    T_dec = S - cfg["encode_length"]
    assert out.shape == (B, T_dec, cfg["num_quantiles"])
    assert enc_o.shape == (cfg["encode_length"], B, cfg["hidden_size"])
    assert dec_o.shape == (T_dec, B, cfg["hidden_size"])
    assert attn_o.shape == (T_dec, B, cfg["hidden_size"])
    assert attn_w.shape == (B, T_dec, cfg["encode_length"])
    assert all(bool(jnp.all(jnp.isfinite(o))) for o in outs)

    print("KERNEL_OK")
</pallas_src>

<mosaic_0001>
module attributes {stable_mosaic.version = 11 : i64} {
  func.func @kernel(%arg0: memref<16x32xf32, #tpu.memory_space<vmem>>, %arg1: memref<4x16x8xf32, #tpu.memory_space<vmem>>, %arg2: memref<16x16xf32, #tpu.memory_space<vmem>>, %arg3: memref<32x32xf32, #tpu.memory_space<vmem>>, %arg4: memref<1x32xf32, #tpu.memory_space<vmem>>, %arg5: memref<16x32xf32, #tpu.memory_space<vmem>>, %arg6: memref<1x32xf32, #tpu.memory_space<vmem>>, %arg7: memref<32x4xf32, #tpu.memory_space<vmem>>, %arg8: memref<1x4xf32, #tpu.memory_space<vmem>>, %arg9: memref<4x4xf32, #tpu.memory_space<vmem>>, %arg10: memref<1x4xf32, #tpu.memory_space<vmem>>, %arg11: memref<4x4xf32, #tpu.memory_space<vmem>>, %arg12: memref<1x4xf32, #tpu.memory_space<vmem>>, %arg13: memref<32x4xf32, #tpu.memory_space<vmem>>, %arg14: memref<1x4xf32, #tpu.memory_space<vmem>>, %arg15: memref<4x8x32xf32, #tpu.memory_space<vmem>>, %arg16: memref<4x1x32xf32, #tpu.memory_space<vmem>>, %arg17: memref<4x32x32xf32, #tpu.memory_space<vmem>>, %arg18: memref<4x1x32xf32, #tpu.memory_space<vmem>>, %arg19: memref<4x32x32xf32, #tpu.memory_space<vmem>>, %arg20: memref<4x1x32xf32, #tpu.memory_space<vmem>>, %arg21: memref<4x32x32xf32, #tpu.memory_space<vmem>>, %arg22: memref<4x1x32xf32, #tpu.memory_space<vmem>>, %arg23: memref<4x8x32xf32, #tpu.memory_space<vmem>>, %arg24: memref<4x1x32xf32, #tpu.memory_space<vmem>>, %arg25: memref<16x32xf32, #tpu.memory_space<vmem>>, %arg26: memref<16x4xf32, #tpu.memory_space<vmem>>) attributes {dimension_semantics = [], scalar_prefetch = 0 : i64, scratch_operands = 0 : i64, tpu.core_type = #tpu.core_type<tc>} {
    %c0 = arith.constant 0 : index
    %c0_0 = arith.constant 0 : index
    %0 = vector.load %arg0[%c0, %c0_0] : memref<16x32xf32, #tpu.memory_space<vmem>>, vector<16x32xf32>
    %c0_1 = arith.constant 0 : index
    %c0_2 = arith.constant 0 : index
    %1 = vector.load %arg2[%c0_1, %c0_2] : memref<16x16xf32, #tpu.memory_space<vmem>>, vector<16x16xf32>
    %c0_3 = arith.constant 0 : index
    %c0_4 = arith.constant 0 : index
    %2 = vector.load %arg13[%c0_3, %c0_4] : memref<32x4xf32, #tpu.memory_space<vmem>>, vector<32x4xf32>
    %cst = arith.constant dense<0.000000e+00> : vector<16x4xf32>
    %3 = tpu.matmul %0, %2, %cst {dimension_numbers = #tpu.dot_dimension_numbers<[1], [0], [0], [1], [0, 0, 1, 1], [], []>} : vector<16x32xf32>, vector<32x4xf32>, vector<16x4xf32> -> vector<16x4xf32>
    %c0_5 = arith.constant 0 : index
    %c0_6 = arith.constant 0 : index
    %4 = vector.load %arg14[%c0_5, %c0_6] : memref<1x4xf32, #tpu.memory_space<vmem>>, vector<1x4xf32>
    %5 = vector.broadcast %4 : vector<1x4xf32> to vector<16x4xf32>
    %6 = arith.addf %3, %5 : vector<16x4xf32>
    %c0_7 = arith.constant 0 : index
    %c0_8 = arith.constant 0 : index
    %7 = vector.load %arg3[%c0_7, %c0_8] : memref<32x32xf32, #tpu.memory_space<vmem>>, vector<32x32xf32>
    %cst_9 = arith.constant dense<0.000000e+00> : vector<16x32xf32>
    %8 = tpu.matmul %0, %7, %cst_9 {dimension_numbers = #tpu.dot_dimension_numbers<[1], [0], [0], [1], [0, 0, 1, 1], [], []>} : vector<16x32xf32>, vector<32x32xf32>, vector<16x32xf32> -> vector<16x32xf32>
    %c0_10 = arith.constant 0 : index
    %c0_11 = arith.constant 0 : index
    %9 = vector.load %arg4[%c0_10, %c0_11] : memref<1x32xf32, #tpu.memory_space<vmem>>, vector<1x32xf32>
    %10 = vector.broadcast %9 : vector<1x32xf32> to vector<16x32xf32>
    %11 = arith.addf %8, %10 : vector<16x32xf32>
    %c0_12 = arith.constant 0 : index
    %c0_13 = arith.constant 0 : index
    %12 = vector.load %arg5[%c0_12, %c0_13] : memref<16x32xf32, #tpu.memory_space<vmem>>, vector<16x32xf32>
    %cst_14 = arith.constant dense<0.000000e+00> : vector<16x32xf32>
    %13 = tpu.matmul %1, %12, %cst_14 {dimension_numbers = #tpu.dot_dimension_numbers<[1], [0], [0], [1], [0, 0, 1, 1], [], []>} : vector<16x16xf32>, vector<16x32xf32>, vector<16x32xf32> -> vector<16x32xf32>
    %14 = arith.addf %11, %13 : vector<16x32xf32>
    %c0_15 = arith.constant 0 : index
    %c0_16 = arith.constant 0 : index
    %15 = vector.load %arg6[%c0_15, %c0_16] : memref<1x32xf32, #tpu.memory_space<vmem>>, vector<1x32xf32>
    %16 = vector.broadcast %15 : vector<1x32xf32> to vector<16x32xf32>
    %17 = arith.addf %14, %16 : vector<16x32xf32>
    %cst_17 = arith.constant 0.000000e+00 : f32
    %18 = vector.broadcast %cst_17 : f32 to vector<16x32xf32>
    %19 = arith.cmpf ogt, %17, %18 : vector<16x32xf32>
    %cst_18 = arith.constant 0.000000e+00 : f32
    %20 = vector.broadcast %cst_18 : f32 to vector<16x32xf32>
    %21 = arith.minimumf %17, %20 : vector<16x32xf32>
    %22 = math.exp %21 : vector<16x32xf32>
    %cst_19 = arith.constant 1.000000e+00 : f32
    %23 = vector.broadcast %cst_19 : f32 to vector<16x32xf32>
    %24 = arith.subf %22, %23 : vector<16x32xf32>
    %25 = arith.select %19, %17, %24 : vector<16x32xi1>, vector<16x32xf32>
    %c0_20 = arith.constant 0 : index
    %c0_21 = arith.constant 0 : index
    %26 = vector.load %arg7[%c0_20, %c0_21] : memref<32x4xf32, #tpu.memory_space<vmem>>, vector<32x4xf32>
    %cst_22 = arith.constant dense<0.000000e+00> : vector<16x4xf32>
    %27 = tpu.matmul %25, %26, %cst_22 {dimension_numbers = #tpu.dot_dimension_numbers<[1], [0], [0], [1], [0, 0, 1, 1], [], []>} : vector<16x32xf32>, vector<32x4xf32>, vector<16x4xf32> -> vector<16x4xf32>
    %c0_23 = arith.constant 0 : index
    %c0_24 = arith.constant 0 : index
    %28 = vector.load %arg8[%c0_23, %c0_24] : memref<1x4xf32, #tpu.memory_space<vmem>>, vector<1x4xf32>
    %29 = vector.broadcast %28 : vector<1x4xf32> to vector<16x4xf32>
    %30 = arith.addf %27, %29 : vector<16x4xf32>
    %c0_25 = arith.constant 0 : index
    %c0_26 = arith.constant 0 : index
    %31 = vector.load %arg9[%c0_25, %c0_26] : memref<4x4xf32, #tpu.memory_space<vmem>>, vector<4x4xf32>
    %cst_27 = arith.constant dense<0.000000e+00> : vector<16x4xf32>
    %32 = tpu.matmul %30, %31, %cst_27 {dimension_numbers = #tpu.dot_dimension_numbers<[1], [0], [0], [1], [0, 0, 1, 1], [], []>} : vector<16x4xf32>, vector<4x4xf32>, vector<16x4xf32> -> vector<16x4xf32>
    %c0_28 = arith.constant 0 : index
    %c0_29 = arith.constant 0 : index
    %33 = vector.load %arg10[%c0_28, %c0_29] : memref<1x4xf32, #tpu.memory_space<vmem>>, vector<1x4xf32>
    %34 = vector.broadcast %33 : vector<1x4xf32> to vector<16x4xf32>
    %35 = arith.addf %32, %34 : vector<16x4xf32>
    %36 = arith.negf %35 : vector<16x4xf32>
    %37 = math.exp %36 : vector<16x4xf32>
    %cst_30 = arith.constant 1.000000e+00 : f32
    %38 = vector.broadcast %cst_30 : f32 to vector<16x4xf32>
    %39 = arith.addf %38, %37 : vector<16x4xf32>
    %40 = arith.divf %38, %39 : vector<16x4xf32>
    %c0_31 = arith.constant 0 : index
    %c0_32 = arith.constant 0 : index
    %41 = vector.load %arg11[%c0_31, %c0_32] : memref<4x4xf32, #tpu.memory_space<vmem>>, vector<4x4xf32>
    %cst_33 = arith.constant dense<0.000000e+00> : vector<16x4xf32>
    %42 = tpu.matmul %30, %41, %cst_33 {dimension_numbers = #tpu.dot_dimension_numbers<[1], [0], [0], [1], [0, 0, 1, 1], [], []>} : vector<16x4xf32>, vector<4x4xf32>, vector<16x4xf32> -> vector<16x4xf32>
    %c0_34 = arith.constant 0 : index
    %c0_35 = arith.constant 0 : index
    %43 = vector.load %arg12[%c0_34, %c0_35] : memref<1x4xf32, #tpu.memory_space<vmem>>, vector<1x4xf32>
    %44 = vector.broadcast %43 : vector<1x4xf32> to vector<16x4xf32>
    %45 = arith.addf %42, %44 : vector<16x4xf32>
    %46 = arith.mulf %40, %45 : vector<16x4xf32>
    %47 = arith.addf %46, %6 : vector<16x4xf32>
    %cst_36 = arith.constant 0.999994993 : f32
    %48 = vector.broadcast %cst_36 : f32 to vector<16x4xf32>
    %49 = arith.mulf %47, %48 : vector<16x4xf32>
    %cst_37 = arith.constant dense<0xFF800000> : vector<16xf32>
    %50 = vector.multi_reduction <maximumf>, %49, %cst_37 [1] : vector<16x4xf32> to vector<16xf32>
    %51 = vector.shape_cast %50 : vector<16xf32> to vector<16x1xf32>
    %52 = vector.broadcast %51 : vector<16x1xf32> to vector<16x4xf32>
    %53 = arith.subf %49, %52 : vector<16x4xf32>
    %54 = math.exp %53 : vector<16x4xf32>
    %cst_38 = arith.constant dense<0.000000e+00> : vector<16xf32>
    %55 = vector.multi_reduction <add>, %54, %cst_38 [1] : vector<16x4xf32> to vector<16xf32>
    %56 = vector.shape_cast %55 : vector<16xf32> to vector<16x1xf32>
    %57 = vector.broadcast %56 : vector<16x1xf32> to vector<16x4xf32>
    %58 = arith.divf %54, %57 : vector<16x4xf32>
    %c0_39 = arith.constant 0 : index
    %c0_40 = arith.constant 0 : index
    %59 = vector.load %arg26[%c0_39, %c0_40] : memref<16x4xf32, #tpu.memory_space<vmem>>, vector<16x4xf32>
    tpu.vector_store %arg26[%c0_39, %c0_40], %58 {strides = array<i32>} : memref<16x4xf32, #tpu.memory_space<vmem>>, vector<16x4xf32>,
    %c0_41 = arith.constant 0 : index
    %c0_42 = arith.constant 0 : index
    %c0_43 = arith.constant 0 : index
    %60 = vector.load %arg1[%c0_41, %c0_42, %c0_43] : memref<4x16x8xf32, #tpu.memory_space<vmem>>, vector<1x16x8xf32>
    %61 = vector.shape_cast %60 : vector<1x16x8xf32> to vector<16x8xf32>
    %c0_44 = arith.constant 0 : index
    %c0_45 = arith.constant 0 : index
    %c0_46 = arith.constant 0 : index
    %62 = vector.load %arg23[%c0_44, %c0_45, %c0_46] : memref<4x8x32xf32, #tpu.memory_space<vmem>>, vector<1x8x32xf32>
    %63 = vector.shape_cast %62 : vector<1x8x32xf32> to vector<8x32xf32>
    %cst_47 = arith.constant dense<0.000000e+00> : vector<16x32xf32>
    %64 = tpu.matmul %61, %63, %cst_47 {dimension_numbers = #tpu.dot_dimension_numbers<[1], [0], [0], [1], [0, 0, 1, 1], [], []>} : vector<16x8xf32>, vector<8x32xf32>, vector<16x32xf32> -> vector<16x32xf32>
    %c0_48 = arith.constant 0 : index
    %c0_49 = arith.constant 0 : index
    %c0_50 = arith.constant 0 : index
    %65 = vector.load %arg24[%c0_48, %c0_49, %c0_50] : memref<4x1x32xf32, #tpu.memory_space<vmem>>, vector<1x1x32xf32>
    %66 = vector.shape_cast %65 : vector<1x1x32xf32> to vector<1x32xf32>
    %67 = vector.broadcast %66 : vector<1x32xf32> to vector<16x32xf32>
    %68 = arith.addf %64, %67 : vector<16x32xf32>
    %c0_51 = arith.constant 0 : index
    %c0_52 = arith.constant 0 : index
    %c0_53 = arith.constant 0 : index
    %69 = vector.load %arg15[%c0_51, %c0_52, %c0_53] : memref<4x8x32xf32, #tpu.memory_space<vmem>>, vector<1x8x32xf32>
    %70 = vector.shape_cast %69 : vector<1x8x32xf32> to vector<8x32xf32>
    %cst_54 = arith.constant dense<0.000000e+00> : vector<16x32xf32>
    %71 = tpu.matmul %61, %70, %cst_54 {dimension_numbers = #tpu.dot_dimension_numbers<[1], [0], [0], [1], [0, 0, 1, 1], [], []>} : vector<16x8xf32>, vector<8x32xf32>, vector<16x32xf32> -> vector<16x32xf32>
    %c0_55 = arith.constant 0 : index
    %c0_56 = arith.constant 0 : index
    %c0_57 = arith.constant 0 : index
    %72 = vector.load %arg16[%c0_55, %c0_56, %c0_57] : memref<4x1x32xf32, #tpu.memory_space<vmem>>, vector<1x1x32xf32>
    %73 = vector.shape_cast %72 : vector<1x1x32xf32> to vector<1x32xf32>
    %74 = vector.broadcast %73 : vector<1x32xf32> to vector<16x32xf32>
    %75 = arith.addf %71, %74 : vector<16x32xf32>
    %cst_58 = arith.constant 0.000000e+00 : f32
    %76 = vector.broadcast %cst_58 : f32 to vector<16x32xf32>
    %77 = arith.cmpf ogt, %75, %76 : vector<16x32xf32>
    %cst_59 = arith.constant 0.000000e+00 : f32
    %78 = vector.broadcast %cst_59 : f32 to vector<16x32xf32>
    %79 = arith.minimumf %75, %78 : vector<16x32xf32>
    %80 = math.exp %79 : vector<16x32xf32>
    %cst_60 = arith.constant 1.000000e+00 : f32
    %81 = vector.broadcast %cst_60 : f32 to vector<16x32xf32>
    %82 = arith.subf %80, %81 : vector<16x32xf32>
    %83 = arith.select %77, %75, %82 : vector<16x32xi1>, vector<16x32xf32>
    %c0_61 = arith.constant 0 : index
    %c0_62 = arith.constant 0 : index
    %c0_63 = arith.constant 0 : index
    %84 = vector.load %arg17[%c0_61, %c0_62, %c0_63] : memref<4x32x32xf32, #tpu.memory_space<vmem>>, vector<1x32x32xf32>
    %85 = vector.shape_cast %84 : vector<1x32x32xf32> to vector<32x32xf32>
    %cst_64 = arith.constant dense<0.000000e+00> : vector<16x32xf32>
    %86 = tpu.matmul %83, %85, %cst_64 {dimension_numbers = #tpu.dot_dimension_numbers<[1], [0], [0], [1], [0, 0, 1, 1], [], []>} : vector<16x32xf32>, vector<32x32xf32>, vector<16x32xf32> -> vector<16x32xf32>
    %c0_65 = arith.constant 0 : index
    %c0_66 = arith.constant 0 : index
    %c0_67 = arith.constant 0 : index
    %87 = vector.load %arg18[%c0_65, %c0_66, %c0_67] : memref<4x1x32xf32, #tpu.memory_space<vmem>>, vector<1x1x32xf32>
    %88 = vector.shape_cast %87 : vector<1x1x32xf32> to vector<1x32xf32>
    %89 = vector.broadcast %88 : vector<1x32xf32> to vector<16x32xf32>
    %90 = arith.addf %86, %89 : vector<16x32xf32>
    %c0_68 = arith.constant 0 : index
    %c0_69 = arith.constant 0 : index
    %c0_70 = arith.constant 0 : index
    %91 = vector.load %arg19[%c0_68, %c0_69, %c0_70] : memref<4x32x32xf32, #tpu.memory_space<vmem>>, vector<1x32x32xf32>
    %92 = vector.shape_cast %91 : vector<1x32x32xf32> to vector<32x32xf32>
    %cst_71 = arith.constant dense<0.000000e+00> : vector<16x32xf32>
    %93 = tpu.matmul %90, %92, %cst_71 {dimension_numbers = #tpu.dot_dimension_numbers<[1], [0], [0], [1], [0, 0, 1, 1], [], []>} : vector<16x32xf32>, vector<32x32xf32>, vector<16x32xf32> -> vector<16x32xf32>
    %c0_72 = arith.constant 0 : index
    %c0_73 = arith.constant 0 : index
    %c0_74 = arith.constant 0 : index
    %94 = vector.load %arg20[%c0_72, %c0_73, %c0_74] : memref<4x1x32xf32, #tpu.memory_space<vmem>>, vector<1x1x32xf32>
    %95 = vector.shape_cast %94 : vector<1x1x32xf32> to vector<1x32xf32>
    %96 = vector.broadcast %95 : vector<1x32xf32> to vector<16x32xf32>
    %97 = arith.addf %93, %96 : vector<16x32xf32>
    %98 = arith.negf %97 : vector<16x32xf32>
    %99 = math.exp %98 : vector<16x32xf32>
    %cst_75 = arith.constant 1.000000e+00 : f32
    %100 = vector.broadcast %cst_75 : f32 to vector<16x32xf32>
    %101 = arith.addf %100, %99 : vector<16x32xf32>
    %102 = arith.divf %100, %101 : vector<16x32xf32>
    %c0_76 = arith.constant 0 : index
    %c0_77 = arith.constant 0 : index
    %c0_78 = arith.constant 0 : index
    %103 = vector.load %arg21[%c0_76, %c0_77, %c0_78] : memref<4x32x32xf32, #tpu.memory_space<vmem>>, vector<1x32x32xf32>
    %104 = vector.shape_cast %103 : vector<1x32x32xf32> to vector<32x32xf32>
    %cst_79 = arith.constant dense<0.000000e+00> : vector<16x32xf32>
    %105 = tpu.matmul %90, %104, %cst_79 {dimension_numbers = #tpu.dot_dimension_numbers<[1], [0], [0], [1], [0, 0, 1, 1], [], []>} : vector<16x32xf32>, vector<32x32xf32>, vector<16x32xf32> -> vector<16x32xf32>
    %c0_80 = arith.constant 0 : index
    %c0_81 = arith.constant 0 : index
    %c0_82 = arith.constant 0 : index
    %106 = vector.load %arg22[%c0_80, %c0_81, %c0_82] : memref<4x1x32xf32, #tpu.memory_space<vmem>>, vector<1x1x32xf32>
    %107 = vector.shape_cast %106 : vector<1x1x32xf32> to vector<1x32xf32>
    %108 = vector.broadcast %107 : vector<1x32xf32> to vector<16x32xf32>
    %109 = arith.addf %105, %108 : vector<16x32xf32>
    %110 = arith.mulf %102, %109 : vector<16x32xf32>
    %111 = arith.addf %110, %68 : vector<16x32xf32>
    %cst_83 = arith.constant 0.999994993 : f32
    %112 = vector.broadcast %cst_83 : f32 to vector<16x32xf32>
    %113 = arith.mulf %111, %112 : vector<16x32xf32>
    %114 = vector.extract_strided_slice %58 {offsets = [0, 0], sizes = [16, 1], strides = [1, 1]} : vector<16x4xf32> to vector<16x1xf32>
    %115 = vector.broadcast %114 : vector<16x1xf32> to vector<16x32xf32>
    %116 = arith.mulf %113, %115 : vector<16x32xf32>
    %c1 = arith.constant 1 : index
    %c0_84 = arith.constant 0 : index
    %c0_85 = arith.constant 0 : index
    %117 = vector.load %arg1[%c1, %c0_84, %c0_85] : memref<4x16x8xf32, #tpu.memory_space<vmem>>, vector<1x16x8xf32>
    %118 = vector.shape_cast %117 : vector<1x16x8xf32> to vector<16x8xf32>
    %c1_86 = arith.constant 1 : index
    %c0_87 = arith.constant 0 : index
    %c0_88 = arith.constant 0 : index
    %119 = vector.load %arg23[%c1_86, %c0_87, %c0_88] : memref<4x8x32xf32, #tpu.memory_space<vmem>>, vector<1x8x32xf32>
    %120 = vector.shape_cast %119 : vector<1x8x32xf32> to vector<8x32xf32>
    %cst_89 = arith.constant dense<0.000000e+00> : vector<16x32xf32>
    %121 = tpu.matmul %118, %120, %cst_89 {dimension_numbers = #tpu.dot_dimension_numbers<[1], [0], [0], [1], [0, 0, 1, 1], [], []>} : vector<16x8xf32>, vector<8x32xf32>, vector<16x32xf32> -> vector<16x32xf32>
    %c1_90 = arith.constant 1 : index
    %c0_91 = arith.constant 0 : index
    %c0_92 = arith.constant 0 : index
    %122 = vector.load %arg24[%c1_90, %c0_91, %c0_92] : memref<4x1x32xf32, #tpu.memory_space<vmem>>, vector<1x1x32xf32>
    %123 = vector.shape_cast %122 : vector<1x1x32xf32> to vector<1x32xf32>
    %124 = vector.broadcast %123 : vector<1x32xf32> to vector<16x32xf32>
    %125 = arith.addf %121, %124 : vector<16x32xf32>
    %c1_93 = arith.constant 1 : index
    %c0_94 = arith.constant 0 : index
    %c0_95 = arith.constant 0 : index
    %126 = vector.load %arg15[%c1_93, %c0_94, %c0_95] : memref<4x8x32xf32, #tpu.memory_space<vmem>>, vector<1x8x32xf32>
    %127 = vector.shape_cast %126 : vector<1x8x32xf32> to vector<8x32xf32>
    %cst_96 = arith.constant dense<0.000000e+00> : vector<16x32xf32>
    %128 = tpu.matmul %118, %127, %cst_96 {dimension_numbers = #tpu.dot_dimension_numbers<[1], [0], [0], [1], [0, 0, 1, 1], [], []>} : vector<16x8xf32>, vector<8x32xf32>, vector<16x32xf32> -> vector<16x32xf32>
    %c1_97 = arith.constant 1 : index
    %c0_98 = arith.constant 0 : index
    %c0_99 = arith.constant 0 : index
    %129 = vector.load %arg16[%c1_97, %c0_98, %c0_99] : memref<4x1x32xf32, #tpu.memory_space<vmem>>, vector<1x1x32xf32>
    %130 = vector.shape_cast %129 : vector<1x1x32xf32> to vector<1x32xf32>
    %131 = vector.broadcast %130 : vector<1x32xf32> to vector<16x32xf32>
    %132 = arith.addf %128, %131 : vector<16x32xf32>
    %cst_100 = arith.constant 0.000000e+00 : f32
    %133 = vector.broadcast %cst_100 : f32 to vector<16x32xf32>
    %134 = arith.cmpf ogt, %132, %133 : vector<16x32xf32>
    %cst_101 = arith.constant 0.000000e+00 : f32
    %135 = vector.broadcast %cst_101 : f32 to vector<16x32xf32>
    %136 = arith.minimumf %132, %135 : vector<16x32xf32>
    %137 = math.exp %136 : vector<16x32xf32>
    %cst_102 = arith.constant 1.000000e+00 : f32
    %138 = vector.broadcast %cst_102 : f32 to vector<16x32xf32>
    %139 = arith.subf %137, %138 : vector<16x32xf32>
    %140 = arith.select %134, %132, %139 : vector<16x32xi1>, vector<16x32xf32>
    %c1_103 = arith.constant 1 : index
    %c0_104 = arith.constant 0 : index
    %c0_105 = arith.constant 0 : index
    %141 = vector.load %arg17[%c1_103, %c0_104, %c0_105] : memref<4x32x32xf32, #tpu.memory_space<vmem>>, vector<1x32x32xf32>
    %142 = vector.shape_cast %141 : vector<1x32x32xf32> to vector<32x32xf32>
    %cst_106 = arith.constant dense<0.000000e+00> : vector<16x32xf32>
    %143 = tpu.matmul %140, %142, %cst_106 {dimension_numbers = #tpu.dot_dimension_numbers<[1], [0], [0], [1], [0, 0, 1, 1], [], []>} : vector<16x32xf32>, vector<32x32xf32>, vector<16x32xf32> -> vector<16x32xf32>
    %c1_107 = arith.constant 1 : index
    %c0_108 = arith.constant 0 : index
    %c0_109 = arith.constant 0 : index
    %144 = vector.load %arg18[%c1_107, %c0_108, %c0_109] : memref<4x1x32xf32, #tpu.memory_space<vmem>>, vector<1x1x32xf32>
    %145 = vector.shape_cast %144 : vector<1x1x32xf32> to vector<1x32xf32>
    %146 = vector.broadcast %145 : vector<1x32xf32> to vector<16x32xf32>
    %147 = arith.addf %143, %146 : vector<16x32xf32>
    %c1_110 = arith.constant 1 : index
    %c0_111 = arith.constant 0 : index
    %c0_112 = arith.constant 0 : index
    %148 = vector.load %arg19[%c1_110, %c0_111, %c0_112] : memref<4x32x32xf32, #tpu.memory_space<vmem>>, vector<1x32x32xf32>
    %149 = vector.shape_cast %148 : vector<1x32x32xf32> to vector<32x32xf32>
    %cst_113 = arith.constant dense<0.000000e+00> : vector<16x32xf32>
    %150 = tpu.matmul %147, %149, %cst_113 {dimension_numbers = #tpu.dot_dimension_numbers<[1], [0], [0], [1], [0, 0, 1, 1], [], []>} : vector<16x32xf32>, vector<32x32xf32>, vector<16x32xf32> -> vector<16x32xf32>
    %c1_114 = arith.constant 1 : index
    %c0_115 = arith.constant 0 : index
    %c0_116 = arith.constant 0 : index
    %151 = vector.load %arg20[%c1_114, %c0_115, %c0_116] : memref<4x1x32xf32, #tpu.memory_space<vmem>>, vector<1x1x32xf32>
    %152 = vector.shape_cast %151 : vector<1x1x32xf32> to vector<1x32xf32>
    %153 = vector.broadcast %152 : vector<1x32xf32> to vector<16x32xf32>
    %154 = arith.addf %150, %153 : vector<16x32xf32>
    %155 = arith.negf %154 : vector<16x32xf32>
    %156 = math.exp %155 : vector<16x32xf32>
    %cst_117 = arith.constant 1.000000e+00 : f32
    %157 = vector.broadcast %cst_117 : f32 to vector<16x32xf32>
    %158 = arith.addf %157, %156 : vector<16x32xf32>
    %159 = arith.divf %157, %158 : vector<16x32xf32>
    %c1_118 = arith.constant 1 : index
    %c0_119 = arith.constant 0 : index
    %c0_120 = arith.constant 0 : index
    %160 = vector.load %arg21[%c1_118, %c0_119, %c0_120] : memref<4x32x32xf32, #tpu.memory_space<vmem>>, vector<1x32x32xf32>
    %161 = vector.shape_cast %160 : vector<1x32x32xf32> to vector<32x32xf32>
    %cst_121 = arith.constant dense<0.000000e+00> : vector<16x32xf32>
    %162 = tpu.matmul %147, %161, %cst_121 {dimension_numbers = #tpu.dot_dimension_numbers<[1], [0], [0], [1], [0, 0, 1, 1], [], []>} : vector<16x32xf32>, vector<32x32xf32>, vector<16x32xf32> -> vector<16x32xf32>
    %c1_122 = arith.constant 1 : index
    %c0_123 = arith.constant 0 : index
    %c0_124 = arith.constant 0 : index
    %163 = vector.load %arg22[%c1_122, %c0_123, %c0_124] : memref<4x1x32xf32, #tpu.memory_space<vmem>>, vector<1x1x32xf32>
    %164 = vector.shape_cast %163 : vector<1x1x32xf32> to vector<1x32xf32>
    %165 = vector.broadcast %164 : vector<1x32xf32> to vector<16x32xf32>
    %166 = arith.addf %162, %165 : vector<16x32xf32>
    %167 = arith.mulf %159, %166 : vector<16x32xf32>
    %168 = arith.addf %167, %125 : vector<16x32xf32>
    %cst_125 = arith.constant 0.999994993 : f32
    %169 = vector.broadcast %cst_125 : f32 to vector<16x32xf32>
    %170 = arith.mulf %168, %169 : vector<16x32xf32>
    %171 = vector.extract_strided_slice %58 {offsets = [0, 1], sizes = [16, 1], strides = [1, 1]} : vector<16x4xf32> to vector<16x1xf32>
    %172 = vector.broadcast %171 : vector<16x1xf32> to vector<16x32xf32>
    %173 = arith.mulf %170, %172 : vector<16x32xf32>
    %174 = arith.addf %116, %173 : vector<16x32xf32>
    %c2 = arith.constant 2 : index
    %c0_126 = arith.constant 0 : index
    %c0_127 = arith.constant 0 : index
    %175 = vector.load %arg1[%c2, %c0_126, %c0_127] : memref<4x16x8xf32, #tpu.memory_space<vmem>>, vector<1x16x8xf32>
    %176 = vector.shape_cast %175 : vector<1x16x8xf32> to vector<16x8xf32>
    %c2_128 = arith.constant 2 : index
    %c0_129 = arith.constant 0 : index
    %c0_130 = arith.constant 0 : index
    %177 = vector.load %arg23[%c2_128, %c0_129, %c0_130] : memref<4x8x32xf32, #tpu.memory_space<vmem>>, vector<1x8x32xf32>
    %178 = vector.shape_cast %177 : vector<1x8x32xf32> to vector<8x32xf32>
    %cst_131 = arith.constant dense<0.000000e+00> : vector<16x32xf32>
    %179 = tpu.matmul %176, %178, %cst_131 {dimension_numbers = #tpu.dot_dimension_numbers<[1], [0], [0], [1], [0, 0, 1, 1], [], []>} : vector<16x8xf32>, vector<8x32xf32>, vector<16x32xf32> -> vector<16x32xf32>
    %c2_132 = arith.constant 2 : index
    %c0_133 = arith.constant 0 : index
    %c0_134 = arith.constant 0 : index
    %180 = vector.load %arg24[%c2_132, %c0_133, %c0_134] : memref<4x1x32xf32, #tpu.memory_space<vmem>>, vector<1x1x32xf32>
    %181 = vector.shape_cast %180 : vector<1x1x32xf32> to vector<1x32xf32>
    %182 = vector.broadcast %181 : vector<1x32xf32> to vector<16x32xf32>
    %183 = arith.addf %179, %182 : vector<16x32xf32>
    %c2_135 = arith.constant 2 : index
    %c0_136 = arith.constant 0 : index
    %c0_137 = arith.constant 0 : index
    %184 = vector.load %arg15[%c2_135, %c0_136, %c0_137] : memref<4x8x32xf32, #tpu.memory_space<vmem>>, vector<1x8x32xf32>
    %185 = vector.shape_cast %184 : vector<1x8x32xf32> to vector<8x32xf32>
    %cst_138 = arith.constant dense<0.000000e+00> : vector<16x32xf32>
    %186 = tpu.matmul %176, %185, %cst_138 {dimension_numbers = #tpu.dot_dimension_numbers<[1], [0], [0], [1], [0, 0, 1, 1], [], []>} : vector<16x8xf32>, vector<8x32xf32>, vector<16x32xf32> -> vector<16x32xf32>
    %c2_139 = arith.constant 2 : index
    %c0_140 = arith.constant 0 : index
    %c0_141 = arith.constant 0 : index
    %187 = vector.load %arg16[%c2_139, %c0_140, %c0_141] : memref<4x1x32xf32, #tpu.memory_space<vmem>>, vector<1x1x32xf32>
    %188 = vector.shape_cast %187 : vector<1x1x32xf32> to vector<1x32xf32>
    %189 = vector.broadcast %188 : vector<1x32xf32> to vector<16x32xf32>
    %190 = arith.addf %186, %189 : vector<16x32xf32>
    %cst_142 = arith.constant 0.000000e+00 : f32
    %191 = vector.broadcast %cst_142 : f32 to vector<16x32xf32>
    %192 = arith.cmpf ogt, %190, %191 : vector<16x32xf32>
    %cst_143 = arith.constant 0.000000e+00 : f32
    %193 = vector.broadcast %cst_143 : f32 to vector<16x32xf32>
    %194 = arith.minimumf %190, %193 : vector<16x32xf32>
    %195 = math.exp %194 : vector<16x32xf32>
    %cst_144 = arith.constant 1.000000e+00 : f32
    %196 = vector.broadcast %cst_144 : f32 to vector<16x32xf32>
    %197 = arith.subf %195, %196 : vector<16x32xf32>
    %198 = arith.select %192, %190, %197 : vector<16x32xi1>, vector<16x32xf32>
    %c2_145 = arith.constant 2 : index
    %c0_146 = arith.constant 0 : index
    %c0_147 = arith.constant 0 : index
    %199 = vector.load %arg17[%c2_145, %c0_146, %c0_147] : memref<4x32x32xf32, #tpu.memory_space<vmem>>, vector<1x32x32xf32>
    %200 = vector.shape_cast %199 : vector<1x32x32xf32> to vector<32x32xf32>
    %cst_148 = arith.constant dense<0.000000e+00> : vector<16x32xf32>
    %201 = tpu.matmul %198, %200, %cst_148 {dimension_numbers = #tpu.dot_dimension_numbers<[1], [0], [0], [1], [0, 0, 1, 1], [], []>} : vector<16x32xf32>, vector<32x32xf32>, vector<16x32xf32> -> vector<16x32xf32>
    %c2_149 = arith.constant 2 : index
    %c0_150 = arith.constant 0 : index
    %c0_151 = arith.constant 0 : index
    %202 = vector.load %arg18[%c2_149, %c0_150, %c0_151] : memref<4x1x32xf32, #tpu.memory_space<vmem>>, vector<1x1x32xf32>
    %203 = vector.shape_cast %202 : vector<1x1x32xf32> to vector<1x32xf32>
    %204 = vector.broadcast %203 : vector<1x32xf32> to vector<16x32xf32>
    %205 = arith.addf %201, %204 : vector<16x32xf32>
    %c2_152 = arith.constant 2 : index
    %c0_153 = arith.constant 0 : index
    %c0_154 = arith.constant 0 : index
    %206 = vector.load %arg19[%c2_152, %c0_153, %c0_154] : memref<4x32x32xf32, #tpu.memory_space<vmem>>, vector<1x32x32xf32>
    %207 = vector.shape_cast %206 : vector<1x32x32xf32> to vector<32x32xf32>
    %cst_155 = arith.constant dense<0.000000e+00> : vector<16x32xf32>
    %208 = tpu.matmul %205, %207, %cst_155 {dimension_numbers = #tpu.dot_dimension_numbers<[1], [0], [0], [1], [0, 0, 1, 1], [], []>} : vector<16x32xf32>, vector<32x32xf32>, vector<16x32xf32> -> vector<16x32xf32>
    %c2_156 = arith.constant 2 : index
    %c0_157 = arith.constant 0 : index
    %c0_158 = arith.constant 0 : index
    %209 = vector.load %arg20[%c2_156, %c0_157, %c0_158] : memref<4x1x32xf32, #tpu.memory_space<vmem>>, vector<1x1x32xf32>
    %210 = vector.shape_cast %209 : vector<1x1x32xf32> to vector<1x32xf32>
    %211 = vector.broadcast %210 : vector<1x32xf32> to vector<16x32xf32>
    %212 = arith.addf %208, %211 : vector<16x32xf32>
    %213 = arith.negf %212 : vector<16x32xf32>
    %214 = math.exp %213 : vector<16x32xf32>
    %cst_159 = arith.constant 1.000000e+00 : f32
    %215 = vector.broadcast %cst_159 : f32 to vector<16x32xf32>
    %216 = arith.addf %215, %214 : vector<16x32xf32>
    %217 = arith.divf %215, %216 : vector<16x32xf32>
    %c2_160 = arith.constant 2 : index
    %c0_161 = arith.constant 0 : index
    %c0_162 = arith.constant 0 : index
    %218 = vector.load %arg21[%c2_160, %c0_161, %c0_162] : memref<4x32x32xf32, #tpu.memory_space<vmem>>, vector<1x32x32xf32>
    %219 = vector.shape_cast %218 : vector<1x32x32xf32> to vector<32x32xf32>
    %cst_163 = arith.constant dense<0.000000e+00> : vector<16x32xf32>
    %220 = tpu.matmul %205, %219, %cst_163 {dimension_numbers = #tpu.dot_dimension_numbers<[1], [0], [0], [1], [0, 0, 1, 1], [], []>} : vector<16x32xf32>, vector<32x32xf32>, vector<16x32xf32> -> vector<16x32xf32>
    %c2_164 = arith.constant 2 : index
    %c0_165 = arith.constant 0 : index
    %c0_166 = arith.constant 0 : index
    %221 = vector.load %arg22[%c2_164, %c0_165, %c0_166] : memref<4x1x32xf32, #tpu.memory_space<vmem>>, vector<1x1x32xf32>
    %222 = vector.shape_cast %221 : vector<1x1x32xf32> to vector<1x32xf32>
    %223 = vector.broadcast %222 : vector<1x32xf32> to vector<16x32xf32>
    %224 = arith.addf %220, %223 : vector<16x32xf32>
    %225 = arith.mulf %217, %224 : vector<16x32xf32>
    %226 = arith.addf %225, %183 : vector<16x32xf32>
    %cst_167 = arith.constant 0.999994993 : f32
    %227 = vector.broadcast %cst_167 : f32 to vector<16x32xf32>
    %228 = arith.mulf %226, %227 : vector<16x32xf32>
    %229 = vector.extract_strided_slice %58 {offsets = [0, 2], sizes = [16, 1], strides = [1, 1]} : vector<16x4xf32> to vector<16x1xf32>
    %230 = vector.broadcast %229 : vector<16x1xf32> to vector<16x32xf32>
    %231 = arith.mulf %228, %230 : vector<16x32xf32>
    %232 = arith.addf %174, %231 : vector<16x32xf32>
    %c3 = arith.constant 3 : index
    %c0_168 = arith.constant 0 : index
    %c0_169 = arith.constant 0 : index
    %233 = vector.load %arg1[%c3, %c0_168, %c0_169] : memref<4x16x8xf32, #tpu.memory_space<vmem>>, vector<1x16x8xf32>
    %234 = vector.shape_cast %233 : vector<1x16x8xf32> to vector<16x8xf32>
    %c3_170 = arith.constant 3 : index
    %c0_171 = arith.constant 0 : index
    %c0_172 = arith.constant 0 : index
    %235 = vector.load %arg23[%c3_170, %c0_171, %c0_172] : memref<4x8x32xf32, #tpu.memory_space<vmem>>, vector<1x8x32xf32>
    %236 = vector.shape_cast %235 : vector<1x8x32xf32> to vector<8x32xf32>
    %cst_173 = arith.constant dense<0.000000e+00> : vector<16x32xf32>
    %237 = tpu.matmul %234, %236, %cst_173 {dimension_numbers = #tpu.dot_dimension_numbers<[1], [0], [0], [1], [0, 0, 1, 1], [], []>} : vector<16x8xf32>, vector<8x32xf32>, vector<16x32xf32> -> vector<16x32xf32>
    %c3_174 = arith.constant 3 : index
    %c0_175 = arith.constant 0 : index
    %c0_176 = arith.constant 0 : index
    %238 = vector.load %arg24[%c3_174, %c0_175, %c0_176] : memref<4x1x32xf32, #tpu.memory_space<vmem>>, vector<1x1x32xf32>
    %239 = vector.shape_cast %238 : vector<1x1x32xf32> to vector<1x32xf32>
    %240 = vector.broadcast %239 : vector<1x32xf32> to vector<16x32xf32>
    %241 = arith.addf %237, %240 : vector<16x32xf32>
    %c3_177 = arith.constant 3 : index
    %c0_178 = arith.constant 0 : index
    %c0_179 = arith.constant 0 : index
    %242 = vector.load %arg15[%c3_177, %c0_178, %c0_179] : memref<4x8x32xf32, #tpu.memory_space<vmem>>, vector<1x8x32xf32>
    %243 = vector.shape_cast %242 : vector<1x8x32xf32> to vector<8x32xf32>
    %cst_180 = arith.constant dense<0.000000e+00> : vector<16x32xf32>
    %244 = tpu.matmul %234, %243, %cst_180 {dimension_numbers = #tpu.dot_dimension_numbers<[1], [0], [0], [1], [0, 0, 1, 1], [], []>} : vector<16x8xf32>, vector<8x32xf32>, vector<16x32xf32> -> vector<16x32xf32>
    %c3_181 = arith.constant 3 : index
    %c0_182 = arith.constant 0 : index
    %c0_183 = arith.constant 0 : index
    %245 = vector.load %arg16[%c3_181, %c0_182, %c0_183] : memref<4x1x32xf32, #tpu.memory_space<vmem>>, vector<1x1x32xf32>
    %246 = vector.shape_cast %245 : vector<1x1x32xf32> to vector<1x32xf32>
    %247 = vector.broadcast %246 : vector<1x32xf32> to vector<16x32xf32>
    %248 = arith.addf %244, %247 : vector<16x32xf32>
    %cst_184 = arith.constant 0.000000e+00 : f32
    %249 = vector.broadcast %cst_184 : f32 to vector<16x32xf32>
    %250 = arith.cmpf ogt, %248, %249 : vector<16x32xf32>
    %cst_185 = arith.constant 0.000000e+00 : f32
    %251 = vector.broadcast %cst_185 : f32 to vector<16x32xf32>
    %252 = arith.minimumf %248, %251 : vector<16x32xf32>
    %253 = math.exp %252 : vector<16x32xf32>
    %cst_186 = arith.constant 1.000000e+00 : f32
    %254 = vector.broadcast %cst_186 : f32 to vector<16x32xf32>
    %255 = arith.subf %253, %254 : vector<16x32xf32>
    %256 = arith.select %250, %248, %255 : vector<16x32xi1>, vector<16x32xf32>
    %c3_187 = arith.constant 3 : index
    %c0_188 = arith.constant 0 : index
    %c0_189 = arith.constant 0 : index
    %257 = vector.load %arg17[%c3_187, %c0_188, %c0_189] : memref<4x32x32xf32, #tpu.memory_space<vmem>>, vector<1x32x32xf32>
    %258 = vector.shape_cast %257 : vector<1x32x32xf32> to vector<32x32xf32>
    %cst_190 = arith.constant dense<0.000000e+00> : vector<16x32xf32>
    %259 = tpu.matmul %256, %258, %cst_190 {dimension_numbers = #tpu.dot_dimension_numbers<[1], [0], [0], [1], [0, 0, 1, 1], [], []>} : vector<16x32xf32>, vector<32x32xf32>, vector<16x32xf32> -> vector<16x32xf32>
    %c3_191 = arith.constant 3 : index
    %c0_192 = arith.constant 0 : index
    %c0_193 = arith.constant 0 : index
    %260 = vector.load %arg18[%c3_191, %c0_192, %c0_193] : memref<4x1x32xf32, #tpu.memory_space<vmem>>, vector<1x1x32xf32>
    %261 = vector.shape_cast %260 : vector<1x1x32xf32> to vector<1x32xf32>
    %262 = vector.broadcast %261 : vector<1x32xf32> to vector<16x32xf32>
    %263 = arith.addf %259, %262 : vector<16x32xf32>
    %c3_194 = arith.constant 3 : index
    %c0_195 = arith.constant 0 : index
    %c0_196 = arith.constant 0 : index
    %264 = vector.load %arg19[%c3_194, %c0_195, %c0_196] : memref<4x32x32xf32, #tpu.memory_space<vmem>>, vector<1x32x32xf32>
    %265 = vector.shape_cast %264 : vector<1x32x32xf32> to vector<32x32xf32>
    %cst_197 = arith.constant dense<0.000000e+00> : vector<16x32xf32>
    %266 = tpu.matmul %263, %265, %cst_197 {dimension_numbers = #tpu.dot_dimension_numbers<[1], [0], [0], [1], [0, 0, 1, 1], [], []>} : vector<16x32xf32>, vector<32x32xf32>, vector<16x32xf32> -> vector<16x32xf32>
    %c3_198 = arith.constant 3 : index
    %c0_199 = arith.constant 0 : index
    %c0_200 = arith.constant 0 : index
    %267 = vector.load %arg20[%c3_198, %c0_199, %c0_200] : memref<4x1x32xf32, #tpu.memory_space<vmem>>, vector<1x1x32xf32>
    %268 = vector.shape_cast %267 : vector<1x1x32xf32> to vector<1x32xf32>
    %269 = vector.broadcast %268 : vector<1x32xf32> to vector<16x32xf32>
    %270 = arith.addf %266, %269 : vector<16x32xf32>
    %271 = arith.negf %270 : vector<16x32xf32>
    %272 = math.exp %271 : vector<16x32xf32>
    %cst_201 = arith.constant 1.000000e+00 : f32
    %273 = vector.broadcast %cst_201 : f32 to vector<16x32xf32>
    %274 = arith.addf %273, %272 : vector<16x32xf32>
    %275 = arith.divf %273, %274 : vector<16x32xf32>
    %c3_202 = arith.constant 3 : index
    %c0_203 = arith.constant 0 : index
    %c0_204 = arith.constant 0 : index
    %276 = vector.load %arg21[%c3_202, %c0_203, %c0_204] : memref<4x32x32xf32, #tpu.memory_space<vmem>>, vector<1x32x32xf32>
    %277 = vector.shape_cast %276 : vector<1x32x32xf32> to vector<32x32xf32>
    %cst_205 = arith.constant dense<0.000000e+00> : vector<16x32xf32>
    %278 = tpu.matmul %263, %277, %cst_205 {dimension_numbers = #tpu.dot_dimension_numbers<[1], [0], [0], [1], [0, 0, 1, 1], [], []>} : vector<16x32xf32>, vector<32x32xf32>, vector<16x32xf32> -> vector<16x32xf32>
    %c3_206 = arith.constant 3 : index
    %c0_207 = arith.constant 0 : index
    %c0_208 = arith.constant 0 : index
    %279 = vector.load %arg22[%c3_206, %c0_207, %c0_208] : memref<4x1x32xf32, #tpu.memory_space<vmem>>, vector<1x1x32xf32>
    %280 = vector.shape_cast %279 : vector<1x1x32xf32> to vector<1x32xf32>
    %281 = vector.broadcast %280 : vector<1x32xf32> to vector<16x32xf32>
    %282 = arith.addf %278, %281 : vector<16x32xf32>
    %283 = arith.mulf %275, %282 : vector<16x32xf32>
    %284 = arith.addf %283, %241 : vector<16x32xf32>
    %cst_209 = arith.constant 0.999994993 : f32
    %285 = vector.broadcast %cst_209 : f32 to vector<16x32xf32>
    %286 = arith.mulf %284, %285 : vector<16x32xf32>
    %287 = vector.extract_strided_slice %58 {offsets = [0, 3], sizes = [16, 1], strides = [1, 1]} : vector<16x4xf32> to vector<16x1xf32>
    %288 = vector.broadcast %287 : vector<16x1xf32> to vector<16x32xf32>
    %289 = arith.mulf %286, %288 : vector<16x32xf32>
    %290 = arith.addf %232, %289 : vector<16x32xf32>
    %c0_210 = arith.constant 0 : index
    %c0_211 = arith.constant 0 : index
    %291 = vector.load %arg25[%c0_210, %c0_211] : memref<16x32xf32, #tpu.memory_space<vmem>>, vector<16x32xf32>
    tpu.vector_store %arg25[%c0_210, %c0_211], %290 {strides = array<i32>} : memref<16x32xf32, #tpu.memory_space<vmem>>, vector<16x32xf32>,
    return
  }
}

module attributes {stable_mosaic.version = 11 : i64} {
  func.func @kernel(%arg0: memref<8x24xf32, #tpu.memory_space<vmem>>, %arg1: memref<3x8x8xf32, #tpu.memory_space<vmem>>, %arg2: memref<8x16xf32, #tpu.memory_space<vmem>>, %arg3: memref<24x32xf32, #tpu.memory_space<vmem>>, %arg4: memref<1x32xf32, #tpu.memory_space<vmem>>, %arg5: memref<16x32xf32, #tpu.memory_space<vmem>>, %arg6: memref<1x32xf32, #tpu.memory_space<vmem>>, %arg7: memref<32x3xf32, #tpu.memory_space<vmem>>, %arg8: memref<1x3xf32, #tpu.memory_space<vmem>>, %arg9: memref<3x3xf32, #tpu.memory_space<vmem>>, %arg10: memref<1x3xf32, #tpu.memory_space<vmem>>, %arg11: memref<3x3xf32, #tpu.memory_space<vmem>>, %arg12: memref<1x3xf32, #tpu.memory_space<vmem>>, %arg13: memref<24x3xf32, #tpu.memory_space<vmem>>, %arg14: memref<1x3xf32, #tpu.memory_space<vmem>>, %arg15: memref<3x8x32xf32, #tpu.memory_space<vmem>>, %arg16: memref<3x1x32xf32, #tpu.memory_space<vmem>>, %arg17: memref<3x32x32xf32, #tpu.memory_space<vmem>>, %arg18: memref<3x1x32xf32, #tpu.memory_space<vmem>>, %arg19: memref<3x32x32xf32, #tpu.memory_space<vmem>>, %arg20: memref<3x1x32xf32, #tpu.memory_space<vmem>>, %arg21: memref<3x32x32xf32, #tpu.memory_space<vmem>>, %arg22: memref<3x1x32xf32, #tpu.memory_space<vmem>>, %arg23: memref<3x8x32xf32, #tpu.memory_space<vmem>>, %arg24: memref<3x1x32xf32, #tpu.memory_space<vmem>>, %arg25: memref<8x32xf32, #tpu.memory_space<vmem>>, %arg26: memref<8x3xf32, #tpu.memory_space<vmem>>) attributes {dimension_semantics = [], scalar_prefetch = 0 : i64, scratch_operands = 0 : i64, tpu.core_type = #tpu.core_type<tc>} {
    %c0 = arith.constant 0 : index
    %c0_0 = arith.constant 0 : index
    %0 = vector.load %arg0[%c0, %c0_0] : memref<8x24xf32, #tpu.memory_space<vmem>>, vector<8x24xf32>
    %c0_1 = arith.constant 0 : index
    %c0_2 = arith.constant 0 : index
    %1 = vector.load %arg2[%c0_1, %c0_2] : memref<8x16xf32, #tpu.memory_space<vmem>>, vector<8x16xf32>
    %c0_3 = arith.constant 0 : index
    %c0_4 = arith.constant 0 : index
    %2 = vector.load %arg13[%c0_3, %c0_4] : memref<24x3xf32, #tpu.memory_space<vmem>>, vector<24x3xf32>
    %cst = arith.constant dense<0.000000e+00> : vector<8x3xf32>
    %3 = tpu.matmul %0, %2, %cst {dimension_numbers = #tpu.dot_dimension_numbers<[1], [0], [0], [1], [0, 0, 1, 1], [], []>} : vector<8x24xf32>, vector<24x3xf32>, vector<8x3xf32> -> vector<8x3xf32>
    %c0_5 = arith.constant 0 : index
    %c0_6 = arith.constant 0 : index
    %4 = vector.load %arg14[%c0_5, %c0_6] : memref<1x3xf32, #tpu.memory_space<vmem>>, vector<1x3xf32>
    %5 = vector.broadcast %4 : vector<1x3xf32> to vector<8x3xf32>
    %6 = arith.addf %3, %5 : vector<8x3xf32>
    %c0_7 = arith.constant 0 : index
    %c0_8 = arith.constant 0 : index
    %7 = vector.load %arg3[%c0_7, %c0_8] : memref<24x32xf32, #tpu.memory_space<vmem>>, vector<24x32xf32>
    %cst_9 = arith.constant dense<0.000000e+00> : vector<8x32xf32>
    %8 = tpu.matmul %0, %7, %cst_9 {dimension_numbers = #tpu.dot_dimension_numbers<[1], [0], [0], [1], [0, 0, 1, 1], [], []>} : vector<8x24xf32>, vector<24x32xf32>, vector<8x32xf32> -> vector<8x32xf32>
    %c0_10 = arith.constant 0 : index
    %c0_11 = arith.constant 0 : index
    %9 = vector.load %arg4[%c0_10, %c0_11] : memref<1x32xf32, #tpu.memory_space<vmem>>, vector<1x32xf32>
    %10 = vector.broadcast %9 : vector<1x32xf32> to vector<8x32xf32>
    %11 = arith.addf %8, %10 : vector<8x32xf32>
    %c0_12 = arith.constant 0 : index
    %c0_13 = arith.constant 0 : index
    %12 = vector.load %arg5[%c0_12, %c0_13] : memref<16x32xf32, #tpu.memory_space<vmem>>, vector<16x32xf32>
    %cst_14 = arith.constant dense<0.000000e+00> : vector<8x32xf32>
    %13 = tpu.matmul %1, %12, %cst_14 {dimension_numbers = #tpu.dot_dimension_numbers<[1], [0], [0], [1], [0, 0, 1, 1], [], []>} : vector<8x16xf32>, vector<16x32xf32>, vector<8x32xf32> -> vector<8x32xf32>
    %14 = arith.addf %11, %13 : vector<8x32xf32>
    %c0_15 = arith.constant 0 : index
    %c0_16 = arith.constant 0 : index
    %15 = vector.load %arg6[%c0_15, %c0_16] : memref<1x32xf32, #tpu.memory_space<vmem>>, vector<1x32xf32>
    %16 = vector.broadcast %15 : vector<1x32xf32> to vector<8x32xf32>
    %17 = arith.addf %14, %16 : vector<8x32xf32>
    %cst_17 = arith.constant 0.000000e+00 : f32
    %18 = vector.broadcast %cst_17 : f32 to vector<8x32xf32>
    %19 = arith.cmpf ogt, %17, %18 : vector<8x32xf32>
    %cst_18 = arith.constant 0.000000e+00 : f32
    %20 = vector.broadcast %cst_18 : f32 to vector<8x32xf32>
    %21 = arith.minimumf %17, %20 : vector<8x32xf32>
    %22 = math.exp %21 : vector<8x32xf32>
    %cst_19 = arith.constant 1.000000e+00 : f32
    %23 = vector.broadcast %cst_19 : f32 to vector<8x32xf32>
    %24 = arith.subf %22, %23 : vector<8x32xf32>
    %25 = arith.select %19, %17, %24 : vector<8x32xi1>, vector<8x32xf32>
    %c0_20 = arith.constant 0 : index
    %c0_21 = arith.constant 0 : index
    %26 = vector.load %arg7[%c0_20, %c0_21] : memref<32x3xf32, #tpu.memory_space<vmem>>, vector<32x3xf32>
    %cst_22 = arith.constant dense<0.000000e+00> : vector<8x3xf32>
    %27 = tpu.matmul %25, %26, %cst_22 {dimension_numbers = #tpu.dot_dimension_numbers<[1], [0], [0], [1], [0, 0, 1, 1], [], []>} : vector<8x32xf32>, vector<32x3xf32>, vector<8x3xf32> -> vector<8x3xf32>
    %c0_23 = arith.constant 0 : index
    %c0_24 = arith.constant 0 : index
    %28 = vector.load %arg8[%c0_23, %c0_24] : memref<1x3xf32, #tpu.memory_space<vmem>>, vector<1x3xf32>
    %29 = vector.broadcast %28 : vector<1x3xf32> to vector<8x3xf32>
    %30 = arith.addf %27, %29 : vector<8x3xf32>
    %c0_25 = arith.constant 0 : index
    %c0_26 = arith.constant 0 : index
    %31 = vector.load %arg9[%c0_25, %c0_26] : memref<3x3xf32, #tpu.memory_space<vmem>>, vector<3x3xf32>
    %cst_27 = arith.constant dense<0.000000e+00> : vector<8x3xf32>
    %32 = tpu.matmul %30, %31, %cst_27 {dimension_numbers = #tpu.dot_dimension_numbers<[1], [0], [0], [1], [0, 0, 1, 1], [], []>} : vector<8x3xf32>, vector<3x3xf32>, vector<8x3xf32> -> vector<8x3xf32>
    %c0_28 = arith.constant 0 : index
    %c0_29 = arith.constant 0 : index
    %33 = vector.load %arg10[%c0_28, %c0_29] : memref<1x3xf32, #tpu.memory_space<vmem>>, vector<1x3xf32>
    %34 = vector.broadcast %33 : vector<1x3xf32> to vector<8x3xf32>
    %35 = arith.addf %32, %34 : vector<8x3xf32>
    %36 = arith.negf %35 : vector<8x3xf32>
    %37 = math.exp %36 : vector<8x3xf32>
    %cst_30 = arith.constant 1.000000e+00 : f32
    %38 = vector.broadcast %cst_30 : f32 to vector<8x3xf32>
    %39 = arith.addf %38, %37 : vector<8x3xf32>
    %40 = arith.divf %38, %39 : vector<8x3xf32>
    %c0_31 = arith.constant 0 : index
    %c0_32 = arith.constant 0 : index
    %41 = vector.load %arg11[%c0_31, %c0_32] : memref<3x3xf32, #tpu.memory_space<vmem>>, vector<3x3xf32>
    %cst_33 = arith.constant dense<0.000000e+00> : vector<8x3xf32>
    %42 = tpu.matmul %30, %41, %cst_33 {dimension_numbers = #tpu.dot_dimension_numbers<[1], [0], [0], [1], [0, 0, 1, 1], [], []>} : vector<8x3xf32>, vector<3x3xf32>, vector<8x3xf32> -> vector<8x3xf32>
    %c0_34 = arith.constant 0 : index
    %c0_35 = arith.constant 0 : index
    %43 = vector.load %arg12[%c0_34, %c0_35] : memref<1x3xf32, #tpu.memory_space<vmem>>, vector<1x3xf32>
    %44 = vector.broadcast %43 : vector<1x3xf32> to vector<8x3xf32>
    %45 = arith.addf %42, %44 : vector<8x3xf32>
    %46 = arith.mulf %40, %45 : vector<8x3xf32>
    %47 = arith.addf %46, %6 : vector<8x3xf32>
    %cst_36 = arith.constant 0.999994993 : f32
    %48 = vector.broadcast %cst_36 : f32 to vector<8x3xf32>
    %49 = arith.mulf %47, %48 : vector<8x3xf32>
    %cst_37 = arith.constant dense<0xFF800000> : vector<8xf32>
    %50 = vector.multi_reduction <maximumf>, %49, %cst_37 [1] : vector<8x3xf32> to vector<8xf32>
    %51 = vector.shape_cast %50 : vector<8xf32> to vector<8x1xf32>
    %52 = vector.broadcast %51 : vector<8x1xf32> to vector<8x3xf32>
    %53 = arith.subf %49, %52 : vector<8x3xf32>
    %54 = math.exp %53 : vector<8x3xf32>
    %cst_38 = arith.constant dense<0.000000e+00> : vector<8xf32>
    %55 = vector.multi_reduction <add>, %54, %cst_38 [1] : vector<8x3xf32> to vector<8xf32>
    %56 = vector.shape_cast %55 : vector<8xf32> to vector<8x1xf32>
    %57 = vector.broadcast %56 : vector<8x1xf32> to vector<8x3xf32>
    %58 = arith.divf %54, %57 : vector<8x3xf32>
    %c0_39 = arith.constant 0 : index
    %c0_40 = arith.constant 0 : index
    %59 = vector.load %arg26[%c0_39, %c0_40] : memref<8x3xf32, #tpu.memory_space<vmem>>, vector<8x3xf32>
    tpu.vector_store %arg26[%c0_39, %c0_40], %58 {strides = array<i32>} : memref<8x3xf32, #tpu.memory_space<vmem>>, vector<8x3xf32>,
    %c0_41 = arith.constant 0 : index
    %c0_42 = arith.constant 0 : index
    %c0_43 = arith.constant 0 : index
    %60 = vector.load %arg1[%c0_41, %c0_42, %c0_43] : memref<3x8x8xf32, #tpu.memory_space<vmem>>, vector<1x8x8xf32>
    %61 = vector.shape_cast %60 : vector<1x8x8xf32> to vector<8x8xf32>
    %c0_44 = arith.constant 0 : index
    %c0_45 = arith.constant 0 : index
    %c0_46 = arith.constant 0 : index
    %62 = vector.load %arg23[%c0_44, %c0_45, %c0_46] : memref<3x8x32xf32, #tpu.memory_space<vmem>>, vector<1x8x32xf32>
    %63 = vector.shape_cast %62 : vector<1x8x32xf32> to vector<8x32xf32>
    %cst_47 = arith.constant dense<0.000000e+00> : vector<8x32xf32>
    %64 = tpu.matmul %61, %63, %cst_47 {dimension_numbers = #tpu.dot_dimension_numbers<[1], [0], [0], [1], [0, 0, 1, 1], [], []>} : vector<8x8xf32>, vector<8x32xf32>, vector<8x32xf32> -> vector<8x32xf32>
    %c0_48 = arith.constant 0 : index
    %c0_49 = arith.constant 0 : index
    %c0_50 = arith.constant 0 : index
    %65 = vector.load %arg24[%c0_48, %c0_49, %c0_50] : memref<3x1x32xf32, #tpu.memory_space<vmem>>, vector<1x1x32xf32>
    %66 = vector.shape_cast %65 : vector<1x1x32xf32> to vector<1x32xf32>
    %67 = vector.broadcast %66 : vector<1x32xf32> to vector<8x32xf32>
    %68 = arith.addf %64, %67 : vector<8x32xf32>
    %c0_51 = arith.constant 0 : index
    %c0_52 = arith.constant 0 : index
    %c0_53 = arith.constant 0 : index
    %69 = vector.load %arg15[%c0_51, %c0_52, %c0_53] : memref<3x8x32xf32, #tpu.memory_space<vmem>>, vector<1x8x32xf32>
    %70 = vector.shape_cast %69 : vector<1x8x32xf32> to vector<8x32xf32>
    %cst_54 = arith.constant dense<0.000000e+00> : vector<8x32xf32>
    %71 = tpu.matmul %61, %70, %cst_54 {dimension_numbers = #tpu.dot_dimension_numbers<[1], [0], [0], [1], [0, 0, 1, 1], [], []>} : vector<8x8xf32>, vector<8x32xf32>, vector<8x32xf32> -> vector<8x32xf32>
    %c0_55 = arith.constant 0 : index
    %c0_56 = arith.constant 0 : index
    %c0_57 = arith.constant 0 : index
    %72 = vector.load %arg16[%c0_55, %c0_56, %c0_57] : memref<3x1x32xf32, #tpu.memory_space<vmem>>, vector<1x1x32xf32>
    %73 = vector.shape_cast %72 : vector<1x1x32xf32> to vector<1x32xf32>
    %74 = vector.broadcast %73 : vector<1x32xf32> to vector<8x32xf32>
    %75 = arith.addf %71, %74 : vector<8x32xf32>
    %cst_58 = arith.constant 0.000000e+00 : f32
    %76 = vector.broadcast %cst_58 : f32 to vector<8x32xf32>
    %77 = arith.cmpf ogt, %75, %76 : vector<8x32xf32>
    %cst_59 = arith.constant 0.000000e+00 : f32
    %78 = vector.broadcast %cst_59 : f32 to vector<8x32xf32>
    %79 = arith.minimumf %75, %78 : vector<8x32xf32>
    %80 = math.exp %79 : vector<8x32xf32>
    %cst_60 = arith.constant 1.000000e+00 : f32
    %81 = vector.broadcast %cst_60 : f32 to vector<8x32xf32>
    %82 = arith.subf %80, %81 : vector<8x32xf32>
    %83 = arith.select %77, %75, %82 : vector<8x32xi1>, vector<8x32xf32>
    %c0_61 = arith.constant 0 : index
    %c0_62 = arith.constant 0 : index
    %c0_63 = arith.constant 0 : index
    %84 = vector.load %arg17[%c0_61, %c0_62, %c0_63] : memref<3x32x32xf32, #tpu.memory_space<vmem>>, vector<1x32x32xf32>
    %85 = vector.shape_cast %84 : vector<1x32x32xf32> to vector<32x32xf32>
    %cst_64 = arith.constant dense<0.000000e+00> : vector<8x32xf32>
    %86 = tpu.matmul %83, %85, %cst_64 {dimension_numbers = #tpu.dot_dimension_numbers<[1], [0], [0], [1], [0, 0, 1, 1], [], []>} : vector<8x32xf32>, vector<32x32xf32>, vector<8x32xf32> -> vector<8x32xf32>
    %c0_65 = arith.constant 0 : index
    %c0_66 = arith.constant 0 : index
    %c0_67 = arith.constant 0 : index
    %87 = vector.load %arg18[%c0_65, %c0_66, %c0_67] : memref<3x1x32xf32, #tpu.memory_space<vmem>>, vector<1x1x32xf32>
    %88 = vector.shape_cast %87 : vector<1x1x32xf32> to vector<1x32xf32>
    %89 = vector.broadcast %88 : vector<1x32xf32> to vector<8x32xf32>
    %90 = arith.addf %86, %89 : vector<8x32xf32>
    %c0_68 = arith.constant 0 : index
    %c0_69 = arith.constant 0 : index
    %c0_70 = arith.constant 0 : index
    %91 = vector.load %arg19[%c0_68, %c0_69, %c0_70] : memref<3x32x32xf32, #tpu.memory_space<vmem>>, vector<1x32x32xf32>
    %92 = vector.shape_cast %91 : vector<1x32x32xf32> to vector<32x32xf32>
    %cst_71 = arith.constant dense<0.000000e+00> : vector<8x32xf32>
    %93 = tpu.matmul %90, %92, %cst_71 {dimension_numbers = #tpu.dot_dimension_numbers<[1], [0], [0], [1], [0, 0, 1, 1], [], []>} : vector<8x32xf32>, vector<32x32xf32>, vector<8x32xf32> -> vector<8x32xf32>
    %c0_72 = arith.constant 0 : index
    %c0_73 = arith.constant 0 : index
    %c0_74 = arith.constant 0 : index
    %94 = vector.load %arg20[%c0_72, %c0_73, %c0_74] : memref<3x1x32xf32, #tpu.memory_space<vmem>>, vector<1x1x32xf32>
    %95 = vector.shape_cast %94 : vector<1x1x32xf32> to vector<1x32xf32>
    %96 = vector.broadcast %95 : vector<1x32xf32> to vector<8x32xf32>
    %97 = arith.addf %93, %96 : vector<8x32xf32>
    %98 = arith.negf %97 : vector<8x32xf32>
    %99 = math.exp %98 : vector<8x32xf32>
    %cst_75 = arith.constant 1.000000e+00 : f32
    %100 = vector.broadcast %cst_75 : f32 to vector<8x32xf32>
    %101 = arith.addf %100, %99 : vector<8x32xf32>
    %102 = arith.divf %100, %101 : vector<8x32xf32>
    %c0_76 = arith.constant 0 : index
    %c0_77 = arith.constant 0 : index
    %c0_78 = arith.constant 0 : index
    %103 = vector.load %arg21[%c0_76, %c0_77, %c0_78] : memref<3x32x32xf32, #tpu.memory_space<vmem>>, vector<1x32x32xf32>
    %104 = vector.shape_cast %103 : vector<1x32x32xf32> to vector<32x32xf32>
    %cst_79 = arith.constant dense<0.000000e+00> : vector<8x32xf32>
    %105 = tpu.matmul %90, %104, %cst_79 {dimension_numbers = #tpu.dot_dimension_numbers<[1], [0], [0], [1], [0, 0, 1, 1], [], []>} : vector<8x32xf32>, vector<32x32xf32>, vector<8x32xf32> -> vector<8x32xf32>
    %c0_80 = arith.constant 0 : index
    %c0_81 = arith.constant 0 : index
    %c0_82 = arith.constant 0 : index
    %106 = vector.load %arg22[%c0_80, %c0_81, %c0_82] : memref<3x1x32xf32, #tpu.memory_space<vmem>>, vector<1x1x32xf32>
    %107 = vector.shape_cast %106 : vector<1x1x32xf32> to vector<1x32xf32>
    %108 = vector.broadcast %107 : vector<1x32xf32> to vector<8x32xf32>
    %109 = arith.addf %105, %108 : vector<8x32xf32>
    %110 = arith.mulf %102, %109 : vector<8x32xf32>
    %111 = arith.addf %110, %68 : vector<8x32xf32>
    %cst_83 = arith.constant 0.999994993 : f32
    %112 = vector.broadcast %cst_83 : f32 to vector<8x32xf32>
    %113 = arith.mulf %111, %112 : vector<8x32xf32>
    %114 = vector.extract_strided_slice %58 {offsets = [0, 0], sizes = [8, 1], strides = [1, 1]} : vector<8x3xf32> to vector<8x1xf32>
    %115 = vector.broadcast %114 : vector<8x1xf32> to vector<8x32xf32>
    %116 = arith.mulf %113, %115 : vector<8x32xf32>
    %c1 = arith.constant 1 : index
    %c0_84 = arith.constant 0 : index
    %c0_85 = arith.constant 0 : index
    %117 = vector.load %arg1[%c1, %c0_84, %c0_85] : memref<3x8x8xf32, #tpu.memory_space<vmem>>, vector<1x8x8xf32>
    %118 = vector.shape_cast %117 : vector<1x8x8xf32> to vector<8x8xf32>
    %c1_86 = arith.constant 1 : index
    %c0_87 = arith.constant 0 : index
    %c0_88 = arith.constant 0 : index
    %119 = vector.load %arg23[%c1_86, %c0_87, %c0_88] : memref<3x8x32xf32, #tpu.memory_space<vmem>>, vector<1x8x32xf32>
    %120 = vector.shape_cast %119 : vector<1x8x32xf32> to vector<8x32xf32>
    %cst_89 = arith.constant dense<0.000000e+00> : vector<8x32xf32>
    %121 = tpu.matmul %118, %120, %cst_89 {dimension_numbers = #tpu.dot_dimension_numbers<[1], [0], [0], [1], [0, 0, 1, 1], [], []>} : vector<8x8xf32>, vector<8x32xf32>, vector<8x32xf32> -> vector<8x32xf32>
    %c1_90 = arith.constant 1 : index
    %c0_91 = arith.constant 0 : index
    %c0_92 = arith.constant 0 : index
    %122 = vector.load %arg24[%c1_90, %c0_91, %c0_92] : memref<3x1x32xf32, #tpu.memory_space<vmem>>, vector<1x1x32xf32>
    %123 = vector.shape_cast %122 : vector<1x1x32xf32> to vector<1x32xf32>
    %124 = vector.broadcast %123 : vector<1x32xf32> to vector<8x32xf32>
    %125 = arith.addf %121, %124 : vector<8x32xf32>
    %c1_93 = arith.constant 1 : index
    %c0_94 = arith.constant 0 : index
    %c0_95 = arith.constant 0 : index
    %126 = vector.load %arg15[%c1_93, %c0_94, %c0_95] : memref<3x8x32xf32, #tpu.memory_space<vmem>>, vector<1x8x32xf32>
    %127 = vector.shape_cast %126 : vector<1x8x32xf32> to vector<8x32xf32>
    %cst_96 = arith.constant dense<0.000000e+00> : vector<8x32xf32>
    %128 = tpu.matmul %118, %127, %cst_96 {dimension_numbers = #tpu.dot_dimension_numbers<[1], [0], [0], [1], [0, 0, 1, 1], [], []>} : vector<8x8xf32>, vector<8x32xf32>, vector<8x32xf32> -> vector<8x32xf32>
    %c1_97 = arith.constant 1 : index
    %c0_98 = arith.constant 0 : index
    %c0_99 = arith.constant 0 : index
    %129 = vector.load %arg16[%c1_97, %c0_98, %c0_99] : memref<3x1x32xf32, #tpu.memory_space<vmem>>, vector<1x1x32xf32>
    %130 = vector.shape_cast %129 : vector<1x1x32xf32> to vector<1x32xf32>
    %131 = vector.broadcast %130 : vector<1x32xf32> to vector<8x32xf32>
    %132 = arith.addf %128, %131 : vector<8x32xf32>
    %cst_100 = arith.constant 0.000000e+00 : f32
    %133 = vector.broadcast %cst_100 : f32 to vector<8x32xf32>
    %134 = arith.cmpf ogt, %132, %133 : vector<8x32xf32>
    %cst_101 = arith.constant 0.000000e+00 : f32
    %135 = vector.broadcast %cst_101 : f32 to vector<8x32xf32>
    %136 = arith.minimumf %132, %135 : vector<8x32xf32>
    %137 = math.exp %136 : vector<8x32xf32>
    %cst_102 = arith.constant 1.000000e+00 : f32
    %138 = vector.broadcast %cst_102 : f32 to vector<8x32xf32>
    %139 = arith.subf %137, %138 : vector<8x32xf32>
    %140 = arith.select %134, %132, %139 : vector<8x32xi1>, vector<8x32xf32>
    %c1_103 = arith.constant 1 : index
    %c0_104 = arith.constant 0 : index
    %c0_105 = arith.constant 0 : index
    %141 = vector.load %arg17[%c1_103, %c0_104, %c0_105] : memref<3x32x32xf32, #tpu.memory_space<vmem>>, vector<1x32x32xf32>
    %142 = vector.shape_cast %141 : vector<1x32x32xf32> to vector<32x32xf32>
    %cst_106 = arith.constant dense<0.000000e+00> : vector<8x32xf32>
    %143 = tpu.matmul %140, %142, %cst_106 {dimension_numbers = #tpu.dot_dimension_numbers<[1], [0], [0], [1], [0, 0, 1, 1], [], []>} : vector<8x32xf32>, vector<32x32xf32>, vector<8x32xf32> -> vector<8x32xf32>
    %c1_107 = arith.constant 1 : index
    %c0_108 = arith.constant 0 : index
    %c0_109 = arith.constant 0 : index
    %144 = vector.load %arg18[%c1_107, %c0_108, %c0_109] : memref<3x1x32xf32, #tpu.memory_space<vmem>>, vector<1x1x32xf32>
    %145 = vector.shape_cast %144 : vector<1x1x32xf32> to vector<1x32xf32>
    %146 = vector.broadcast %145 : vector<1x32xf32> to vector<8x32xf32>
    %147 = arith.addf %143, %146 : vector<8x32xf32>
    %c1_110 = arith.constant 1 : index
    %c0_111 = arith.constant 0 : index
    %c0_112 = arith.constant 0 : index
    %148 = vector.load %arg19[%c1_110, %c0_111, %c0_112] : memref<3x32x32xf32, #tpu.memory_space<vmem>>, vector<1x32x32xf32>
    %149 = vector.shape_cast %148 : vector<1x32x32xf32> to vector<32x32xf32>
    %cst_113 = arith.constant dense<0.000000e+00> : vector<8x32xf32>
    %150 = tpu.matmul %147, %149, %cst_113 {dimension_numbers = #tpu.dot_dimension_numbers<[1], [0], [0], [1], [0, 0, 1, 1], [], []>} : vector<8x32xf32>, vector<32x32xf32>, vector<8x32xf32> -> vector<8x32xf32>
    %c1_114 = arith.constant 1 : index
    %c0_115 = arith.constant 0 : index
    %c0_116 = arith.constant 0 : index
    %151 = vector.load %arg20[%c1_114, %c0_115, %c0_116] : memref<3x1x32xf32, #tpu.memory_space<vmem>>, vector<1x1x32xf32>
    %152 = vector.shape_cast %151 : vector<1x1x32xf32> to vector<1x32xf32>
    %153 = vector.broadcast %152 : vector<1x32xf32> to vector<8x32xf32>
    %154 = arith.addf %150, %153 : vector<8x32xf32>
    %155 = arith.negf %154 : vector<8x32xf32>
    %156 = math.exp %155 : vector<8x32xf32>
    %cst_117 = arith.constant 1.000000e+00 : f32
    %157 = vector.broadcast %cst_117 : f32 to vector<8x32xf32>
    %158 = arith.addf %157, %156 : vector<8x32xf32>
    %159 = arith.divf %157, %158 : vector<8x32xf32>
    %c1_118 = arith.constant 1 : index
    %c0_119 = arith.constant 0 : index
    %c0_120 = arith.constant 0 : index
    %160 = vector.load %arg21[%c1_118, %c0_119, %c0_120] : memref<3x32x32xf32, #tpu.memory_space<vmem>>, vector<1x32x32xf32>
    %161 = vector.shape_cast %160 : vector<1x32x32xf32> to vector<32x32xf32>
    %cst_121 = arith.constant dense<0.000000e+00> : vector<8x32xf32>
    %162 = tpu.matmul %147, %161, %cst_121 {dimension_numbers = #tpu.dot_dimension_numbers<[1], [0], [0], [1], [0, 0, 1, 1], [], []>} : vector<8x32xf32>, vector<32x32xf32>, vector<8x32xf32> -> vector<8x32xf32>
    %c1_122 = arith.constant 1 : index
    %c0_123 = arith.constant 0 : index
    %c0_124 = arith.constant 0 : index
    %163 = vector.load %arg22[%c1_122, %c0_123, %c0_124] : memref<3x1x32xf32, #tpu.memory_space<vmem>>, vector<1x1x32xf32>
    %164 = vector.shape_cast %163 : vector<1x1x32xf32> to vector<1x32xf32>
    %165 = vector.broadcast %164 : vector<1x32xf32> to vector<8x32xf32>
    %166 = arith.addf %162, %165 : vector<8x32xf32>
    %167 = arith.mulf %159, %166 : vector<8x32xf32>
    %168 = arith.addf %167, %125 : vector<8x32xf32>
    %cst_125 = arith.constant 0.999994993 : f32
    %169 = vector.broadcast %cst_125 : f32 to vector<8x32xf32>
    %170 = arith.mulf %168, %169 : vector<8x32xf32>
    %171 = vector.extract_strided_slice %58 {offsets = [0, 1], sizes = [8, 1], strides = [1, 1]} : vector<8x3xf32> to vector<8x1xf32>
    %172 = vector.broadcast %171 : vector<8x1xf32> to vector<8x32xf32>
    %173 = arith.mulf %170, %172 : vector<8x32xf32>
    %174 = arith.addf %116, %173 : vector<8x32xf32>
    %c2 = arith.constant 2 : index
    %c0_126 = arith.constant 0 : index
    %c0_127 = arith.constant 0 : index
    %175 = vector.load %arg1[%c2, %c0_126, %c0_127] : memref<3x8x8xf32, #tpu.memory_space<vmem>>, vector<1x8x8xf32>
    %176 = vector.shape_cast %175 : vector<1x8x8xf32> to vector<8x8xf32>
    %c2_128 = arith.constant 2 : index
    %c0_129 = arith.constant 0 : index
    %c0_130 = arith.constant 0 : index
    %177 = vector.load %arg23[%c2_128, %c0_129, %c0_130] : memref<3x8x32xf32, #tpu.memory_space<vmem>>, vector<1x8x32xf32>
    %178 = vector.shape_cast %177 : vector<1x8x32xf32> to vector<8x32xf32>
    %cst_131 = arith.constant dense<0.000000e+00> : vector<8x32xf32>
    %179 = tpu.matmul %176, %178, %cst_131 {dimension_numbers = #tpu.dot_dimension_numbers<[1], [0], [0], [1], [0, 0, 1, 1], [], []>} : vector<8x8xf32>, vector<8x32xf32>, vector<8x32xf32> -> vector<8x32xf32>
    %c2_132 = arith.constant 2 : index
    %c0_133 = arith.constant 0 : index
    %c0_134 = arith.constant 0 : index
    %180 = vector.load %arg24[%c2_132, %c0_133, %c0_134] : memref<3x1x32xf32, #tpu.memory_space<vmem>>, vector<1x1x32xf32>
    %181 = vector.shape_cast %180 : vector<1x1x32xf32> to vector<1x32xf32>
    %182 = vector.broadcast %181 : vector<1x32xf32> to vector<8x32xf32>
    %183 = arith.addf %179, %182 : vector<8x32xf32>
    %c2_135 = arith.constant 2 : index
    %c0_136 = arith.constant 0 : index
    %c0_137 = arith.constant 0 : index
    %184 = vector.load %arg15[%c2_135, %c0_136, %c0_137] : memref<3x8x32xf32, #tpu.memory_space<vmem>>, vector<1x8x32xf32>
    %185 = vector.shape_cast %184 : vector<1x8x32xf32> to vector<8x32xf32>
    %cst_138 = arith.constant dense<0.000000e+00> : vector<8x32xf32>
    %186 = tpu.matmul %176, %185, %cst_138 {dimension_numbers = #tpu.dot_dimension_numbers<[1], [0], [0], [1], [0, 0, 1, 1], [], []>} : vector<8x8xf32>, vector<8x32xf32>, vector<8x32xf32> -> vector<8x32xf32>
    %c2_139 = arith.constant 2 : index
    %c0_140 = arith.constant 0 : index
    %c0_141 = arith.constant 0 : index
    %187 = vector.load %arg16[%c2_139, %c0_140, %c0_141] : memref<3x1x32xf32, #tpu.memory_space<vmem>>, vector<1x1x32xf32>
    %188 = vector.shape_cast %187 : vector<1x1x32xf32> to vector<1x32xf32>
    %189 = vector.broadcast %188 : vector<1x32xf32> to vector<8x32xf32>
    %190 = arith.addf %186, %189 : vector<8x32xf32>
    %cst_142 = arith.constant 0.000000e+00 : f32
    %191 = vector.broadcast %cst_142 : f32 to vector<8x32xf32>
    %192 = arith.cmpf ogt, %190, %191 : vector<8x32xf32>
    %cst_143 = arith.constant 0.000000e+00 : f32
    %193 = vector.broadcast %cst_143 : f32 to vector<8x32xf32>
    %194 = arith.minimumf %190, %193 : vector<8x32xf32>
    %195 = math.exp %194 : vector<8x32xf32>
    %cst_144 = arith.constant 1.000000e+00 : f32
    %196 = vector.broadcast %cst_144 : f32 to vector<8x32xf32>
    %197 = arith.subf %195, %196 : vector<8x32xf32>
    %198 = arith.select %192, %190, %197 : vector<8x32xi1>, vector<8x32xf32>
    %c2_145 = arith.constant 2 : index
    %c0_146 = arith.constant 0 : index
    %c0_147 = arith.constant 0 : index
    %199 = vector.load %arg17[%c2_145, %c0_146, %c0_147] : memref<3x32x32xf32, #tpu.memory_space<vmem>>, vector<1x32x32xf32>
    %200 = vector.shape_cast %199 : vector<1x32x32xf32> to vector<32x32xf32>
    %cst_148 = arith.constant dense<0.000000e+00> : vector<8x32xf32>
    %201 = tpu.matmul %198, %200, %cst_148 {dimension_numbers = #tpu.dot_dimension_numbers<[1], [0], [0], [1], [0, 0, 1, 1], [], []>} : vector<8x32xf32>, vector<32x32xf32>, vector<8x32xf32> -> vector<8x32xf32>
    %c2_149 = arith.constant 2 : index
    %c0_150 = arith.constant 0 : index
    %c0_151 = arith.constant 0 : index
    %202 = vector.load %arg18[%c2_149, %c0_150, %c0_151] : memref<3x1x32xf32, #tpu.memory_space<vmem>>, vector<1x1x32xf32>
    %203 = vector.shape_cast %202 : vector<1x1x32xf32> to vector<1x32xf32>
    %204 = vector.broadcast %203 : vector<1x32xf32> to vector<8x32xf32>
    %205 = arith.addf %201, %204 : vector<8x32xf32>
    %c2_152 = arith.constant 2 : index
    %c0_153 = arith.constant 0 : index
    %c0_154 = arith.constant 0 : index
    %206 = vector.load %arg19[%c2_152, %c0_153, %c0_154] : memref<3x32x32xf32, #tpu.memory_space<vmem>>, vector<1x32x32xf32>
    %207 = vector.shape_cast %206 : vector<1x32x32xf32> to vector<32x32xf32>
    %cst_155 = arith.constant dense<0.000000e+00> : vector<8x32xf32>
    %208 = tpu.matmul %205, %207, %cst_155 {dimension_numbers = #tpu.dot_dimension_numbers<[1], [0], [0], [1], [0, 0, 1, 1], [], []>} : vector<8x32xf32>, vector<32x32xf32>, vector<8x32xf32> -> vector<8x32xf32>
    %c2_156 = arith.constant 2 : index
    %c0_157 = arith.constant 0 : index
    %c0_158 = arith.constant 0 : index
    %209 = vector.load %arg20[%c2_156, %c0_157, %c0_158] : memref<3x1x32xf32, #tpu.memory_space<vmem>>, vector<1x1x32xf32>
    %210 = vector.shape_cast %209 : vector<1x1x32xf32> to vector<1x32xf32>
    %211 = vector.broadcast %210 : vector<1x32xf32> to vector<8x32xf32>
    %212 = arith.addf %208, %211 : vector<8x32xf32>
    %213 = arith.negf %212 : vector<8x32xf32>
    %214 = math.exp %213 : vector<8x32xf32>
    %cst_159 = arith.constant 1.000000e+00 : f32
    %215 = vector.broadcast %cst_159 : f32 to vector<8x32xf32>
    %216 = arith.addf %215, %214 : vector<8x32xf32>
    %217 = arith.divf %215, %216 : vector<8x32xf32>
    %c2_160 = arith.constant 2 : index
    %c0_161 = arith.constant 0 : index
    %c0_162 = arith.constant 0 : index
    %218 = vector.load %arg21[%c2_160, %c0_161, %c0_162] : memref<3x32x32xf32, #tpu.memory_space<vmem>>, vector<1x32x32xf32>
    %219 = vector.shape_cast %218 : vector<1x32x32xf32> to vector<32x32xf32>
    %cst_163 = arith.constant dense<0.000000e+00> : vector<8x32xf32>
    %220 = tpu.matmul %205, %219, %cst_163 {dimension_numbers = #tpu.dot_dimension_numbers<[1], [0], [0], [1], [0, 0, 1, 1], [], []>} : vector<8x32xf32>, vector<32x32xf32>, vector<8x32xf32> -> vector<8x32xf32>
    %c2_164 = arith.constant 2 : index
    %c0_165 = arith.constant 0 : index
    %c0_166 = arith.constant 0 : index
    %221 = vector.load %arg22[%c2_164, %c0_165, %c0_166] : memref<3x1x32xf32, #tpu.memory_space<vmem>>, vector<1x1x32xf32>
    %222 = vector.shape_cast %221 : vector<1x1x32xf32> to vector<1x32xf32>
    %223 = vector.broadcast %222 : vector<1x32xf32> to vector<8x32xf32>
    %224 = arith.addf %220, %223 : vector<8x32xf32>
    %225 = arith.mulf %217, %224 : vector<8x32xf32>
    %226 = arith.addf %225, %183 : vector<8x32xf32>
    %cst_167 = arith.constant 0.999994993 : f32
    %227 = vector.broadcast %cst_167 : f32 to vector<8x32xf32>
    %228 = arith.mulf %226, %227 : vector<8x32xf32>
    %229 = vector.extract_strided_slice %58 {offsets = [0, 2], sizes = [8, 1], strides = [1, 1]} : vector<8x3xf32> to vector<8x1xf32>
    %230 = vector.broadcast %229 : vector<8x1xf32> to vector<8x32xf32>
    %231 = arith.mulf %228, %230 : vector<8x32xf32>
    %232 = arith.addf %174, %231 : vector<8x32xf32>
    %c0_168 = arith.constant 0 : index
    %c0_169 = arith.constant 0 : index
    %233 = vector.load %arg25[%c0_168, %c0_169] : memref<8x32xf32, #tpu.memory_space<vmem>>, vector<8x32xf32>
    tpu.vector_store %arg25[%c0_168, %c0_169], %232 {strides = array<i32>} : memref<8x32xf32, #tpu.memory_space<vmem>>, vector<8x32xf32>,
    return
  }
}

module attributes {stable_mosaic.version = 11 : i64} {
  func.func @kernel(%arg0: memref<8x2x128xf32, #tpu.memory_space<vmem>>, %arg1: memref<4x2x128xf32, #tpu.memory_space<vmem>>, %arg2: memref<2x32x128xf32, #tpu.memory_space<vmem>>, %arg3: memref<2x32x128xf32, #tpu.memory_space<vmem>>, %arg4: memref<2x1x128xf32, #tpu.memory_space<vmem>>, %arg5: memref<2x32x128xf32, #tpu.memory_space<vmem>>, %arg6: memref<2x32x128xf32, #tpu.memory_space<vmem>>, %arg7: memref<2x1x128xf32, #tpu.memory_space<vmem>>, %arg8: memref<8x2x32xf32, #tpu.memory_space<vmem>>, %arg9: memref<4x2x32xf32, #tpu.memory_space<vmem>>, %arg10: memref<2x2x32xf32, #tpu.memory_space<vmem>>, %arg11: memref<2x2x32xf32, #tpu.memory_space<vmem>>) attributes {dimension_semantics = [], scalar_prefetch = 0 : i64, scratch_operands = 2 : i64, tpu.core_type = #tpu.core_type<tc>} {
    %cst = arith.constant 0.000000e+00 : f32
    %0 = vector.broadcast %cst : f32 to vector<2x2x32xf32>
    %c0 = arith.constant 0 : index
    %c0_0 = arith.constant 0 : index
    %c0_1 = arith.constant 0 : index
    %1 = vector.load %arg10[%c0, %c0_0, %c0_1] : memref<2x2x32xf32, #tpu.memory_space<vmem>>, vector<2x2x32xf32>
    tpu.vector_store %arg10[%c0, %c0_0, %c0_1], %0 {strides = array<i32>} : memref<2x2x32xf32, #tpu.memory_space<vmem>>, vector<2x2x32xf32>,
    %cst_2 = arith.constant 0.000000e+00 : f32
    %2 = vector.broadcast %cst_2 : f32 to vector<2x2x32xf32>
    %c0_3 = arith.constant 0 : index
    %c0_4 = arith.constant 0 : index
    %c0_5 = arith.constant 0 : index
    %3 = vector.load %arg11[%c0_3, %c0_4, %c0_5] : memref<2x2x32xf32, #tpu.memory_space<vmem>>, vector<2x2x32xf32>
    tpu.vector_store %arg11[%c0_3, %c0_4, %c0_5], %2 {strides = array<i32>} : memref<2x2x32xf32, #tpu.memory_space<vmem>>, vector<2x2x32xf32>,
    %c0_i32 = arith.constant 0 : i32
    %c8_i32 = arith.constant 8 : i32
    %4 = arith.addi %c0_i32, %c8_i32 : i32
    %c1_i32 = arith.constant 1 : i32
    scf.for %arg12 = %c0_i32 to %4 step %c1_i32  : i32 {
      %c0_16 = arith.constant 0 : index
      %c0_17 = arith.constant 0 : index
      %c0_18 = arith.constant 0 : index
      %8 = vector.load %arg10[%c0_16, %c0_17, %c0_18] : memref<2x2x32xf32, #tpu.memory_space<vmem>>, vector<1x2x32xf32>
      %9 = vector.shape_cast %8 : vector<1x2x32xf32> to vector<2x32xf32>
      %c0_19 = arith.constant 0 : index
      %c0_20 = arith.constant 0 : index
      %c0_21 = arith.constant 0 : index
      %10 = vector.load %arg11[%c0_19, %c0_20, %c0_21] : memref<2x2x32xf32, #tpu.memory_space<vmem>>, vector<1x2x32xf32>
      %11 = vector.shape_cast %10 : vector<1x2x32xf32> to vector<2x32xf32>
      %12 = arith.index_cast %arg12 : i32 to index
      %c0_22 = arith.constant 0 : index
      %c0_23 = arith.constant 0 : index
      %13 = vector.load %arg0[%12, %c0_22, %c0_23] : memref<8x2x128xf32, #tpu.memory_space<vmem>>, vector<1x2x128xf32>
      %14 = vector.shape_cast %13 : vector<1x2x128xf32> to vector<2x128xf32>
      %c0_24 = arith.constant 0 : index
      %c0_25 = arith.constant 0 : index
      %c0_26 = arith.constant 0 : index
      %15 = vector.load %arg3[%c0_24, %c0_25, %c0_26] : memref<2x32x128xf32, #tpu.memory_space<vmem>>, vector<1x32x128xf32>
      %16 = vector.shape_cast %15 : vector<1x32x128xf32> to vector<32x128xf32>
      %cst_27 = arith.constant dense<0.000000e+00> : vector<2x128xf32>
      %17 = tpu.matmul %9, %16, %cst_27 {dimension_numbers = #tpu.dot_dimension_numbers<[1], [0], [0], [1], [0, 0, 1, 1], [], []>} : vector<2x32xf32>, vector<32x128xf32>, vector<2x128xf32> -> vector<2x128xf32>
      %18 = arith.addf %14, %17 : vector<2x128xf32>
      %19 = vector.extract_strided_slice %18 {offsets = [0, 0], sizes = [2, 32], strides = [1, 1]} : vector<2x128xf32> to vector<2x32xf32>
      %20 = arith.negf %19 : vector<2x32xf32>
      %21 = math.exp %20 : vector<2x32xf32>
      %cst_28 = arith.constant 1.000000e+00 : f32
      %22 = vector.broadcast %cst_28 : f32 to vector<2x32xf32>
      %23 = arith.addf %22, %21 : vector<2x32xf32>
      %24 = arith.divf %22, %23 : vector<2x32xf32>
      %25 = vector.extract_strided_slice %18 {offsets = [0, 32], sizes = [2, 32], strides = [1, 1]} : vector<2x128xf32> to vector<2x32xf32>
      %26 = arith.negf %25 : vector<2x32xf32>
      %27 = math.exp %26 : vector<2x32xf32>
      %cst_29 = arith.constant 1.000000e+00 : f32
      %28 = vector.broadcast %cst_29 : f32 to vector<2x32xf32>
      %29 = arith.addf %28, %27 : vector<2x32xf32>
      %30 = arith.divf %28, %29 : vector<2x32xf32>
      %31 = vector.extract_strided_slice %18 {offsets = [0, 64], sizes = [2, 32], strides = [1, 1]} : vector<2x128xf32> to vector<2x32xf32>
      %32 = math.tanh %31 : vector<2x32xf32>
      %33 = vector.extract_strided_slice %18 {offsets = [0, 96], sizes = [2, 32], strides = [1, 1]} : vector<2x128xf32> to vector<2x32xf32>
      %34 = arith.negf %33 : vector<2x32xf32>
      %35 = math.exp %34 : vector<2x32xf32>
      %cst_30 = arith.constant 1.000000e+00 : f32
      %36 = vector.broadcast %cst_30 : f32 to vector<2x32xf32>
      %37 = arith.addf %36, %35 : vector<2x32xf32>
      %38 = arith.divf %36, %37 : vector<2x32xf32>
      %39 = arith.mulf %30, %11 : vector<2x32xf32>
      %40 = arith.mulf %24, %32 : vector<2x32xf32>
      %41 = arith.addf %39, %40 : vector<2x32xf32>
      %42 = math.tanh %41 : vector<2x32xf32>
      %43 = arith.mulf %38, %42 : vector<2x32xf32>
      %c0_31 = arith.constant 0 : index
      %c0_32 = arith.constant 0 : index
      %c0_33 = arith.constant 0 : index
      %44 = vector.load %arg10[%c0_31, %c0_32, %c0_33] : memref<2x2x32xf32, #tpu.memory_space<vmem>>, vector<1x2x32xf32>
      %45 = vector.shape_cast %44 : vector<1x2x32xf32> to vector<2x32xf32>
      %46 = vector.shape_cast %43 : vector<2x32xf32> to vector<1x2x32xf32>
      tpu.vector_store %arg10[%c0_31, %c0_32, %c0_33], %46 {strides = array<i32>} : memref<2x2x32xf32, #tpu.memory_space<vmem>>, vector<1x2x32xf32>,
      %c0_34 = arith.constant 0 : index
      %c0_35 = arith.constant 0 : index
      %c0_36 = arith.constant 0 : index
      %47 = vector.load %arg11[%c0_34, %c0_35, %c0_36] : memref<2x2x32xf32, #tpu.memory_space<vmem>>, vector<1x2x32xf32>
      %48 = vector.shape_cast %47 : vector<1x2x32xf32> to vector<2x32xf32>
      %49 = vector.shape_cast %41 : vector<2x32xf32> to vector<1x2x32xf32>
      tpu.vector_store %arg11[%c0_34, %c0_35, %c0_36], %49 {strides = array<i32>} : memref<2x2x32xf32, #tpu.memory_space<vmem>>, vector<1x2x32xf32>,
      %c1 = arith.constant 1 : index
      %c0_37 = arith.constant 0 : index
      %c0_38 = arith.constant 0 : index
      %50 = vector.load %arg10[%c1, %c0_37, %c0_38] : memref<2x2x32xf32, #tpu.memory_space<vmem>>, vector<1x2x32xf32>
      %51 = vector.shape_cast %50 : vector<1x2x32xf32> to vector<2x32xf32>
      %c1_39 = arith.constant 1 : index
      %c0_40 = arith.constant 0 : index
      %c0_41 = arith.constant 0 : index
      %52 = vector.load %arg11[%c1_39, %c0_40, %c0_41] : memref<2x2x32xf32, #tpu.memory_space<vmem>>, vector<1x2x32xf32>
      %53 = vector.shape_cast %52 : vector<1x2x32xf32> to vector<2x32xf32>
      %c1_42 = arith.constant 1 : index
      %c0_43 = arith.constant 0 : index
      %c0_44 = arith.constant 0 : index
      %54 = vector.load %arg2[%c1_42, %c0_43, %c0_44] : memref<2x32x128xf32, #tpu.memory_space<vmem>>, vector<1x32x128xf32>
      %55 = vector.shape_cast %54 : vector<1x32x128xf32> to vector<32x128xf32>
      %cst_45 = arith.constant dense<0.000000e+00> : vector<2x128xf32>
      %56 = tpu.matmul %43, %55, %cst_45 {dimension_numbers = #tpu.dot_dimension_numbers<[1], [0], [0], [1], [0, 0, 1, 1], [], []>} : vector<2x32xf32>, vector<32x128xf32>, vector<2x128xf32> -> vector<2x128xf32>
      %c1_46 = arith.constant 1 : index
      %c0_47 = arith.constant 0 : index
      %c0_48 = arith.constant 0 : index
      %57 = vector.load %arg3[%c1_46, %c0_47, %c0_48] : memref<2x32x128xf32, #tpu.memory_space<vmem>>, vector<1x32x128xf32>
      %58 = vector.shape_cast %57 : vector<1x32x128xf32> to vector<32x128xf32>
      %cst_49 = arith.constant dense<0.000000e+00> : vector<2x128xf32>
      %59 = tpu.matmul %51, %58, %cst_49 {dimension_numbers = #tpu.dot_dimension_numbers<[1], [0], [0], [1], [0, 0, 1, 1], [], []>} : vector<2x32xf32>, vector<32x128xf32>, vector<2x128xf32> -> vector<2x128xf32>
      %60 = arith.addf %56, %59 : vector<2x128xf32>
      %c1_50 = arith.constant 1 : index
      %c0_51 = arith.constant 0 : index
      %c0_52 = arith.constant 0 : index
      %61 = vector.load %arg4[%c1_50, %c0_51, %c0_52] : memref<2x1x128xf32, #tpu.memory_space<vmem>>, vector<1x1x128xf32>
      %62 = vector.shape_cast %61 : vector<1x1x128xf32> to vector<1x128xf32>
      %63 = vector.broadcast %62 : vector<1x128xf32> to vector<2x128xf32>
      %64 = arith.addf %60, %63 : vector<2x128xf32>
      %65 = vector.extract_strided_slice %64 {offsets = [0, 0], sizes = [2, 32], strides = [1, 1]} : vector<2x128xf32> to vector<2x32xf32>
      %66 = arith.negf %65 : vector<2x32xf32>
      %67 = math.exp %66 : vector<2x32xf32>
      %cst_53 = arith.constant 1.000000e+00 : f32
      %68 = vector.broadcast %cst_53 : f32 to vector<2x32xf32>
      %69 = arith.addf %68, %67 : vector<2x32xf32>
      %70 = arith.divf %68, %69 : vector<2x32xf32>
      %71 = vector.extract_strided_slice %64 {offsets = [0, 32], sizes = [2, 32], strides = [1, 1]} : vector<2x128xf32> to vector<2x32xf32>
      %72 = arith.negf %71 : vector<2x32xf32>
      %73 = math.exp %72 : vector<2x32xf32>
      %cst_54 = arith.constant 1.000000e+00 : f32
      %74 = vector.broadcast %cst_54 : f32 to vector<2x32xf32>
      %75 = arith.addf %74, %73 : vector<2x32xf32>
      %76 = arith.divf %74, %75 : vector<2x32xf32>
      %77 = vector.extract_strided_slice %64 {offsets = [0, 64], sizes = [2, 32], strides = [1, 1]} : vector<2x128xf32> to vector<2x32xf32>
      %78 = math.tanh %77 : vector<2x32xf32>
      %79 = vector.extract_strided_slice %64 {offsets = [0, 96], sizes = [2, 32], strides = [1, 1]} : vector<2x128xf32> to vector<2x32xf32>
      %80 = arith.negf %79 : vector<2x32xf32>
      %81 = math.exp %80 : vector<2x32xf32>
      %cst_55 = arith.constant 1.000000e+00 : f32
      %82 = vector.broadcast %cst_55 : f32 to vector<2x32xf32>
      %83 = arith.addf %82, %81 : vector<2x32xf32>
      %84 = arith.divf %82, %83 : vector<2x32xf32>
      %85 = arith.mulf %76, %53 : vector<2x32xf32>
      %86 = arith.mulf %70, %78 : vector<2x32xf32>
      %87 = arith.addf %85, %86 : vector<2x32xf32>
      %88 = math.tanh %87 : vector<2x32xf32>
      %89 = arith.mulf %84, %88 : vector<2x32xf32>
      %c1_56 = arith.constant 1 : index
      %c0_57 = arith.constant 0 : index
      %c0_58 = arith.constant 0 : index
      %90 = vector.load %arg10[%c1_56, %c0_57, %c0_58] : memref<2x2x32xf32, #tpu.memory_space<vmem>>, vector<1x2x32xf32>
      %91 = vector.shape_cast %90 : vector<1x2x32xf32> to vector<2x32xf32>
      %92 = vector.shape_cast %89 : vector<2x32xf32> to vector<1x2x32xf32>
      tpu.vector_store %arg10[%c1_56, %c0_57, %c0_58], %92 {strides = array<i32>} : memref<2x2x32xf32, #tpu.memory_space<vmem>>, vector<1x2x32xf32>,
      %c1_59 = arith.constant 1 : index
      %c0_60 = arith.constant 0 : index
      %c0_61 = arith.constant 0 : index
      %93 = vector.load %arg11[%c1_59, %c0_60, %c0_61] : memref<2x2x32xf32, #tpu.memory_space<vmem>>, vector<1x2x32xf32>
      %94 = vector.shape_cast %93 : vector<1x2x32xf32> to vector<2x32xf32>
      %95 = vector.shape_cast %87 : vector<2x32xf32> to vector<1x2x32xf32>
      tpu.vector_store %arg11[%c1_59, %c0_60, %c0_61], %95 {strides = array<i32>} : memref<2x2x32xf32, #tpu.memory_space<vmem>>, vector<1x2x32xf32>,
      %96 = vector.shape_cast %89 : vector<2x32xf32> to vector<1x2x32xf32>
      %97 = arith.index_cast %arg12 : i32 to index
      %c0_62 = arith.constant 0 : index
      %c0_63 = arith.constant 0 : index
      %98 = vector.load %arg8[%97, %c0_62, %c0_63] : memref<8x2x32xf32, #tpu.memory_space<vmem>>, vector<1x2x32xf32>
      tpu.vector_store %arg8[%97, %c0_62, %c0_63], %96 {strides = array<i32>} : memref<8x2x32xf32, #tpu.memory_space<vmem>>, vector<1x2x32xf32>,
    }
    %c8_i32_6 = arith.constant 8 : i32
    %c0_7 = arith.constant 0 : index
    %c0_8 = arith.constant 0 : index
    %c0_9 = arith.constant 0 : index
    %5 = vector.load %arg10[%c0_7, %c0_8, %c0_9] : memref<2x2x32xf32, #tpu.memory_space<vmem>>, vector<2x2x32xf32>
    %c0_10 = arith.constant 0 : index
    %c0_11 = arith.constant 0 : index
    %c0_12 = arith.constant 0 : index
    %6 = vector.load %arg11[%c0_10, %c0_11, %c0_12] : memref<2x2x32xf32, #tpu.memory_space<vmem>>, vector<2x2x32xf32>
    tpu.vector_store %arg11[%c0_10, %c0_11, %c0_12], %5 {strides = array<i32>} : memref<2x2x32xf32, #tpu.memory_space<vmem>>, vector<2x2x32xf32>,
    %c0_i32_13 = arith.constant 0 : i32
    %c4_i32 = arith.constant 4 : i32
    %7 = arith.addi %c0_i32_13, %c4_i32 : i32
    %c1_i32_14 = arith.constant 1 : i32
    scf.for %arg12 = %c0_i32_13 to %7 step %c1_i32_14  : i32 {
      %c0_16 = arith.constant 0 : index
      %c0_17 = arith.constant 0 : index
      %c0_18 = arith.constant 0 : index
      %8 = vector.load %arg10[%c0_16, %c0_17, %c0_18] : memref<2x2x32xf32, #tpu.memory_space<vmem>>, vector<1x2x32xf32>
      %9 = vector.shape_cast %8 : vector<1x2x32xf32> to vector<2x32xf32>
      %c0_19 = arith.constant 0 : index
      %c0_20 = arith.constant 0 : index
      %c0_21 = arith.constant 0 : index
      %10 = vector.load %arg11[%c0_19, %c0_20, %c0_21] : memref<2x2x32xf32, #tpu.memory_space<vmem>>, vector<1x2x32xf32>
      %11 = vector.shape_cast %10 : vector<1x2x32xf32> to vector<2x32xf32>
      %12 = arith.index_cast %arg12 : i32 to index
      %c0_22 = arith.constant 0 : index
      %c0_23 = arith.constant 0 : index
      %13 = vector.load %arg1[%12, %c0_22, %c0_23] : memref<4x2x128xf32, #tpu.memory_space<vmem>>, vector<1x2x128xf32>
      %14 = vector.shape_cast %13 : vector<1x2x128xf32> to vector<2x128xf32>
      %c0_24 = arith.constant 0 : index
      %c0_25 = arith.constant 0 : index
      %c0_26 = arith.constant 0 : index
      %15 = vector.load %arg6[%c0_24, %c0_25, %c0_26] : memref<2x32x128xf32, #tpu.memory_space<vmem>>, vector<1x32x128xf32>
      %16 = vector.shape_cast %15 : vector<1x32x128xf32> to vector<32x128xf32>
      %cst_27 = arith.constant dense<0.000000e+00> : vector<2x128xf32>
      %17 = tpu.matmul %9, %16, %cst_27 {dimension_numbers = #tpu.dot_dimension_numbers<[1], [0], [0], [1], [0, 0, 1, 1], [], []>} : vector<2x32xf32>, vector<32x128xf32>, vector<2x128xf32> -> vector<2x128xf32>
      %18 = arith.addf %14, %17 : vector<2x128xf32>
      %19 = vector.extract_strided_slice %18 {offsets = [0, 0], sizes = [2, 32], strides = [1, 1]} : vector<2x128xf32> to vector<2x32xf32>
      %20 = arith.negf %19 : vector<2x32xf32>
      %21 = math.exp %20 : vector<2x32xf32>
      %cst_28 = arith.constant 1.000000e+00 : f32
      %22 = vector.broadcast %cst_28 : f32 to vector<2x32xf32>
      %23 = arith.addf %22, %21 : vector<2x32xf32>
      %24 = arith.divf %22, %23 : vector<2x32xf32>
      %25 = vector.extract_strided_slice %18 {offsets = [0, 32], sizes = [2, 32], strides = [1, 1]} : vector<2x128xf32> to vector<2x32xf32>
      %26 = arith.negf %25 : vector<2x32xf32>
      %27 = math.exp %26 : vector<2x32xf32>
      %cst_29 = arith.constant 1.000000e+00 : f32
      %28 = vector.broadcast %cst_29 : f32 to vector<2x32xf32>
      %29 = arith.addf %28, %27 : vector<2x32xf32>
      %30 = arith.divf %28, %29 : vector<2x32xf32>
      %31 = vector.extract_strided_slice %18 {offsets = [0, 64], sizes = [2, 32], strides = [1, 1]} : vector<2x128xf32> to vector<2x32xf32>
      %32 = math.tanh %31 : vector<2x32xf32>
      %33 = vector.extract_strided_slice %18 {offsets = [0, 96], sizes = [2, 32], strides = [1, 1]} : vector<2x128xf32> to vector<2x32xf32>
      %34 = arith.negf %33 : vector<2x32xf32>
      %35 = math.exp %34 : vector<2x32xf32>
      %cst_30 = arith.constant 1.000000e+00 : f32
      %36 = vector.broadcast %cst_30 : f32 to vector<2x32xf32>
      %37 = arith.addf %36, %35 : vector<2x32xf32>
      %38 = arith.divf %36, %37 : vector<2x32xf32>
      %39 = arith.mulf %30, %11 : vector<2x32xf32>
      %40 = arith.mulf %24, %32 : vector<2x32xf32>
      %41 = arith.addf %39, %40 : vector<2x32xf32>
      %42 = math.tanh %41 : vector<2x32xf32>
      %43 = arith.mulf %38, %42 : vector<2x32xf32>
      %c0_31 = arith.constant 0 : index
      %c0_32 = arith.constant 0 : index
      %c0_33 = arith.constant 0 : index
      %44 = vector.load %arg10[%c0_31, %c0_32, %c0_33] : memref<2x2x32xf32, #tpu.memory_space<vmem>>, vector<1x2x32xf32>
      %45 = vector.shape_cast %44 : vector<1x2x32xf32> to vector<2x32xf32>
      %46 = vector.shape_cast %43 : vector<2x32xf32> to vector<1x2x32xf32>
      tpu.vector_store %arg10[%c0_31, %c0_32, %c0_33], %46 {strides = array<i32>} : memref<2x2x32xf32, #tpu.memory_space<vmem>>, vector<1x2x32xf32>,
      %c0_34 = arith.constant 0 : index
      %c0_35 = arith.constant 0 : index
      %c0_36 = arith.constant 0 : index
      %47 = vector.load %arg11[%c0_34, %c0_35, %c0_36] : memref<2x2x32xf32, #tpu.memory_space<vmem>>, vector<1x2x32xf32>
      %48 = vector.shape_cast %47 : vector<1x2x32xf32> to vector<2x32xf32>
      %49 = vector.shape_cast %41 : vector<2x32xf32> to vector<1x2x32xf32>
      tpu.vector_store %arg11[%c0_34, %c0_35, %c0_36], %49 {strides = array<i32>} : memref<2x2x32xf32, #tpu.memory_space<vmem>>, vector<1x2x32xf32>,
      %c1 = arith.constant 1 : index
      %c0_37 = arith.constant 0 : index
      %c0_38 = arith.constant 0 : index
      %50 = vector.load %arg10[%c1, %c0_37, %c0_38] : memref<2x2x32xf32, #tpu.memory_space<vmem>>, vector<1x2x32xf32>
      %51 = vector.shape_cast %50 : vector<1x2x32xf32> to vector<2x32xf32>
      %c1_39 = arith.constant 1 : index
      %c0_40 = arith.constant 0 : index
      %c0_41 = arith.constant 0 : index
      %52 = vector.load %arg11[%c1_39, %c0_40, %c0_41] : memref<2x2x32xf32, #tpu.memory_space<vmem>>, vector<1x2x32xf32>
      %53 = vector.shape_cast %52 : vector<1x2x32xf32> to vector<2x32xf32>
      %c1_42 = arith.constant 1 : index
      %c0_43 = arith.constant 0 : index
      %c0_44 = arith.constant 0 : index
      %54 = vector.load %arg5[%c1_42, %c0_43, %c0_44] : memref<2x32x128xf32, #tpu.memory_space<vmem>>, vector<1x32x128xf32>
      %55 = vector.shape_cast %54 : vector<1x32x128xf32> to vector<32x128xf32>
      %cst_45 = arith.constant dense<0.000000e+00> : vector<2x128xf32>
      %56 = tpu.matmul %43, %55, %cst_45 {dimension_numbers = #tpu.dot_dimension_numbers<[1], [0], [0], [1], [0, 0, 1, 1], [], []>} : vector<2x32xf32>, vector<32x128xf32>, vector<2x128xf32> -> vector<2x128xf32>
      %c1_46 = arith.constant 1 : index
      %c0_47 = arith.constant 0 : index
      %c0_48 = arith.constant 0 : index
      %57 = vector.load %arg6[%c1_46, %c0_47, %c0_48] : memref<2x32x128xf32, #tpu.memory_space<vmem>>, vector<1x32x128xf32>
      %58 = vector.shape_cast %57 : vector<1x32x128xf32> to vector<32x128xf32>
      %cst_49 = arith.constant dense<0.000000e+00> : vector<2x128xf32>
      %59 = tpu.matmul %51, %58, %cst_49 {dimension_numbers = #tpu.dot_dimension_numbers<[1], [0], [0], [1], [0, 0, 1, 1], [], []>} : vector<2x32xf32>, vector<32x128xf32>, vector<2x128xf32> -> vector<2x128xf32>
      %60 = arith.addf %56, %59 : vector<2x128xf32>
      %c1_50 = arith.constant 1 : index
      %c0_51 = arith.constant 0 : index
      %c0_52 = arith.constant 0 : index
      %61 = vector.load %arg7[%c1_50, %c0_51, %c0_52] : memref<2x1x128xf32, #tpu.memory_space<vmem>>, vector<1x1x128xf32>
      %62 = vector.shape_cast %61 : vector<1x1x128xf32> to vector<1x128xf32>
      %63 = vector.broadcast %62 : vector<1x128xf32> to vector<2x128xf32>
      %64 = arith.addf %60, %63 : vector<2x128xf32>
      %65 = vector.extract_strided_slice %64 {offsets = [0, 0], sizes = [2, 32], strides = [1, 1]} : vector<2x128xf32> to vector<2x32xf32>
      %66 = arith.negf %65 : vector<2x32xf32>
      %67 = math.exp %66 : vector<2x32xf32>
      %cst_53 = arith.constant 1.000000e+00 : f32
      %68 = vector.broadcast %cst_53 : f32 to vector<2x32xf32>
      %69 = arith.addf %68, %67 : vector<2x32xf32>
      %70 = arith.divf %68, %69 : vector<2x32xf32>
      %71 = vector.extract_strided_slice %64 {offsets = [0, 32], sizes = [2, 32], strides = [1, 1]} : vector<2x128xf32> to vector<2x32xf32>
      %72 = arith.negf %71 : vector<2x32xf32>
      %73 = math.exp %72 : vector<2x32xf32>
      %cst_54 = arith.constant 1.000000e+00 : f32
      %74 = vector.broadcast %cst_54 : f32 to vector<2x32xf32>
      %75 = arith.addf %74, %73 : vector<2x32xf32>
      %76 = arith.divf %74, %75 : vector<2x32xf32>
      %77 = vector.extract_strided_slice %64 {offsets = [0, 64], sizes = [2, 32], strides = [1, 1]} : vector<2x128xf32> to vector<2x32xf32>
      %78 = math.tanh %77 : vector<2x32xf32>
      %79 = vector.extract_strided_slice %64 {offsets = [0, 96], sizes = [2, 32], strides = [1, 1]} : vector<2x128xf32> to vector<2x32xf32>
      %80 = arith.negf %79 : vector<2x32xf32>
      %81 = math.exp %80 : vector<2x32xf32>
      %cst_55 = arith.constant 1.000000e+00 : f32
      %82 = vector.broadcast %cst_55 : f32 to vector<2x32xf32>
      %83 = arith.addf %82, %81 : vector<2x32xf32>
      %84 = arith.divf %82, %83 : vector<2x32xf32>
      %85 = arith.mulf %76, %53 : vector<2x32xf32>
      %86 = arith.mulf %70, %78 : vector<2x32xf32>
      %87 = arith.addf %85, %86 : vector<2x32xf32>
      %88 = math.tanh %87 : vector<2x32xf32>
      %89 = arith.mulf %84, %88 : vector<2x32xf32>
      %c1_56 = arith.constant 1 : index
      %c0_57 = arith.constant 0 : index
      %c0_58 = arith.constant 0 : index
      %90 = vector.load %arg10[%c1_56, %c0_57, %c0_58] : memref<2x2x32xf32, #tpu.memory_space<vmem>>, vector<1x2x32xf32>
      %91 = vector.shape_cast %90 : vector<1x2x32xf32> to vector<2x32xf32>
      %92 = vector.shape_cast %89 : vector<2x32xf32> to vector<1x2x32xf32>
      tpu.vector_store %arg10[%c1_56, %c0_57, %c0_58], %92 {strides = array<i32>} : memref<2x2x32xf32, #tpu.memory_space<vmem>>, vector<1x2x32xf32>,
      %c1_59 = arith.constant 1 : index
      %c0_60 = arith.constant 0 : index
      %c0_61 = arith.constant 0 : index
      %93 = vector.load %arg11[%c1_59, %c0_60, %c0_61] : memref<2x2x32xf32, #tpu.memory_space<vmem>>, vector<1x2x32xf32>
      %94 = vector.shape_cast %93 : vector<1x2x32xf32> to vector<2x32xf32>
      %95 = vector.shape_cast %87 : vector<2x32xf32> to vector<1x2x32xf32>
      tpu.vector_store %arg11[%c1_59, %c0_60, %c0_61], %95 {strides = array<i32>} : memref<2x2x32xf32, #tpu.memory_space<vmem>>, vector<1x2x32xf32>,
      %96 = vector.shape_cast %89 : vector<2x32xf32> to vector<1x2x32xf32>
      %97 = arith.index_cast %arg12 : i32 to index
      %c0_62 = arith.constant 0 : index
      %c0_63 = arith.constant 0 : index
      %98 = vector.load %arg9[%97, %c0_62, %c0_63] : memref<4x2x32xf32, #tpu.memory_space<vmem>>, vector<1x2x32xf32>
      tpu.vector_store %arg9[%97, %c0_62, %c0_63], %96 {strides = array<i32>} : memref<4x2x32xf32, #tpu.memory_space<vmem>>, vector<1x2x32xf32>,
    }
    %c4_i32_15 = arith.constant 4 : i32
    return
  }
}

module attributes {stable_mosaic.version = 11 : i64} {
  func.func @_post_lstm_kernel(%arg0: memref<24x32xf32, #tpu.memory_space<vmem>>, %arg1: memref<24x32xf32, #tpu.memory_space<vmem>>, %arg2: memref<32x32xf32, #tpu.memory_space<vmem>>, %arg3: memref<1x32xf32, #tpu.memory_space<vmem>>, %arg4: memref<32x32xf32, #tpu.memory_space<vmem>>, %arg5: memref<1x32xf32, #tpu.memory_space<vmem>>, %arg6: memref<32x96xf32, #tpu.memory_space<vmem>>, %arg7: memref<1x96xf32, #tpu.memory_space<vmem>>, %arg8: memref<24x32xf32, #tpu.memory_space<vmem>>, %arg9: memref<24x96xf32, #tpu.memory_space<vmem>>) attributes {dimension_semantics = [], scalar_prefetch = 0 : i64, scratch_operands = 0 : i64, tpu.core_type = #tpu.core_type<tc>} {
    %c0 = arith.constant 0 : index
    %c0_0 = arith.constant 0 : index
    %0 = vector.load %arg0[%c0, %c0_0] : memref<24x32xf32, #tpu.memory_space<vmem>>, vector<24x32xf32>
    %c0_1 = arith.constant 0 : index
    %c0_2 = arith.constant 0 : index
    %1 = vector.load %arg1[%c0_1, %c0_2] : memref<24x32xf32, #tpu.memory_space<vmem>>, vector<24x32xf32>
    %2 = arith.addf %0, %1 : vector<24x32xf32>
    %c0_3 = arith.constant 0 : index
    %c0_4 = arith.constant 0 : index
    %3 = vector.load %arg2[%c0_3, %c0_4] : memref<32x32xf32, #tpu.memory_space<vmem>>, vector<32x32xf32>
    %cst = arith.constant dense<0.000000e+00> : vector<24x32xf32>
    %4 = tpu.matmul %2, %3, %cst {dimension_numbers = #tpu.dot_dimension_numbers<[1], [0], [0], [1], [0, 0, 1, 1], [], []>} : vector<24x32xf32>, vector<32x32xf32>, vector<24x32xf32> -> vector<24x32xf32>
    %c0_5 = arith.constant 0 : index
    %c0_6 = arith.constant 0 : index
    %5 = vector.load %arg3[%c0_5, %c0_6] : memref<1x32xf32, #tpu.memory_space<vmem>>, vector<1x32xf32>
    %6 = vector.broadcast %5 : vector<1x32xf32> to vector<24x32xf32>
    %7 = arith.addf %4, %6 : vector<24x32xf32>
    %8 = arith.negf %7 : vector<24x32xf32>
    %9 = math.exp %8 : vector<24x32xf32>
    %cst_7 = arith.constant 1.000000e+00 : f32
    %10 = vector.broadcast %cst_7 : f32 to vector<24x32xf32>
    %11 = arith.addf %10, %9 : vector<24x32xf32>
    %12 = arith.divf %10, %11 : vector<24x32xf32>
    %c0_8 = arith.constant 0 : index
    %c0_9 = arith.constant 0 : index
    %13 = vector.load %arg4[%c0_8, %c0_9] : memref<32x32xf32, #tpu.memory_space<vmem>>, vector<32x32xf32>
    %cst_10 = arith.constant dense<0.000000e+00> : vector<24x32xf32>
    %14 = tpu.matmul %2, %13, %cst_10 {dimension_numbers = #tpu.dot_dimension_numbers<[1], [0], [0], [1], [0, 0, 1, 1], [], []>} : vector<24x32xf32>, vector<32x32xf32>, vector<24x32xf32> -> vector<24x32xf32>
    %c0_11 = arith.constant 0 : index
    %c0_12 = arith.constant 0 : index
    %15 = vector.load %arg5[%c0_11, %c0_12] : memref<1x32xf32, #tpu.memory_space<vmem>>, vector<1x32xf32>
    %16 = vector.broadcast %15 : vector<1x32xf32> to vector<24x32xf32>
    %17 = arith.addf %14, %16 : vector<24x32xf32>
    %18 = arith.mulf %12, %17 : vector<24x32xf32>
    %c0_13 = arith.constant 0 : index
    %c0_14 = arith.constant 0 : index
    %19 = vector.load %arg8[%c0_13, %c0_14] : memref<24x32xf32, #tpu.memory_space<vmem>>, vector<24x32xf32>
    tpu.vector_store %arg8[%c0_13, %c0_14], %18 {strides = array<i32>} : memref<24x32xf32, #tpu.memory_space<vmem>>, vector<24x32xf32>,
    %cst_15 = arith.constant 0.999994993 : f32
    %20 = vector.broadcast %cst_15 : f32 to vector<24x32xf32>
    %21 = arith.mulf %18, %20 : vector<24x32xf32>
    %c0_16 = arith.constant 0 : index
    %c0_17 = arith.constant 0 : index
    %22 = vector.load %arg6[%c0_16, %c0_17] : memref<32x96xf32, #tpu.memory_space<vmem>>, vector<32x96xf32>
    %cst_18 = arith.constant dense<0.000000e+00> : vector<24x96xf32>
    %23 = tpu.matmul %21, %22, %cst_18 {dimension_numbers = #tpu.dot_dimension_numbers<[1], [0], [0], [1], [0, 0, 1, 1], [], []>} : vector<24x32xf32>, vector<32x96xf32>, vector<24x96xf32> -> vector<24x96xf32>
    %c0_19 = arith.constant 0 : index
    %c0_20 = arith.constant 0 : index
    %24 = vector.load %arg7[%c0_19, %c0_20] : memref<1x96xf32, #tpu.memory_space<vmem>>, vector<1x96xf32>
    %25 = vector.broadcast %24 : vector<1x96xf32> to vector<24x96xf32>
    %26 = arith.addf %23, %25 : vector<24x96xf32>
    %c0_21 = arith.constant 0 : index
    %c0_22 = arith.constant 0 : index
    %27 = vector.load %arg9[%c0_21, %c0_22] : memref<24x96xf32, #tpu.memory_space<vmem>>, vector<24x96xf32>
    tpu.vector_store %arg9[%c0_21, %c0_22], %26 {strides = array<i32>} : memref<24x96xf32, #tpu.memory_space<vmem>>, vector<24x96xf32>,
    return
  }
}

module attributes {stable_mosaic.version = 11 : i64} {
  func.func @_post_attn_kernel(%arg0: memref<8x32xf32, #tpu.memory_space<vmem>>, %arg1: memref<8x32xf32, #tpu.memory_space<vmem>>, %arg2: memref<32x32xf32, #tpu.memory_space<vmem>>, %arg3: memref<1x32xf32, #tpu.memory_space<vmem>>, %arg4: memref<32x32xf32, #tpu.memory_space<vmem>>, %arg5: memref<1x32xf32, #tpu.memory_space<vmem>>, %arg6: memref<32x32xf32, #tpu.memory_space<vmem>>, %arg7: memref<1x32xf32, #tpu.memory_space<vmem>>, %arg8: memref<32x32xf32, #tpu.memory_space<vmem>>, %arg9: memref<1x32xf32, #tpu.memory_space<vmem>>, %arg10: memref<32x32xf32, #tpu.memory_space<vmem>>, %arg11: memref<1x32xf32, #tpu.memory_space<vmem>>, %arg12: memref<32x32xf32, #tpu.memory_space<vmem>>, %arg13: memref<1x32xf32, #tpu.memory_space<vmem>>, %arg14: memref<32x32xf32, #tpu.memory_space<vmem>>, %arg15: memref<1x32xf32, #tpu.memory_space<vmem>>, %arg16: memref<32x32xf32, #tpu.memory_space<vmem>>, %arg17: memref<1x32xf32, #tpu.memory_space<vmem>>, %arg18: memref<32x32xf32, #tpu.memory_space<vmem>>, %arg19: memref<1x32xf32, #tpu.memory_space<vmem>>, %arg20: memref<32x3xf32, #tpu.memory_space<vmem>>, %arg21: memref<1x3xf32, #tpu.memory_space<vmem>>, %arg22: memref<8x32xf32, #tpu.memory_space<vmem>>, %arg23: memref<8x3xf32, #tpu.memory_space<vmem>>) attributes {dimension_semantics = [], scalar_prefetch = 0 : i64, scratch_operands = 0 : i64, tpu.core_type = #tpu.core_type<tc>} {
    %c0 = arith.constant 0 : index
    %c0_0 = arith.constant 0 : index
    %0 = vector.load %arg0[%c0, %c0_0] : memref<8x32xf32, #tpu.memory_space<vmem>>, vector<8x32xf32>
    %c0_1 = arith.constant 0 : index
    %c0_2 = arith.constant 0 : index
    %1 = vector.load %arg1[%c0_1, %c0_2] : memref<8x32xf32, #tpu.memory_space<vmem>>, vector<8x32xf32>
    %cst = arith.constant 0.999994993 : f32
    %2 = vector.broadcast %cst : f32 to vector<8x32xf32>
    %3 = arith.mulf %1, %2 : vector<8x32xf32>
    %c0_3 = arith.constant 0 : index
    %c0_4 = arith.constant 0 : index
    %4 = vector.load %arg2[%c0_3, %c0_4] : memref<32x32xf32, #tpu.memory_space<vmem>>, vector<32x32xf32>
    %cst_5 = arith.constant dense<0.000000e+00> : vector<8x32xf32>
    %5 = tpu.matmul %0, %4, %cst_5 {dimension_numbers = #tpu.dot_dimension_numbers<[1], [0], [0], [1], [0, 0, 1, 1], [], []>} : vector<8x32xf32>, vector<32x32xf32>, vector<8x32xf32> -> vector<8x32xf32>
    %c0_6 = arith.constant 0 : index
    %c0_7 = arith.constant 0 : index
    %6 = vector.load %arg3[%c0_6, %c0_7] : memref<1x32xf32, #tpu.memory_space<vmem>>, vector<1x32xf32>
    %7 = vector.broadcast %6 : vector<1x32xf32> to vector<8x32xf32>
    %8 = arith.addf %5, %7 : vector<8x32xf32>
    %c0_8 = arith.constant 0 : index
    %c0_9 = arith.constant 0 : index
    %9 = vector.load %arg4[%c0_8, %c0_9] : memref<32x32xf32, #tpu.memory_space<vmem>>, vector<32x32xf32>
    %cst_10 = arith.constant dense<0.000000e+00> : vector<8x32xf32>
    %10 = tpu.matmul %8, %9, %cst_10 {dimension_numbers = #tpu.dot_dimension_numbers<[1], [0], [0], [1], [0, 0, 1, 1], [], []>} : vector<8x32xf32>, vector<32x32xf32>, vector<8x32xf32> -> vector<8x32xf32>
    %c0_11 = arith.constant 0 : index
    %c0_12 = arith.constant 0 : index
    %11 = vector.load %arg5[%c0_11, %c0_12] : memref<1x32xf32, #tpu.memory_space<vmem>>, vector<1x32xf32>
    %12 = vector.broadcast %11 : vector<1x32xf32> to vector<8x32xf32>
    %13 = arith.addf %10, %12 : vector<8x32xf32>
    %14 = arith.negf %13 : vector<8x32xf32>
    %15 = math.exp %14 : vector<8x32xf32>
    %cst_13 = arith.constant 1.000000e+00 : f32
    %16 = vector.broadcast %cst_13 : f32 to vector<8x32xf32>
    %17 = arith.addf %16, %15 : vector<8x32xf32>
    %18 = arith.divf %16, %17 : vector<8x32xf32>
    %c0_14 = arith.constant 0 : index
    %c0_15 = arith.constant 0 : index
    %19 = vector.load %arg6[%c0_14, %c0_15] : memref<32x32xf32, #tpu.memory_space<vmem>>, vector<32x32xf32>
    %cst_16 = arith.constant dense<0.000000e+00> : vector<8x32xf32>
    %20 = tpu.matmul %8, %19, %cst_16 {dimension_numbers = #tpu.dot_dimension_numbers<[1], [0], [0], [1], [0, 0, 1, 1], [], []>} : vector<8x32xf32>, vector<32x32xf32>, vector<8x32xf32> -> vector<8x32xf32>
    %c0_17 = arith.constant 0 : index
    %c0_18 = arith.constant 0 : index
    %21 = vector.load %arg7[%c0_17, %c0_18] : memref<1x32xf32, #tpu.memory_space<vmem>>, vector<1x32xf32>
    %22 = vector.broadcast %21 : vector<1x32xf32> to vector<8x32xf32>
    %23 = arith.addf %20, %22 : vector<8x32xf32>
    %24 = arith.mulf %18, %23 : vector<8x32xf32>
    %25 = arith.addf %24, %3 : vector<8x32xf32>
    %cst_19 = arith.constant 0.999994993 : f32
    %26 = vector.broadcast %cst_19 : f32 to vector<8x32xf32>
    %27 = arith.mulf %25, %26 : vector<8x32xf32>
    %c0_20 = arith.constant 0 : index
    %c0_21 = arith.constant 0 : index
    %28 = vector.load %arg22[%c0_20, %c0_21] : memref<8x32xf32, #tpu.memory_space<vmem>>, vector<8x32xf32>
    tpu.vector_store %arg22[%c0_20, %c0_21], %27 {strides = array<i32>} : memref<8x32xf32, #tpu.memory_space<vmem>>, vector<8x32xf32>,
    %c0_22 = arith.constant 0 : index
    %c0_23 = arith.constant 0 : index
    %29 = vector.load %arg8[%c0_22, %c0_23] : memref<32x32xf32, #tpu.memory_space<vmem>>, vector<32x32xf32>
    %cst_24 = arith.constant dense<0.000000e+00> : vector<8x32xf32>
    %30 = tpu.matmul %27, %29, %cst_24 {dimension_numbers = #tpu.dot_dimension_numbers<[1], [0], [0], [1], [0, 0, 1, 1], [], []>} : vector<8x32xf32>, vector<32x32xf32>, vector<8x32xf32> -> vector<8x32xf32>
    %c0_25 = arith.constant 0 : index
    %c0_26 = arith.constant 0 : index
    %31 = vector.load %arg9[%c0_25, %c0_26] : memref<1x32xf32, #tpu.memory_space<vmem>>, vector<1x32xf32>
    %32 = vector.broadcast %31 : vector<1x32xf32> to vector<8x32xf32>
    %33 = arith.addf %30, %32 : vector<8x32xf32>
    %cst_27 = arith.constant 0.000000e+00 : f32
    %34 = vector.broadcast %cst_27 : f32 to vector<8x32xf32>
    %35 = arith.cmpf ogt, %33, %34 : vector<8x32xf32>
    %cst_28 = arith.constant 0.000000e+00 : f32
    %36 = vector.broadcast %cst_28 : f32 to vector<8x32xf32>
    %37 = arith.minimumf %33, %36 : vector<8x32xf32>
    %38 = math.exp %37 : vector<8x32xf32>
    %cst_29 = arith.constant 1.000000e+00 : f32
    %39 = vector.broadcast %cst_29 : f32 to vector<8x32xf32>
    %40 = arith.subf %38, %39 : vector<8x32xf32>
    %41 = arith.select %35, %33, %40 : vector<8x32xi1>, vector<8x32xf32>
    %c0_30 = arith.constant 0 : index
    %c0_31 = arith.constant 0 : index
    %42 = vector.load %arg10[%c0_30, %c0_31] : memref<32x32xf32, #tpu.memory_space<vmem>>, vector<32x32xf32>
    %cst_32 = arith.constant dense<0.000000e+00> : vector<8x32xf32>
    %43 = tpu.matmul %41, %42, %cst_32 {dimension_numbers = #tpu.dot_dimension_numbers<[1], [0], [0], [1], [0, 0, 1, 1], [], []>} : vector<8x32xf32>, vector<32x32xf32>, vector<8x32xf32> -> vector<8x32xf32>
    %c0_33 = arith.constant 0 : index
    %c0_34 = arith.constant 0 : index
    %44 = vector.load %arg11[%c0_33, %c0_34] : memref<1x32xf32, #tpu.memory_space<vmem>>, vector<1x32xf32>
    %45 = vector.broadcast %44 : vector<1x32xf32> to vector<8x32xf32>
    %46 = arith.addf %43, %45 : vector<8x32xf32>
    %c0_35 = arith.constant 0 : index
    %c0_36 = arith.constant 0 : index
    %47 = vector.load %arg12[%c0_35, %c0_36] : memref<32x32xf32, #tpu.memory_space<vmem>>, vector<32x32xf32>
    %cst_37 = arith.constant dense<0.000000e+00> : vector<8x32xf32>
    %48 = tpu.matmul %46, %47, %cst_37 {dimension_numbers = #tpu.dot_dimension_numbers<[1], [0], [0], [1], [0, 0, 1, 1], [], []>} : vector<8x32xf32>, vector<32x32xf32>, vector<8x32xf32> -> vector<8x32xf32>
    %c0_38 = arith.constant 0 : index
    %c0_39 = arith.constant 0 : index
    %49 = vector.load %arg13[%c0_38, %c0_39] : memref<1x32xf32, #tpu.memory_space<vmem>>, vector<1x32xf32>
    %50 = vector.broadcast %49 : vector<1x32xf32> to vector<8x32xf32>
    %51 = arith.addf %48, %50 : vector<8x32xf32>
    %52 = arith.negf %51 : vector<8x32xf32>
    %53 = math.exp %52 : vector<8x32xf32>
    %cst_40 = arith.constant 1.000000e+00 : f32
    %54 = vector.broadcast %cst_40 : f32 to vector<8x32xf32>
    %55 = arith.addf %54, %53 : vector<8x32xf32>
    %56 = arith.divf %54, %55 : vector<8x32xf32>
    %c0_41 = arith.constant 0 : index
    %c0_42 = arith.constant 0 : index
    %57 = vector.load %arg14[%c0_41, %c0_42] : memref<32x32xf32, #tpu.memory_space<vmem>>, vector<32x32xf32>
    %cst_43 = arith.constant dense<0.000000e+00> : vector<8x32xf32>
    %58 = tpu.matmul %46, %57, %cst_43 {dimension_numbers = #tpu.dot_dimension_numbers<[1], [0], [0], [1], [0, 0, 1, 1], [], []>} : vector<8x32xf32>, vector<32x32xf32>, vector<8x32xf32> -> vector<8x32xf32>
    %c0_44 = arith.constant 0 : index
    %c0_45 = arith.constant 0 : index
    %59 = vector.load %arg15[%c0_44, %c0_45] : memref<1x32xf32, #tpu.memory_space<vmem>>, vector<1x32xf32>
    %60 = vector.broadcast %59 : vector<1x32xf32> to vector<8x32xf32>
    %61 = arith.addf %58, %60 : vector<8x32xf32>
    %62 = arith.mulf %56, %61 : vector<8x32xf32>
    %63 = arith.addf %62, %27 : vector<8x32xf32>
    %cst_46 = arith.constant 0.999994993 : f32
    %64 = vector.broadcast %cst_46 : f32 to vector<8x32xf32>
    %65 = arith.mulf %63, %64 : vector<8x32xf32>
    %c0_47 = arith.constant 0 : index
    %c0_48 = arith.constant 0 : index
    %66 = vector.load %arg16[%c0_47, %c0_48] : memref<32x32xf32, #tpu.memory_space<vmem>>, vector<32x32xf32>
    %cst_49 = arith.constant dense<0.000000e+00> : vector<8x32xf32>
    %67 = tpu.matmul %65, %66, %cst_49 {dimension_numbers = #tpu.dot_dimension_numbers<[1], [0], [0], [1], [0, 0, 1, 1], [], []>} : vector<8x32xf32>, vector<32x32xf32>, vector<8x32xf32> -> vector<8x32xf32>
    %c0_50 = arith.constant 0 : index
    %c0_51 = arith.constant 0 : index
    %68 = vector.load %arg17[%c0_50, %c0_51] : memref<1x32xf32, #tpu.memory_space<vmem>>, vector<1x32xf32>
    %69 = vector.broadcast %68 : vector<1x32xf32> to vector<8x32xf32>
    %70 = arith.addf %67, %69 : vector<8x32xf32>
    %71 = arith.negf %70 : vector<8x32xf32>
    %72 = math.exp %71 : vector<8x32xf32>
    %cst_52 = arith.constant 1.000000e+00 : f32
    %73 = vector.broadcast %cst_52 : f32 to vector<8x32xf32>
    %74 = arith.addf %73, %72 : vector<8x32xf32>
    %75 = arith.divf %73, %74 : vector<8x32xf32>
    %c0_53 = arith.constant 0 : index
    %c0_54 = arith.constant 0 : index
    %76 = vector.load %arg18[%c0_53, %c0_54] : memref<32x32xf32, #tpu.memory_space<vmem>>, vector<32x32xf32>
    %cst_55 = arith.constant dense<0.000000e+00> : vector<8x32xf32>
    %77 = tpu.matmul %65, %76, %cst_55 {dimension_numbers = #tpu.dot_dimension_numbers<[1], [0], [0], [1], [0, 0, 1, 1], [], []>} : vector<8x32xf32>, vector<32x32xf32>, vector<8x32xf32> -> vector<8x32xf32>
    %c0_56 = arith.constant 0 : index
    %c0_57 = arith.constant 0 : index
    %78 = vector.load %arg19[%c0_56, %c0_57] : memref<1x32xf32, #tpu.memory_space<vmem>>, vector<1x32xf32>
    %79 = vector.broadcast %78 : vector<1x32xf32> to vector<8x32xf32>
    %80 = arith.addf %77, %79 : vector<8x32xf32>
    %81 = arith.mulf %75, %80 : vector<8x32xf32>
    %82 = arith.addf %81, %1 : vector<8x32xf32>
    %cst_58 = arith.constant 0.999994993 : f32
    %83 = vector.broadcast %cst_58 : f32 to vector<8x32xf32>
    %84 = arith.mulf %82, %83 : vector<8x32xf32>
    %c0_59 = arith.constant 0 : index
    %c0_60 = arith.constant 0 : index
    %85 = vector.load %arg20[%c0_59, %c0_60] : memref<32x3xf32, #tpu.memory_space<vmem>>, vector<32x3xf32>
    %cst_61 = arith.constant dense<0.000000e+00> : vector<8x3xf32>
    %86 = tpu.matmul %84, %85, %cst_61 {dimension_numbers = #tpu.dot_dimension_numbers<[1], [0], [0], [1], [0, 0, 1, 1], [], []>} : vector<8x32xf32>, vector<32x3xf32>, vector<8x3xf32> -> vector<8x3xf32>
    %c0_62 = arith.constant 0 : index
    %c0_63 = arith.constant 0 : index
    %87 = vector.load %arg21[%c0_62, %c0_63] : memref<1x3xf32, #tpu.memory_space<vmem>>, vector<1x3xf32>
    %88 = vector.broadcast %87 : vector<1x3xf32> to vector<8x3xf32>
    %89 = arith.addf %86, %88 : vector<8x3xf32>
    %c0_64 = arith.constant 0 : index
    %c0_65 = arith.constant 0 : index
    %90 = vector.load %arg23[%c0_64, %c0_65] : memref<8x3xf32, #tpu.memory_space<vmem>>, vector<8x3xf32>
    tpu.vector_store %arg23[%c0_64, %c0_65], %89 {strides = array<i32>} : memref<8x3xf32, #tpu.memory_space<vmem>>, vector<8x3xf32>,
    return
  }
}

module attributes {stable_mosaic.version = 11 : i64} {
  func.func @kernel(%arg0: memref<8x4x8xf32, #tpu.memory_space<vmem>>, %arg1: memref<8x8x8xf32, #tpu.memory_space<vmem>>, %arg2: memref<8x8x8xf32, #tpu.memory_space<vmem>>, %arg3: memref<8x4x8xf32, #tpu.memory_space<vmem>>, %arg4: memref<2x4x8xf32, #tpu.memory_space<vmem>>) attributes {dimension_semantics = [], scalar_prefetch = 0 : i64, scratch_operands = 0 : i64, tpu.core_type = #tpu.core_type<tc>} {
    %c0 = arith.constant 0 : index
    %c0_0 = arith.constant 0 : index
    %c0_1 = arith.constant 0 : index
    %0 = vector.load %arg0[%c0, %c0_0, %c0_1] : memref<8x4x8xf32, #tpu.memory_space<vmem>>, vector<8x4x8xf32>
    %cst = arith.constant 0.353553385 : f32
    %1 = vector.broadcast %cst : f32 to vector<8x4x8xf32>
    %2 = arith.mulf %0, %1 : vector<8x4x8xf32>
    %c0_2 = arith.constant 0 : index
    %c0_3 = arith.constant 0 : index
    %c0_4 = arith.constant 0 : index
    %3 = vector.load %arg1[%c0_2, %c0_3, %c0_4] : memref<8x8x8xf32, #tpu.memory_space<vmem>>, vector<8x8x8xf32>
    %c0_5 = arith.constant 0 : index
    %c0_6 = arith.constant 0 : index
    %c0_7 = arith.constant 0 : index
    %4 = vector.load %arg2[%c0_5, %c0_6, %c0_7] : memref<8x8x8xf32, #tpu.memory_space<vmem>>, vector<8x8x8xf32>
    "tpu.trace_start"() <{level = 10 : i32, message = "bld,bsd->bls"}> : () -> ()
    %cst_8 = arith.constant dense<0.000000e+00> : vector<8x4x8xf32>
    %5 = tpu.matmul %2, %3, %cst_8 {dimension_numbers = #tpu.dot_dimension_numbers<[2], [2], [1], [1], [0, 0, 0, 1, 1, 1], [0], [0]>} : vector<8x4x8xf32>, vector<8x8x8xf32>, vector<8x4x8xf32> -> vector<8x4x8xf32>
    "tpu.trace_stop"() : () -> ()
    %cst_9 = arith.constant dense<0xFF800000> : vector<8x4xf32>
    %6 = vector.multi_reduction <maximumf>, %5, %cst_9 [2] : vector<8x4x8xf32> to vector<8x4xf32>
    %7 = vector.shape_cast %6 : vector<8x4xf32> to vector<8x4x1xf32>
    %8 = vector.broadcast %7 : vector<8x4x1xf32> to vector<8x4x8xf32>
    %9 = arith.subf %5, %8 : vector<8x4x8xf32>
    %10 = math.exp %9 : vector<8x4x8xf32>
    %cst_10 = arith.constant dense<0.000000e+00> : vector<8x4xf32>
    %11 = vector.multi_reduction <add>, %10, %cst_10 [2] : vector<8x4x8xf32> to vector<8x4xf32>
    %12 = vector.shape_cast %11 : vector<8x4xf32> to vector<8x4x1xf32>
    %13 = vector.broadcast %12 : vector<8x4x1xf32> to vector<8x4x8xf32>
    %14 = arith.divf %10, %13 : vector<8x4x8xf32>
    "tpu.trace_start"() <{level = 10 : i32, message = "bls,bsd->bld"}> : () -> ()
    %cst_11 = arith.constant dense<0.000000e+00> : vector<8x4x8xf32>
    %15 = tpu.matmul %14, %4, %cst_11 {dimension_numbers = #tpu.dot_dimension_numbers<[2], [1], [1], [2], [0, 0, 0, 1, 1, 2], [0], [0]>} : vector<8x4x8xf32>, vector<8x8x8xf32>, vector<8x4x8xf32> -> vector<8x4x8xf32>
    "tpu.trace_stop"() : () -> ()
    %c0_12 = arith.constant 0 : index
    %c0_13 = arith.constant 0 : index
    %c0_14 = arith.constant 0 : index
    %16 = vector.load %arg3[%c0_12, %c0_13, %c0_14] : memref<8x4x8xf32, #tpu.memory_space<vmem>>, vector<8x4x8xf32>
    tpu.vector_store %arg3[%c0_12, %c0_13, %c0_14], %15 {strides = array<i32>} : memref<8x4x8xf32, #tpu.memory_space<vmem>>, vector<8x4x8xf32>,
    %17 = vector.extract_strided_slice %14 {offsets = [0, 0, 0], sizes = [1, 4, 8], strides = [1, 1, 1]} : vector<8x4x8xf32> to vector<1x4x8xf32>
    %18 = vector.shape_cast %17 : vector<1x4x8xf32> to vector<4x8xf32>
    %19 = vector.extract_strided_slice %14 {offsets = [1, 0, 0], sizes = [1, 4, 8], strides = [1, 1, 1]} : vector<8x4x8xf32> to vector<1x4x8xf32>
    %20 = vector.shape_cast %19 : vector<1x4x8xf32> to vector<4x8xf32>
    %21 = arith.addf %18, %20 : vector<4x8xf32>
    %22 = vector.extract_strided_slice %14 {offsets = [2, 0, 0], sizes = [1, 4, 8], strides = [1, 1, 1]} : vector<8x4x8xf32> to vector<1x4x8xf32>
    %23 = vector.shape_cast %22 : vector<1x4x8xf32> to vector<4x8xf32>
    %24 = arith.addf %21, %23 : vector<4x8xf32>
    %25 = vector.extract_strided_slice %14 {offsets = [3, 0, 0], sizes = [1, 4, 8], strides = [1, 1, 1]} : vector<8x4x8xf32> to vector<1x4x8xf32>
    %26 = vector.shape_cast %25 : vector<1x4x8xf32> to vector<4x8xf32>
    %27 = arith.addf %24, %26 : vector<4x8xf32>
    %cst_15 = arith.constant 2.500000e-01 : f32
    %28 = vector.broadcast %cst_15 : f32 to vector<4x8xf32>
    %29 = arith.mulf %27, %28 : vector<4x8xf32>
    %c0_16 = arith.constant 0 : index
    %c0_17 = arith.constant 0 : index
    %c0_18 = arith.constant 0 : index
    %30 = vector.load %arg4[%c0_16, %c0_17, %c0_18] : memref<2x4x8xf32, #tpu.memory_space<vmem>>, vector<1x4x8xf32>
    %31 = vector.shape_cast %30 : vector<1x4x8xf32> to vector<4x8xf32>
    %32 = vector.shape_cast %29 : vector<4x8xf32> to vector<1x4x8xf32>
    tpu.vector_store %arg4[%c0_16, %c0_17, %c0_18], %32 {strides = array<i32>} : memref<2x4x8xf32, #tpu.memory_space<vmem>>, vector<1x4x8xf32>,
    %33 = vector.extract_strided_slice %14 {offsets = [4, 0, 0], sizes = [1, 4, 8], strides = [1, 1, 1]} : vector<8x4x8xf32> to vector<1x4x8xf32>
    %34 = vector.shape_cast %33 : vector<1x4x8xf32> to vector<4x8xf32>
    %35 = vector.extract_strided_slice %14 {offsets = [5, 0, 0], sizes = [1, 4, 8], strides = [1, 1, 1]} : vector<8x4x8xf32> to vector<1x4x8xf32>
    %36 = vector.shape_cast %35 : vector<1x4x8xf32> to vector<4x8xf32>
    %37 = arith.addf %34, %36 : vector<4x8xf32>
    %38 = vector.extract_strided_slice %14 {offsets = [6, 0, 0], sizes = [1, 4, 8], strides = [1, 1, 1]} : vector<8x4x8xf32> to vector<1x4x8xf32>
    %39 = vector.shape_cast %38 : vector<1x4x8xf32> to vector<4x8xf32>
    %40 = arith.addf %37, %39 : vector<4x8xf32>
    %41 = vector.extract_strided_slice %14 {offsets = [7, 0, 0], sizes = [1, 4, 8], strides = [1, 1, 1]} : vector<8x4x8xf32> to vector<1x4x8xf32>
    %42 = vector.shape_cast %41 : vector<1x4x8xf32> to vector<4x8xf32>
    %43 = arith.addf %40, %42 : vector<4x8xf32>
    %cst_19 = arith.constant 2.500000e-01 : f32
    %44 = vector.broadcast %cst_19 : f32 to vector<4x8xf32>
    %45 = arith.mulf %43, %44 : vector<4x8xf32>
    %c1 = arith.constant 1 : index
    %c0_20 = arith.constant 0 : index
    %c0_21 = arith.constant 0 : index
    %46 = vector.load %arg4[%c1, %c0_20, %c0_21] : memref<2x4x8xf32, #tpu.memory_space<vmem>>, vector<1x4x8xf32>
    %47 = vector.shape_cast %46 : vector<1x4x8xf32> to vector<4x8xf32>
    %48 = vector.shape_cast %45 : vector<4x8xf32> to vector<1x4x8xf32>
    tpu.vector_store %arg4[%c1, %c0_20, %c0_21], %48 {strides = array<i32>} : memref<2x4x8xf32, #tpu.memory_space<vmem>>, vector<1x4x8xf32>,
    return
  }
}

</mosaic_0001>

<bundles_post_ra>
// kernel: _lambda_.8
= control target key start
LH: loop header
LB: loop body
LE: loop exit
PB: predicated region body
PF: predicated region fallthrough
CT: control target
= control target key end

     0   :  { %vm31_vm0 = vcmask 254976   ;;  %v979_v0 = vmov 0.0   ;;  %s1046_s30 = smov 0   ;;  %s1200_s0 = inlined_call_operand.vmem [shape: f32[8,2,128], index: 0, kind: input, shape index: {}]   ;;  %s1201_s1 = inlined_call_operand.vmem [shape: f32[4,2,128], index: 1, kind: input, shape index: {}]   ;;  %s1202_s2 = inlined_call_operand.vmem [shape: f32[2,32,128], index: 2, kind: input, shape index: {}]   ;;  %s1203_s3 = inlined_call_operand.vmem [shape: f32[2,32,128], index: 3, kind: input, shape index: {}]   ;;  %s1204_s4 = inlined_call_operand.vmem [shape: f32[2,1,128], index: 4, kind: input, shape index: {}]   ;;  %s1205_s5 = inlined_call_operand.vmem [shape: f32[2,32,128], index: 5, kind: input, shape index: {}]   ;;  %s1206_s6 = inlined_call_operand.vmem [shape: f32[2,32,128], index: 6, kind: input, shape index: {}]   ;;  %s1207_s7 = inlined_call_operand.vmem [shape: f32[2,1,128], index: 7, kind: input, shape index: {}]   ;;  %s1208_s8 = inlined_call_operand.vmem [shape: f32[8,2,32], index: 8, kind: output, shape index: {0}]   ;;  %s1209_s9 = inlined_call_operand.vmem [shape: f32[4,2,32], index: 9, kind: output, shape index: {1}]  }
   0x1   :  { %32 = vst.msk [vmem:[#allocation2] sm:$0x3] %vm31_vm0, %v979_v0  ;;  %33 = vst.msk [vmem:[#allocation2 + $0x2] sm:$0x3] %vm31_vm0, %v979_v0 }
   0x2   :  { %34 = vst.msk [vmem:[#allocation3] sm:$0x3] %vm31_vm0, %v979_v0  ;;  %35 = vst.msk [vmem:[#allocation3 + $0x2] sm:$0x3] %vm31_vm0, %v979_v0 }
   0x3 LB: > { %v47_v1 = vld [vmem:[%s1203_s3] sm:$0xff]  ;;  %v48_v2 = vld [vmem:[%s1203_s3 + $0x8] sm:$0xff]  ;;  %v49_v3 = vld [vmem:[%s1203_s3 + $0x10] sm:$0xff]  ;;  %v980_v4 = vmov 0.0|0.0   ;;  %vm981_vm1 = vmmov 0   ;;  %v982_v7 = vmov 0.0   ;;  %s973_s30 = sphi %s1046_s30, %s41_s30  }
   0x4   : > { %866 = vmatprep.subr.bf16.mxu0 %v980_v4  ;;  %v867_v5 = vpack.c.bf16 %v48_v2, %v47_v1  ;;  %v50_v6 = vld [vmem:[%s1203_s3 + $0x18] sm:$0xff]  ;;  %808 = vmatprep.mubr.msk.f32.mxu0 %vm981_vm1, %v982_v7  ;;  %vm51_vm2 = vcmask 261120   ;;  %s738_s18 = sshll.u32 %s973_s30, 1  ;;  %s983_s22 = smov 64   ;;  %v745_v26 = vld [vmem:[%s1203_s3 + $0x20] sm:$0xff]  ;;  %v746_v27 = vld [vmem:[%s1203_s3 + $0x28] sm:$0xff] }
   0x5   : > { %872 = vmatprep.subr.bf16.mxu1 %v980_v4  ;;  %819 = vmatprep.mubr.msk.f32.mxu1 %vm981_vm1, %v982_v7  ;;  %v870_v8 = vpack.c.bf16 %v50_v6, %v49_v3  ;;  %s45_s21 = scalar_lea.vmem %s1200_s0, %s738_s18  ;;  %s984_s23 = smov 32   ;;  %v741_v28 = vld [vmem:[%s1202_s2 + $0x20] sm:$0xff]  ;;  %v873_v29 = vpack.c.bf16 %v746_v27, %v745_v26  ;;  %v742_v30 = vld [vmem:[%s1202_s2 + $0x28] sm:$0xff]  ;;  %v747_v31 = vld [vmem:[%s1203_s3 + $0x30] sm:$0xff] }
   0x6   : > { %868 = vmatpush3.bf16.msra.mxu0 %v867_v5  ;;  %v46_v10 = vld [vmem:[%s45_s21] sm:$0x3]  ;;  %v748_v32 = vld [vmem:[%s1203_s3 + $0x38] sm:$0xff]  ;;  %v879_v33 = vpack.c.bf16 %v742_v30, %v741_v28  ;;  %v743_v34 = vld [vmem:[%s1202_s2 + $0x30] sm:$0xff]  ;;  %s985_s25 = smov 96   ;;  %s370_s28 = scalar_lea.vmem %s1208_s8, %s738_s18 }
   0x7   : > { %869 = vmatprep.subr.bf16.mxu0 %v980_v4  ;;  %v744_v35 = vld [vmem:[%s1202_s2 + $0x38] sm:$0xff]  ;;  %874 = vmatpush3.bf16.msra.mxu1 %v873_v29  ;;  %v876_v36 = vpack.c.bf16 %v748_v32, %v747_v31  ;;  %v752_v47 = vld [vmem:[%s1204_s4 + $0x1] ss:$0 sm:$0xff]  ;;  %s41_s30 = sadd.s32 1, %s973_s30  }
   0x8   : > { %v42_v9 = vld [vmem:[#allocation2] sm:$0x3]  ;;  %875 = vmatprep.subr.bf16.mxu1 %v980_v4  ;;  %v882_v37 = vpack.c.bf16 %v744_v35, %v743_v34  ;;  %v165_v38 = vld [vmem:[#allocation2 + $0x2] sm:$0x3]  ;;  %p38_p0 = scmp.ge.s32.totalorder %s41_s30, 8  }
   0x9   : > { %v43_v15 = vld [vmem:[#allocation3] sm:$0x3]  ;;  %v167_v42 = vld [vmem:[#allocation3 + $0x2] sm:$0x3] }
   0xa   : > { %871 = vmatpush3.bf16.msra.mxu0 %v870_v8 }
   0xb   : > { %878 = vmatprep.subr.bf16.mxu0 %v980_v4  ;;  %877 = vmatpush3.bf16.msra.mxu1 %v876_v36 }
   0xd   : > { %809 = vmatmul.mubr.msk.f32.vlgmr.msra.gmra.mrb[0].mxu0 %vm51_vm2, %v42_v9 }
   0xe   : > { %830 = vmatprep.mubr.msk.f32.mxu0 %vm981_vm1, %v982_v7  ;;  %880 = vmatpush3.bf16.msra.mxu0 %v879_v33 }
   0xf   : > { %881 = vmatprep.subr.bf16.mxu0 %v980_v4  ;;  %820 = vmatmul.mubr.msk.f32.vlgmr.msra.gmra.mrb[0].mxu1 %vm51_vm2, %v165_v38 }
  0x12   : > { %883 = vmatpush3.bf16.msra.mxu0 %v882_v37 }
  0xe0   : > { %v121_v11 = vpop.f32.mrb[0].mxu0 }
  0xe1   : > { %v125_v12 = vadd.f32 %v121_v11, %v46_v10  ;;  %v810_v13 = vpop.f32.mrb[1].mxu0 }
  0xe2   : > { %v247_v43 = vpop.f32.mrb[0].mxu1 }
  0xe3   : > { %931 = vtanh.f32 %v125_v12  ;;  %v740_v16 = vmul.f32 -1.442695, %v125_v12  ;;  %v821_v44 = vpop.f32.mrb[1].mxu1 }
  0xe5   : > { %933 = vpow2.f32 %v740_v16 }
  0xed   : > { %v932_v14 = vpop.eup %931 }
  0xee   : > { %139 = vrot.lane.b32.xlu0 %v932_v14, %s983_s22 }
  0xef   : > { %v934_v17 = vpop.eup %933 }
  0xf0   : > { %v129_v18 = vadd.f32 1.0, %v934_v17 }
  0xf2   : > { %134 = vrot.lane.b32.xlu0 %v43_v15, %s984_s23  ;;  %935 = vrcp.f32 %v129_v18 }
  0xfc   : > { %v936_v19 = vpop.eup %935 }
 0x160   : > { %v140_v20 = vpop.permute.xlu0 %139 }
 0x161   : > { %v142_v21 = vmul.f32 %v936_v19, %v140_v20 }
 0x163   : > { %144 = vrot.lane.b32.xlu1 %v142_v21, %s984_s23 }
 0x164   : > { %v135_v22 = vpop.permute.xlu0 %134 }
 0x165   : > { %v137_v23 = vmul.f32 %v936_v19, %v135_v22 }
 0x1d5   : > { %v145_v24 = vpop.permute.xlu1 %144 }
 0x1d6   : > { %v147_v25 = vadd.f32 %v145_v24, %v137_v23 }
 0x1d8   : > { %937 = vtanh.f32 %v147_v25 }
 0x1e2   : > { %v938_v39 = vpop.eup %937 }
 0x1e3   : > { %150 = vrot.lane.b32.xlu1 %v938_v39, %s983_s22 }
 0x255   : > { %v151_v40 = vpop.permute.xlu1 %150 }
 0x256   : > { %v153_v41 = vmul.f32 %v936_v19, %v151_v40 }
 0x258   : > { %155 = vrot.lane.b32.xlu0 %v153_v41, %s984_s23 }
 0x25c   : > { %340 = vrot.lane.b32.xlu0 %v167_v42, %s984_s23 }
 0x2ca   : > { %v156_v45 = vpop.permute.xlu0 %155 }
 0x2cb   : > { %158 = vst.msk [vmem:[#allocation2] sm:$0x3] %vm31_vm0, %v156_v45  ;;  %831 = vmatmul.mubr.msk.f32.vlgmr.msra.gmra.mrb[2].mxu0 %vm51_vm2, %v156_v45 }
 0x2ce   : > { %v341_v58 = vpop.permute.xlu0 %340 }
 0x2d2   :  { %v372_v4 = vld [vmem:[#allocation2] sm:$0x3] (%p38_p0) }
 0x39e   : > { %v319_v46 = vpop.f32.mrb[2].mxu0 }
 0x39f   : > { %v320_v48 = vadd.f32 %v319_v46, %v247_v43  ;;  %v832_v49 = vpop.f32.mrb[3].mxu0 }
 0x3a1   : > { %v331_v50 = vadd.f32 %v752_v47, %v320_v48 }
 0x3a3   : > { %939 = vtanh.f32 %v331_v50  ;;  %v753_v52 = vmul.f32 -1.442695, %v331_v50 }
 0x3a5   : > { %941 = vpow2.f32 %v753_v52 }
 0x3ad   : > { %v940_v51 = vpop.eup %939 }
 0x3ae   : > { %345 = vrot.lane.b32.xlu1 %v940_v51, %s983_s22 }
 0x3af   : > { %v942_v53 = vpop.eup %941 }
 0x3b0   : > { %v335_v54 = vadd.f32 1.0, %v942_v53 }
 0x3b2   : > { %943 = vrcp.f32 %v335_v54 }
 0x3bc   : > { %v944_v55 = vpop.eup %943 }
 0x3bd   : > { %v343_v59 = vmul.f32 %v944_v55, %v341_v58 }
 0x420   : > { %v346_v56 = vpop.permute.xlu1 %345 }
 0x421   : > { %v348_v57 = vmul.f32 %v944_v55, %v346_v56 }
 0x423   : > { %350 = vrot.lane.b32.xlu1 %v348_v57, %s984_s23 }
 0x427   : > { %160 = vrot.lane.b32.xlu1 %v147_v25, %s985_s25 }
 0x495   : > { %v351_v60 = vpop.permute.xlu1 %350 }
 0x496   : > { %v353_v61 = vadd.f32 %v351_v60, %v343_v59 }
 0x498   : > { %945 = vtanh.f32 %v353_v61  ;;  %366 = vrot.lane.b32.xlu1 %v353_v61, %s985_s25 }
 0x499   : > { %v161_v62 = vpop.permute.xlu1 %160 }
 0x49a   : > { %163 = vst.msk [vmem:[#allocation3] sm:$0x3] %vm31_vm0, %v161_v62 }
 0x49b   :  { %374 = vst.msk [vmem:[#allocation3] sm:$0x3] (%p38_p0), %vm31_vm0, %v372_v4 }
 0x4a2   : > { %v946_v63 = vpop.eup %945 }
 0x4a3   : > { %356 = vrot.lane.b32.xlu0 %v946_v63, %s983_s22  ;;  %s1124_s22 = smov (%p38_p0), 0  }
 0x50a   : > { %v367_v0 = vpop.permute.xlu1 %366 }
 0x50b   : > { %369 = vst.msk [vmem:[#allocation3 + $0x2] sm:$0x3] %vm31_vm0, %v367_v0 }
 0x515   : > { %v357_v1 = vpop.permute.xlu0 %356 }
 0x516   : > { %v359_v2 = vmul.f32 %v944_v55, %v357_v1 }
 0x518   : > { %361 = vrot.lane.b32.xlu0 %v359_v2, %s984_s23 }
 0x585   :  { %40 = sbr.rel (!%p38_p0) target bundleno = 3 (0x3), region = 88 }
 0x58a   : > { %v362_v3 = vpop.permute.xlu0 %361 }
 0x58b   : > { %364 = vst.msk [vmem:[#allocation2 + $0x2] sm:$0x3] %vm31_vm0, %v362_v3  ;;  %371 = vst.msk [vmem:[%s370_s28] sm:$0x3] %vm31_vm0, %v362_v3 }
 0x592   :  { %v373_v5 = vld [vmem:[#allocation2 + $0x2] sm:$0x3] }
 0x593   :  { %375 = vst.msk [vmem:[#allocation3 + $0x2] sm:$0x3] %vm31_vm0, %v373_v5 }
 0x594 LB: > { %v387_v6 = vld [vmem:[%s1206_s6] sm:$0xff]  ;;  %v388_v7 = vld [vmem:[%s1206_s6 + $0x8] sm:$0xff]  ;;  %v389_v8 = vld [vmem:[%s1206_s6 + $0x10] sm:$0xff]  ;;  %v986_v9 = vmov 0.0|0.0   ;;  %vm987_vm3 = vmmov 0   ;;  %v988_v12 = vmov 0.0   ;;  %s977_s22 = sphi %s1124_s22, %s381_s22  }
 0x595   : > { %884 = vmatprep.subr.bf16.mxu0 %v986_v9  ;;  %v885_v10 = vpack.c.bf16 %v388_v7, %v387_v6  ;;  %v390_v11 = vld [vmem:[%s1206_s6 + $0x18] sm:$0xff]  ;;  %841 = vmatprep.mubr.msk.f32.mxu0 %vm987_vm3, %v988_v12  ;;  %v382_v14 = vld [vmem:[#allocation2] sm:$0x3]  ;;  %s754_s8 = sshll.u32 %s977_s22, 1  ;;  %s989_s13 = smov 64   ;;  %v762_v32 = vld [vmem:[%s1206_s6 + $0x28] sm:$0xff] }
 0x596   : > { %890 = vmatprep.subr.bf16.mxu1 %v986_v9  ;;  %852 = vmatprep.mubr.msk.f32.mxu1 %vm987_vm3, %v988_v12  ;;  %v888_v13 = vpack.c.bf16 %v390_v11, %v389_v8  ;;  %s385_s12 = scalar_lea.vmem %s1201_s1, %s754_s8  ;;  %v383_v20 = vld [vmem:[#allocation3] sm:$0x3]  ;;  %s990_s14 = smov 32   ;;  %v758_v35 = vld [vmem:[%s1205_s5 + $0x28] sm:$0xff]  ;;  %v763_v36 = vld [vmem:[%s1206_s6 + $0x30] sm:$0xff] }
 0x597   : > { %886 = vmatpush3.bf16.msra.mxu0 %v885_v10  ;;  %v386_v15 = vld [vmem:[%s385_s12] sm:$0x3]  ;;  %v764_v37 = vld [vmem:[%s1206_s6 + $0x38] sm:$0xff]  ;;  %v759_v39 = vld [vmem:[%s1205_s5 + $0x30] sm:$0xff]  ;;  %s991_s4 = smov 96   ;;  %s710_s12 = scalar_lea.vmem %s1209_s9, %s754_s8 }
 0x598   : > { %887 = vmatprep.subr.bf16.mxu0 %v986_v9  ;;  %v761_v31 = vld [vmem:[%s1206_s6 + $0x20] sm:$0xff]  ;;  %v760_v40 = vld [vmem:[%s1205_s5 + $0x38] sm:$0xff]  ;;  %v894_v41 = vpack.c.bf16 %v764_v37, %v763_v36  ;;  %s381_s22 = sadd.s32 1, %s977_s22  }
 0x599   : > { %v757_v33 = vld [vmem:[%s1205_s5 + $0x20] sm:$0xff]  ;;  %v891_v34 = vpack.c.bf16 %v762_v32, %v761_v31  ;;  %v900_v42 = vpack.c.bf16 %v760_v40, %v759_v39  ;;  %p378_p1 = scmp.ge.s32.totalorder %s381_s22, 4  }
 0x59a   : > { %v897_v38 = vpack.c.bf16 %v758_v35, %v757_v33  ;;  %v505_v43 = vld [vmem:[#allocation2 + $0x2] sm:$0x3]  ;;  %v507_v47 = vld [vmem:[#allocation3 + $0x2] sm:$0x3]  ;;  %v768_v52 = vld [vmem:[%s1207_s7 + $0x1] ss:$0 sm:$0xff] }
 0x59b   : > { %889 = vmatpush3.bf16.msra.mxu0 %v888_v13  ;;  %892 = vmatpush3.bf16.msra.mxu1 %v891_v34 }
 0x59c   : > { %896 = vmatprep.subr.bf16.mxu0 %v986_v9  ;;  %893 = vmatprep.subr.bf16.mxu1 %v986_v9 }
 0x59e   : > { %842 = vmatmul.mubr.msk.f32.vlgmr.msra.gmra.mrb[0].mxu0 %vm51_vm2, %v382_v14 }
 0x59f   : > { %863 = vmatprep.mubr.msk.f32.mxu0 %vm987_vm3, %v988_v12  ;;  %898 = vmatpush3.bf16.msra.mxu0 %v897_v38 }
 0x5a0   : > { %899 = vmatprep.subr.bf16.mxu0 %v986_v9  ;;  %895 = vmatpush3.bf16.msra.mxu1 %v894_v41 }
 0x5a3   : > { %901 = vmatpush3.bf16.msra.mxu0 %v900_v42  ;;  %853 = vmatmul.mubr.msk.f32.vlgmr.msra.gmra.mrb[0].mxu1 %vm51_vm2, %v505_v43 }
 0x671   : > { %v461_v16 = vpop.f32.mrb[0].mxu0 }
 0x672   : > { %v465_v17 = vadd.f32 %v461_v16, %v386_v15  ;;  %v843_v18 = vpop.f32.mrb[1].mxu0 }
 0x674   : > { %947 = vtanh.f32 %v465_v17  ;;  %v756_v21 = vmul.f32 -1.442695, %v465_v17 }
 0x676   : > { %949 = vpow2.f32 %v756_v21  ;;  %v587_v48 = vpop.f32.mrb[0].mxu1 }
 0x677   : > { %v854_v49 = vpop.f32.mrb[1].mxu1 }
 0x67e   : > { %v948_v19 = vpop.eup %947 }
 0x67f   : > { %479 = vrot.lane.b32.xlu0 %v948_v19, %s989_s13 }
 0x680   : > { %v950_v22 = vpop.eup %949 }
 0x681   : > { %v469_v23 = vadd.f32 1.0, %v950_v22 }
 0x683   : > { %474 = vrot.lane.b32.xlu0 %v383_v20, %s990_s14  ;;  %951 = vrcp.f32 %v469_v23 }
 0x68d   : > { %v952_v24 = vpop.eup %951 }
 0x6f1   : > { %v480_v25 = vpop.permute.xlu0 %479 }
 0x6f2   : > { %v482_v26 = vmul.f32 %v952_v24, %v480_v25 }
 0x6f4   : > { %484 = vrot.lane.b32.xlu1 %v482_v26, %s990_s14 }
 0x6f5   : > { %v475_v27 = vpop.permute.xlu0 %474 }
 0x6f6   : > { %v477_v28 = vmul.f32 %v952_v24, %v475_v27 }
 0x766   : > { %v485_v29 = vpop.permute.xlu1 %484 }
 0x767   : > { %v487_v30 = vadd.f32 %v485_v29, %v477_v28 }
 0x769   : > { %953 = vtanh.f32 %v487_v30 }
 0x773   : > { %v954_v44 = vpop.eup %953 }
 0x774   : > { %490 = vrot.lane.b32.xlu1 %v954_v44, %s989_s13 }
 0x7e6   : > { %v491_v45 = vpop.permute.xlu1 %490 }
 0x7e7   : > { %v493_v46 = vmul.f32 %v952_v24, %v491_v45 }
 0x7e9   : > { %495 = vrot.lane.b32.xlu0 %v493_v46, %s990_s14 }
 0x7ed   : > { %680 = vrot.lane.b32.xlu0 %v507_v47, %s990_s14 }
 0x85b   : > { %v496_v50 = vpop.permute.xlu0 %495 }
 0x85c   : > { %498 = vst.msk [vmem:[#allocation2] sm:$0x3] %vm31_vm0, %v496_v50  ;;  %864 = vmatmul.mubr.msk.f32.vlgmr.msra.gmra.mrb[2].mxu0 %vm51_vm2, %v496_v50 }
 0x85f   : > { %v681_v63 = vpop.permute.xlu0 %680 }
 0x92f   : > { %v659_v51 = vpop.f32.mrb[2].mxu0 }
 0x930   : > { %v660_v53 = vadd.f32 %v659_v51, %v587_v48  ;;  %v865_v54 = vpop.f32.mrb[3].mxu0 }
 0x932   : > { %v671_v55 = vadd.f32 %v768_v52, %v660_v53 }
 0x934   : > { %955 = vtanh.f32 %v671_v55  ;;  %v769_v57 = vmul.f32 -1.442695, %v671_v55 }
 0x936   : > { %957 = vpow2.f32 %v769_v57 }
 0x93e   : > { %v956_v56 = vpop.eup %955 }
 0x93f   : > { %685 = vrot.lane.b32.xlu1 %v956_v56, %s989_s13 }
 0x940   : > { %v958_v58 = vpop.eup %957 }
 0x941   : > { %v675_v59 = vadd.f32 1.0, %v958_v58 }
 0x943   : > { %959 = vrcp.f32 %v675_v59 }
 0x94d   : > { %v960_v60 = vpop.eup %959 }
 0x94e   : > { %v683_v0 = vmul.f32 %v960_v60, %v681_v63 }
 0x9b1   : > { %v686_v61 = vpop.permute.xlu1 %685 }
 0x9b2   : > { %v688_v62 = vmul.f32 %v960_v60, %v686_v61 }
 0x9b4   : > { %690 = vrot.lane.b32.xlu1 %v688_v62, %s990_s14 }
 0x9b8   : > { %500 = vrot.lane.b32.xlu1 %v487_v30, %s991_s4 }
 0xa26   : > { %v691_v1 = vpop.permute.xlu1 %690 }
 0xa27   : > { %v693_v2 = vadd.f32 %v691_v1, %v683_v0 }
 0xa29   : > { %961 = vtanh.f32 %v693_v2  ;;  %706 = vrot.lane.b32.xlu1 %v693_v2, %s991_s4 }
 0xa2a   : > { %v501_v3 = vpop.permute.xlu1 %500 }
 0xa2b   : > { %503 = vst.msk [vmem:[#allocation3] sm:$0x3] %vm31_vm0, %v501_v3 }
 0xa33   : > { %v962_v4 = vpop.eup %961 }
 0xa34   : > { %696 = vrot.lane.b32.xlu0 %v962_v4, %s989_s13 }
 0xa9b   : > { %v707_v5 = vpop.permute.xlu1 %706 }
 0xa9c   : > { %709 = vst.msk [vmem:[#allocation3 + $0x2] sm:$0x3] %vm31_vm0, %v707_v5 }
 0xaa6   : > { %v697_v6 = vpop.permute.xlu0 %696 }
 0xaa7   : > { %v699_v7 = vmul.f32 %v960_v60, %v697_v6 }
 0xaa9   : > { %701 = vrot.lane.b32.xlu0 %v699_v7, %s990_s14 }
 0xb16   :  { %380 = sbr.rel (!%p378_p1) target bundleno = 1428 (0x594), region = 99 }
 0xb1b   : > { %v702_v8 = vpop.permute.xlu0 %701 }
 0xb1c   : > { %704 = vst.msk [vmem:[#allocation2 + $0x2] sm:$0x3] %vm31_vm0, %v702_v8  ;;  %711 = vst.msk [vmem:[%s710_s12] sm:$0x3] %vm31_vm0, %v702_v8 }

// kernel: _lambda_.9
= control target key start
LH: loop header
LB: loop body
LE: loop exit
PB: predicated region body
PF: predicated region fallthrough
CT: control target
= control target key end

     0   :  { %v495_v0 = vmov 0.0|0.0   ;;  %vm496_vm0 = vmmov 0   ;;  %v497_v6 = vmov 0.0   ;;  %vm51_vm1 = vcmask 261120   ;;  %s659_s2 = inlined_call_operand.vmem [shape: f32[32,32], index: 2, kind: input, shape index: {}]   ;;  %s660_s0 = inlined_call_operand.vmem [shape: f32[24,32], index: 0, kind: input, shape index: {}]   ;;  %s661_s1 = inlined_call_operand.vmem [shape: f32[24,32], index: 1, kind: input, shape index: {}]   ;;  %s662_s4 = inlined_call_operand.vmem [shape: f32[32,32], index: 4, kind: input, shape index: {}]   ;;  %s663_s6 = inlined_call_operand.vmem [shape: f32[32,96], index: 6, kind: input, shape index: {}]   ;;  %s664_s3 = inlined_call_operand.vmem [shape: f32[1,32], index: 3, kind: input, shape index: {}]   ;;  %s665_s5 = inlined_call_operand.vmem [shape: f32[1,32], index: 5, kind: input, shape index: {}]   ;;  %s666_s8 = inlined_call_operand.vmem [shape: f32[24,32], index: 8, kind: output, shape index: {0}]   ;;  %s667_s7 = inlined_call_operand.vmem [shape: f32[1,96], index: 7, kind: input, shape index: {}]   ;;  %s668_s9 = inlined_call_operand.vmem [shape: f32[24,96], index: 9, kind: output, shape index: {1}]  }
   0x1   :  { %458 = vmatprep.subr.bf16.mxu0 %v495_v0  ;;  %v40_v1 = vld [vmem:[%s659_s2] sm:$0xff]  ;;  %v41_v2 = vld [vmem:[%s659_s2 + $0x8] sm:$0xff]  ;;  %v42_v3 = vld [vmem:[%s659_s2 + $0x10] sm:$0xff]  ;;  %476 = vmatprep.subr.bf16.mxu1 %v495_v0  ;;  %vm359_vm2 = vcmask 785408  }
   0x2   :  { %v459_v4 = vpack.c.bf16 %v41_v2, %v40_v1  ;;  %v43_v5 = vld [vmem:[%s659_s2 + $0x18] sm:$0xff]  ;;  %415 = vmatprep.mubr.msk.f32.mxu0 %vm496_vm0, %v497_v6  ;;  %421 = vmatprep.mubr.msk.f32.mxu1 %vm496_vm0, %v497_v6  ;;  %v31_v7 = vld [vmem:[%s660_s0] sm:$0xff]  ;;  %v33_v10 = vld [vmem:[%s660_s0 + $0x10] sm:$0xff] }
   0x3   :  { %v462_v8 = vpack.c.bf16 %v43_v5, %v42_v3  ;;  %v34_v9 = vld [vmem:[%s661_s1] sm:$0xff]  ;;  %v36_v11 = vld [vmem:[%s661_s1 + $0x10] sm:$0xff]  ;;  %v160_v13 = vld [vmem:[%s662_s4 + $0x8] sm:$0xff] }
   0x4   :  { %460 = vmatpush3.bf16.msra.mxu0 %v459_v4  ;;  %478 = vmatpush3.bf16.msra.mxu1 %v459_v4  ;;  %v159_v12 = vld [vmem:[%s662_s4] sm:$0xff]  ;;  %v37_v14 = vadd.f32 %v34_v9, %v31_v7  ;;  %v39_v15 = vadd.f32 %v36_v11, %v33_v10  ;;  %v32_v16 = vld [vmem:[%s660_s0 + $0x8] sm:$0xff]  ;;  %v161_v19 = vld [vmem:[%s662_s4 + $0x10] sm:$0xff] }
   0x5   :  { %461 = vmatprep.subr.bf16.mxu0 %v495_v0  ;;  %477 = vmatprep.subr.bf16.mxu1 %v495_v0  ;;  %v35_v17 = vld [vmem:[%s661_s1 + $0x8] sm:$0xff]  ;;  %v465_v18 = vpack.c.bf16 %v160_v13, %v159_v12  ;;  %v162_v20 = vld [vmem:[%s662_s4 + $0x18] sm:$0xff]  ;;  %v259_v23 = vld [vmem:[%s663_s6] sm:$0xff] }
   0x6   :  { %v38_v21 = vadd.f32 %v35_v17, %v32_v16  ;;  %v468_v22 = vpack.c.bf16 %v162_v20, %v161_v19  ;;  %v260_v24 = vld [vmem:[%s663_s6 + $0x8] sm:$0xff]  ;;  %v261_v26 = vld [vmem:[%s663_s6 + $0x10] sm:$0xff]  ;;  %v262_v27 = vld [vmem:[%s663_s6 + $0x18] sm:$0xff] }
   0x7   :  { %v471_v25 = vpack.c.bf16 %v260_v24, %v259_v23  ;;  %v474_v28 = vpack.c.bf16 %v262_v27, %v261_v26  ;;  %v371_v29 = vld [vmem:[%s664_s3] ss:$0 sm:$0xff] }
   0x8   :  { %463 = vmatpush3.bf16.msra.mxu0 %v462_v8  ;;  %479 = vmatpush3.bf16.msra.mxu1 %v462_v8  ;;  %v378_v54 = vld [vmem:[%s665_s5] ss:$0 sm:$0xff] }
   0x9   :  { %464 = vmatprep.subr.bf16.mxu1 %v495_v0  ;;  %470 = vmatprep.subr.bf16.mxu0 %v495_v0  ;;  %v382_v3 = vld [vmem:[%s667_s7] ss:$0 sm:$0xff] }
   0xb   :  { %416 = vmatmul.mubr.msk.f32.vlgmr.msra.gmra.mrb[0].mxu0 %vm51_vm1, %v37_v14  ;;  %422 = vmatmul.mubr.msk.f32.vlgmr.msra.gmra.mrb[0].mxu1 %vm51_vm1, %v39_v15 }
   0xc   :  { %418 = vmatprep.mubr.msk.f32.mxu0 %vm496_vm0, %v497_v6  ;;  %466 = vmatpush3.bf16.msra.mxu1 %v465_v18 }
   0xd   :  { %467 = vmatprep.subr.bf16.mxu1 %v495_v0  ;;  %432 = vmatprep.mubr.msk.f32.mxu1 %vm496_vm0, %v497_v6 }
   0xe   :  { %472 = vmatpush3.bf16.msra.mxu0 %v471_v25 }
   0xf   :  { %419 = vmatmul.mubr.msk.f32.gmra.mrb[2].mxu0 %vm51_vm1, %v38_v21  ;;  %473 = vmatprep.subr.bf16.mxu0 %v495_v0 }
  0x10   :  { %469 = vmatpush3.bf16.msra.mxu1 %v468_v22  ;;  %449 = vmatprep.mubr.msk.f32.mxu0 %vm496_vm0, %v497_v6 }
  0x12   :  { %475 = vmatpush3.bf16.msra.mxu0 %v474_v28 }
  0x13   :  { %433 = vmatmul.mubr.msk.f32.vlgmr.msra.gmra.mrb[2].mxu1 %vm51_vm1, %v37_v14 }
  0x14   :  { %435 = vmatprep.mubr.msk.f32.mxu1 %vm496_vm0, %v497_v6 }
  0x17   :  { %436 = vmatmul.mubr.msk.f32.gmra.mrb[4].mxu1 %vm51_vm1, %v38_v21 }
  0x18   :  { %438 = vmatprep.mubr.msk.f32.mxu1 %vm496_vm0, %v497_v6 }
  0x1b   :  { %439 = vmatmul.mubr.msk.f32.gmra.mrb[6].mxu1 %vm51_vm1, %v39_v15 }
  0xde   :  { %v127_v30 = vpop.f32.mrb[0].mxu0  ;;  %v137_v31 = vpop.f32.mrb[0].mxu1 }
  0xdf   :  { %v128_v32 = vadd.f32 %v371_v29, %v127_v30  ;;  %v417_v33 = vpop.f32.mrb[1].mxu0  ;;  %v138_v34 = vadd.f32 %v371_v29, %v137_v31  ;;  %v423_v35 = vpop.f32.mrb[1].mxu1 }
  0xe1   :  { %v375_v36 = vmul.f32 -1.442695, %v128_v32  ;;  %v377_v37 = vmul.f32 -1.442695, %v138_v34 }
  0xe2   :  { %v132_v38 = vpop.f32.mrb[2].mxu0 }
  0xe3   :  { %483 = vpow2.f32 %v375_v36  ;;  %v133_v39 = vadd.f32 %v371_v29, %v132_v38  ;;  %v420_v40 = vpop.f32.mrb[3].mxu0 }
  0xe4   :  { %485 = vpow2.f32 %v377_v37 }
  0xe5   :  { %v376_v41 = vmul.f32 -1.442695, %v133_v39 }
  0xe6   :  { %v236_v42 = vpop.f32.mrb[2].mxu1 }
  0xe7   :  { %487 = vpow2.f32 %v376_v41  ;;  %v434_v43 = vpop.f32.mrb[3].mxu1  ;;  %v237_v55 = vadd.f32 %v378_v54, %v236_v42 }
  0xea   :  { %v241_v44 = vpop.f32.mrb[4].mxu1 }
  0xeb   :  { %v437_v45 = vpop.f32.mrb[5].mxu1  ;;  %v242_v60 = vadd.f32 %v378_v54, %v241_v44 }
  0xed   :  { %v484_v46 = vpop.eup %483 }
  0xee   :  { %v486_v47 = vpop.eup %485  ;;  %v150_v48 = vadd.f32 1.0, %v484_v46  ;;  %v246_v49 = vpop.f32.mrb[6].mxu1 }
  0xef   :  { %v152_v50 = vadd.f32 1.0, %v486_v47  ;;  %v440_v51 = vpop.f32.mrb[7].mxu1  ;;  %v247_v56 = vadd.f32 %v378_v54, %v246_v49 }
  0xf0   :  { %489 = vrcp.f32 %v150_v48 }
  0xf1   :  { %v488_v52 = vpop.eup %487  ;;  %491 = vrcp.f32 %v152_v50 }
  0xf2   :  { %v151_v53 = vadd.f32 1.0, %v488_v52 }
  0xf4   :  { %493 = vrcp.f32 %v151_v53 }
  0xfa   :  { %v490_v57 = vpop.eup %489 }
  0xfb   :  { %v492_v58 = vpop.eup %491  ;;  %v250_v59 = vmul.f32 %v490_v57, %v237_v55 }
  0xfc   :  { %v252_v61 = vmul.f32 %v492_v58, %v247_v56 }
  0xfd   :  { %253 = vst.msk [vmem:[%s666_s8] sm:$0xff] %vm51_vm1, %v250_v59  ;;  %v256_v62 = vmul.f32 0.999995, %v250_v59 }
  0xfe   :  { %v494_v63 = vpop.eup %493  ;;  %255 = vst.msk [vmem:[%s666_s8 + $0x10] sm:$0xff] %vm51_vm1, %v252_v61  ;;  %v258_v2 = vmul.f32 0.999995, %v252_v61 }
  0xff   :  { %v251_v0 = vmul.f32 %v494_v63, %v242_v60  ;;  %450 = vmatmul.mubr.msk.f32.vlgmr.msra.gmra.mrb[4].mxu0 %vm51_vm1, %v256_v62 }
 0x100   :  { %452 = vmatprep.mubr.msk.f32.mxu0 %vm496_vm0, %v497_v6 }
 0x101   :  { %254 = vst.msk [vmem:[%s666_s8 + $0x8] sm:$0xff] %vm51_vm1, %v251_v0  ;;  %v257_v1 = vmul.f32 0.999995, %v251_v0 }
 0x103   :  { %453 = vmatmul.mubr.msk.f32.gmra.mrb[6].mxu0 %vm51_vm1, %v257_v1 }
 0x104   :  { %455 = vmatprep.mubr.msk.f32.mxu0 %vm496_vm0, %v497_v6 }
 0x107   :  { %456 = vmatmul.mubr.msk.f32.gmra.mrb[8].mxu0 %vm51_vm1, %v258_v2 }
 0x1d2   :  { %v345_v4 = vpop.f32.mrb[4].mxu0 }
 0x1d3   :  { %v346_v5 = vadd.f32 %v382_v3, %v345_v4  ;;  %v451_v7 = vpop.f32.mrb[5].mxu0 }
 0x1d5   :  { %360 = vst.msk [vmem:[%s668_s9] sm:$0xff] %vm359_vm2, %v346_v5 }
 0x1d6   :  { %v350_v8 = vpop.f32.mrb[6].mxu0 }
 0x1d7   :  { %v351_v9 = vadd.f32 %v382_v3, %v350_v8  ;;  %v454_v10 = vpop.f32.mrb[7].mxu0 }
 0x1d9   :  { %361 = vst.msk [vmem:[%s668_s9 + $0x8] sm:$0xff] %vm359_vm2, %v351_v9 }
 0x1da   :  { %v355_v6 = vpop.f32.mrb[8].mxu0 }
 0x1db   :  { %v356_v11 = vadd.f32 %v382_v3, %v355_v6  ;;  %v457_v12 = vpop.f32.mrb[9].mxu0 }
 0x1dd   :  { %362 = vst.msk [vmem:[%s668_s9 + $0x10] sm:$0xff] %vm359_vm2, %v356_v11 }

// kernel: _lambda_.7
= control target key start
LH: loop header
LB: loop body
LE: loop exit
PB: predicated region body
PF: predicated region fallthrough
CT: control target
= control target key end

     0   :  { %v2384_v0 = vmov 0.0|0.0   ;;  %vm2385_vm0 = vmmov 0   ;;  %v2386_v6 = vmov 0.0   ;;  %vm94_vm1 = vcmask 195584   ;;  %s2889_s13 = inlined_call_operand.vmem [shape: f32[24,3], index: 13, kind: input, shape index: {}]   ;;  %s2890_s3 = inlined_call_operand.vmem [shape: f32[24,32], index: 3, kind: input, shape index: {}]   ;;  %s2891_s5 = inlined_call_operand.vmem [shape: f32[16,32], index: 5, kind: input, shape index: {}]   ;;  %s2892_s0 = inlined_call_operand.vmem [shape: f32[8,24], index: 0, kind: input, shape index: {}]   ;;  %s2893_s2 = inlined_call_operand.vmem [shape: f32[8,16], index: 2, kind: input, shape index: {}]   ;;  %s2894_s7 = inlined_call_operand.vmem [shape: f32[32,3], index: 7, kind: input, shape index: {}]   ;;  %s2895_s4 = inlined_call_operand.vmem [shape: f32[1,32], index: 4, kind: input, shape index: {}]   ;;  %s2896_s6 = inlined_call_operand.vmem [shape: f32[1,32], index: 6, kind: input, shape index: {}]   ;;  %s2897_s9 = inlined_call_operand.vmem [shape: f32[3,3], index: 9, kind: input, shape index: {}]   ;;  %s2898_s8 = inlined_call_operand.vmem [shape: f32[1,3], index: 8, kind: input, shape index: {}]   ;;  %s2899_s11 = inlined_call_operand.vmem [shape: f32[3,3], index: 11, kind: input, shape index: {}]   ;;  %s2900_s15 = inlined_call_operand.vmem [shape: f32[3,8,32], index: 15, kind: input, shape index: {}]   ;;  %s2901_s1 = inlined_call_operand.vmem [shape: f32[3,8,8], index: 1, kind: input, shape index: {}]   ;;  %s2902_s23 = inlined_call_operand.vmem [shape: f32[3,8,32], index: 23, kind: input, shape index: {}]   ;;  %s2903_s17 = inlined_call_operand.vmem [shape: f32[3,32,32], index: 17, kind: input, shape index: {}]   ;;  %s2904_s10 = inlined_call_operand.vmem [shape: f32[1,3], index: 10, kind: input, shape index: {}]   ;;  %s2905_s16 = inlined_call_operand.vmem [shape: f32[3,1,32], index: 16, kind: input, shape index: {}]   ;;  %s2906_s12 = inlined_call_operand.vmem [shape: f32[1,3], index: 12, kind: input, shape index: {}]   ;;  %s2907_s14 = inlined_call_operand.vmem [shape: f32[1,3], index: 14, kind: input, shape index: {}]   ;;  %s2908_s19 = inlined_call_operand.vmem [shape: f32[3,32,32], index: 19, kind: input, shape index: {}]   ;;  %s2909_s21 = inlined_call_operand.vmem [shape: f32[3,32,32], index: 21, kind: input, shape index: {}]   ;;  %s2910_s18 = inlined_call_operand.vmem [shape: f32[3,1,32], index: 18, kind: input, shape index: {}]   ;;  %s2911_s26 = inlined_call_operand.vmem [shape: f32[8,3], index: 26, kind: output, shape index: {1}]   ;;  %s2912_s20 = inlined_call_operand.vmem [shape: f32[3,1,32], index: 20, kind: input, shape index: {}]   ;;  %s2913_s22 = inlined_call_operand.vmem [shape: f32[3,1,32], index: 22, kind: input, shape index: {}]   ;;  %s2914_s24 = inlined_call_operand.vmem [shape: f32[3,1,32], index: 24, kind: input, shape index: {}]   ;;  %s2915_s25 = inlined_call_operand.vmem [shape: f32[8,32], index: 25, kind: output, shape index: {0}]  }
   0x1   :  { %2920 = sst [smem:[#allocation2_spill]] %s2889_s13  ;;  %2278 = vmatprep.subr.bf16.mxu0 %v2384_v0  ;;  %2281 = vmatprep.subr.bf16.mxu1 %v2384_v0  ;;  %vm250_vm2 = vcmask 130048   ;;  %vm350_vm3 = vcmask 261120   ;;  %vm436_vm5 = vcmask 1042432   ;;  %vm432_vm6 = vcmask 23552   ;;  %v695_v43 = vld [vmem:[%s2900_s15] sm:$0xff] }
   0x2   :  { %2921 = sst [smem:[#allocation3_spill]] %s2890_s3  ;;  %2109 = vmatprep.mubr.msk.f32.mxu0 %vm2385_vm0, %v2386_v6  ;;  %2118 = vmatprep.mubr.msk.f32.mxu1 %vm2385_vm0, %v2386_v6  ;;  %v612_v44 = vld [vmem:[%s2901_s1] sm:$0xff]  ;;  %vm621_vm7 = vcmask 64512   ;;  %v780_v47 = vld [vmem:[%s2903_s17 + $0x8] sm:$0xff]  ;;  %v781_v49 = vld [vmem:[%s2903_s17 + $0x10] sm:$0xff] }
   0x3   :  { %2922 = sst [smem:[#allocation4_spill]] %s2891_s5  ;;  %s2932_s5 = sld [smem:[#allocation3_spill]]  ;;  %v613_v45 = vld [vmem:[%s2902_s23] sm:$0xff]  ;;  %v782_v50 = vld [vmem:[%s2903_s17 + $0x18] sm:$0xff] }
   0x4   :  { %2923 = sst [smem:[#allocation5_spill]] %s2892_s0  ;;  %v779_v46 = vld [vmem:[%s2903_s17] sm:$0xff]  ;;  %v2297_v51 = vpack.c.bf16 %v782_v50, %v781_v49 }
   0x5   :  { %2924 = sst [smem:[#allocation6_spill]] %s2893_s2  ;;  %s2934_s2 = sld [smem:[#allocation5_spill]]  ;;  %v2294_v48 = vpack.c.bf16 %v780_v47, %v779_v46  ;;  %v1943_v52 = vld [vmem:[%s2904_s10] ss:$0 sm:$0xff] }
   0x6   :  { %2925 = sst [smem:[#allocation7_spill]] %s2894_s7  ;;  %s2935_s7 = sld [smem:[#allocation6_spill]]  ;;  %v1952_v59 = vld [vmem:[%s2905_s16] ss:$0 sm:$0xff] }
   0x7   :  { %2926 = sst [smem:[#allocation8_spill]] %s2895_s4  ;;  %v1972_v47 = vld [vmem:[%s2903_s17 + $0x20] sm:$0xff] }
   0x8   :  { %2927 = sst [smem:[#allocation9_spill]] %s2896_s6  ;;  %s2931_s6 = sld [smem:[#allocation2_spill]] }
   0x9   :  { %2928 = sst [smem:[#allocation10_spill]] %s2897_s9  ;;  %v168_v3 = vld [vmem:[%s2932_s5] sm:$0xff]  ;;  %v169_v5 = vld [vmem:[%s2932_s5 + $0x8] sm:$0xff]  ;;  %v170_v13 = vld [vmem:[%s2932_s5 + $0x10] sm:$0xff] }
   0xa   :  { %2929 = sst [smem:[#allocation11_spill]] %s2898_s8  ;;  %v2282_v7 = vpack.c.bf16 %v169_v5, %v168_v3  ;;  %s2937_s8 = sld [smem:[#allocation8_spill]] }
   0xb   :  { %2930 = sst [smem:[#allocation12_spill]] %s2899_s11  ;;  %v82_v11 = vld [vmem:[%s2934_s2] sm:$0xff]  ;;  %s2940_s27 = sld [smem:[#allocation11_spill]] }
   0xc   :  { %s2933_s11 = sld [smem:[#allocation4_spill]]  ;;  %2283 = vmatpush3.bf16.msra.mxu1 %v2282_v7  ;;  %v83_v14 = vld [vmem:[%s2935_s7] sm:$0xff]  ;;  %s2938_s7 = sld [smem:[#allocation9_spill]] }
   0xd   :  { %2116 = vmatprep.subr.mxu1 %v2386_v6  ;;  %s2941_s9 = sld [smem:[#allocation12_spill]]  ;;  %v1934_v7 = vld [vmem:[%s2907_s14] ss:$0 sm:$0xff] }
   0xe   :  { %v84_v1 = vld [vmem:[%s2931_s6] sm:$0xff]  ;;  %v85_v2 = vld [vmem:[%s2931_s6 + $0x8] sm:$0xff]  ;;  %v86_v10 = vld [vmem:[%s2931_s6 + $0x10] sm:$0xff] }
   0xf   :  { %v2279_v4 = vpack.c.bf16 %v85_v2, %v84_v1 }
  0x10   :  { %2117 = vmatpush3.msra.mxu1 %v170_v13  ;;  %v1936_v22 = vld [vmem:[%s2937_s8] ss:$0 sm:$0xff] }
  0x11   :  { %2280 = vmatpush3.bf16.msra.mxu0 %v2279_v4  ;;  %2119 = vmatmul.mubr.msk.f32.vlgmr.msra.gmra.mrb[0].mxu1 %vm94_vm1, %v82_v11  ;;  %v1941_v38 = vld [vmem:[%s2940_s27] ss:$0 sm:$0xff] }
  0x12   :  { %v248_v8 = vld [vmem:[%s2933_s11] sm:$0xff]  ;;  %v249_v9 = vld [vmem:[%s2933_s11 + $0x8] sm:$0xff]  ;;  %2107 = vmatprep.subr.mxu0 %v2386_v6  ;;  %2287 = vmatprep.subr.bf16.mxu1 %v2384_v0  ;;  %s2936_s11 = sld [smem:[#allocation7_spill]] }
  0x13   :  { %v2285_v12 = vpack.c.bf16 %v249_v9, %v248_v8  ;;  %2136 = vmatprep.mubr.msk.f32.mxu1 %vm2385_vm0, %v2386_v6  ;;  %v1939_v28 = vld [vmem:[%s2938_s7] ss:$0 sm:$0xff] }
  0x14   :  { %v516_v42 = vld [vmem:[%s2941_s9] sm:$0x7] }
  0x15   :  { %2108 = vmatpush3.msra.mxu0 %v86_v10  ;;  %v1947_v4 = vld [vmem:[%s2906_s12] ss:$0 sm:$0xff] }
  0x16   :  { %2110 = vmatmul.mubr.msk.f32.vlgmr.msra.gmra.mrb[0].mxu0 %vm94_vm1, %v82_v11  ;;  %2284 = vmatprep.subr.bf16.mxu0 %v2384_v0 }
  0x17   :  { %2286 = vmatpush3.bf16.msra.mxu0 %v2285_v12  ;;  %2125 = vmatprep.mubr.msk.f32.mxu0 %vm2385_vm0, %v2386_v6 }
  0x18   :  { %2139 = vmatprep.subr.mxu0 %v2386_v6  ;;  %v339_v15 = vld [vmem:[%s2936_s11] sm:$0xff]  ;;  %v340_v16 = vld [vmem:[%s2936_s11 + $0x8] sm:$0xff]  ;;  %v341_v17 = vld [vmem:[%s2936_s11 + $0x10] sm:$0xff] }
  0x19   :  { %v2288_v18 = vpack.c.bf16 %v340_v16, %v339_v15  ;;  %v342_v19 = vld [vmem:[%s2936_s11 + $0x18] sm:$0xff]  ;;  %s2939_s11 = sld [smem:[#allocation10_spill]] }
  0x1a   :  { %2126 = vmatmul.mubr.msk.f32.vlgmr.msra.gmra.mrb[2].mxu0 %vm250_vm2, %v83_v14  ;;  %v2291_v20 = vpack.c.bf16 %v342_v19, %v341_v17  ;;  %v863_v17 = vld [vmem:[%s2908_s19] sm:$0xff] }
  0x1b   :  { %2141 = vmatprep.mubr.msk.f32.mxu0 %vm2385_vm0, %v2386_v6  ;;  %2289 = vmatpush3.bf16.msra.mxu1 %v2288_v18  ;;  %v864_v18 = vld [vmem:[%s2908_s19 + $0x8] sm:$0xff] }
  0x1c   :  { %2290 = vmatprep.subr.bf16.mxu1 %v2384_v0  ;;  %v2300_v19 = vpack.c.bf16 %v864_v18, %v863_v17  ;;  %v1950_v17 = vld [vmem:[%s2914_s24] ss:$0 sm:$0xff] }
  0x1f   :  { %2292 = vmatpush3.bf16.msra.mxu1 %v2291_v20  ;;  %v424_v37 = vld [vmem:[%s2939_s11] sm:$0x7] }
  0x20   :  { %2149 = vmatprep.subr.mxu1 %v2386_v6  ;;  %2140 = vmatpush3.msk.msra.mxu0 %vm436_vm5, %v424_v37  ;;  %v953_v20 = vld [vmem:[%s2909_s21] sm:$0xff]  ;;  %v2388_v37 = vmov 0  }
  0x21   :  { %2144 = vmatprep.subr.mxu0 %v2386_v6  ;;  %2353 = vset.pattern.permute.xlu1 %v2388_v37  ;;  %v1994_v37 = vld [vmem:[%s2901_s1 + $0x10] sm:$0xff] }
  0xe4   :  { %v244_v24 = vpop.f32.mrb[0].mxu1 }
  0xe5   :  { %v245_v25 = vadd.f32 %v1936_v22, %v244_v24  ;;  %v2120_v26 = vpop.f32.mrb[1].mxu1 }
  0xe6   :  { %v866_v26 = vld [vmem:[%s2908_s19 + $0x18] sm:$0xff] }
  0xe9   :  { %v2586_v21 = vpop.f32.mrb[0].mxu0 }
  0xea   :  { %v2111_v23 = vpop.f32.mrb[1].mxu0  ;;  %v165_v12 = vadd.f32 %v1934_v7, %v2586_v21  ;;  %v954_v21 = vld [vmem:[%s2909_s21 + $0x8] sm:$0xff] }
  0xeb   :  { %v2306_v22 = vpack.c.bf16 %v954_v21, %v953_v20 }
  0xed   :  { %v320_v27 = vpop.f32.mrb[2].mxu0 }
  0xee   :  { %v324_v29 = vadd.f32 %v320_v27, %v245_v25  ;;  %v2127_v30 = vpop.f32.mrb[3].mxu0  ;;  %v865_v25 = vld [vmem:[%s2908_s19 + $0x10] sm:$0xff] }
  0xef   :  { %v955_v27 = vld [vmem:[%s2909_s21 + $0x10] sm:$0xff] }
  0xf0   :  { %v332_v31 = vadd.f32 %v1939_v28, %v324_v29  ;;  %v2303_v28 = vpack.c.bf16 %v866_v26, %v865_v25  ;;  %v956_v29 = vld [vmem:[%s2909_s21 + $0x18] sm:$0xff] }
  0xf1   :  { %v2309_v30 = vpack.c.bf16 %v956_v29, %v955_v27  ;;  %v1981_v27 = vld [vmem:[%s2908_s19 + $0x30] sm:$0xff] }
  0xf2   :  { %v334_v32 = vmin.f32 %v332_v31, 0.0  ;;  %vm333_vm4 = vcmp.gt.f32.partialorder %v332_v31, 0.0 }
  0xf4   :  { %v335_v33 = vmul.f32 1.442695, %v334_v32 }
  0xf6   :  { %2356 = vpow2.f32 %v335_v33 }
 0x100   :  { %v2357_v34 = vpop.eup %2356 }
 0x101   :  { %v1940_v35 = vadd.f32 -1.0, %v2357_v34 }
 0x103   :  { %v338_v36 = vsel %vm333_vm4, %v332_v31, %v1940_v35 }
 0x104   :  { %2137 = vmatmul.mubr.msk.f32.vlgmr.msra.gmra.mrb[2].mxu1 %vm350_vm3, %v338_v36  ;;  %v2387_v36 = vmov 2  }
 0x105   :  { %2151 = vmatprep.mubr.msk.f32.mxu1 %vm2385_vm0, %v2386_v6  ;;  %2150 = vmatpush3.msra.mxu1 %v613_v45 }
 0x106   :  { %2293 = vmatprep.subr.bf16.mxu1 %v2384_v0  ;;  %2355 = vset.pattern.permute.xlu0 %v2387_v36  ;;  %v1995_v36 = vld [vmem:[%s2902_s23 + $0x10] sm:$0xff] }
 0x108   :  { %2152 = vmatmul.mubr.msk.f32.vlgmr.msra.gmra.mrb[4].mxu1 %vm621_vm7, %v612_v44 }
 0x109   :  { %2295 = vmatpush3.bf16.msra.mxu1 %v2294_v48  ;;  %2167 = vmatprep.mubr.msk.f32.mxu1 %vm2385_vm0, %v2386_v6  ;;  %v1973_v48 = vld [vmem:[%s2903_s17 + $0x28] sm:$0xff] }
 0x10a   :  { %2296 = vmatprep.subr.bf16.mxu1 %v2384_v0  ;;  %v2312_v50 = vpack.c.bf16 %v1973_v48, %v1972_v47  ;;  %v1984_v48 = vld [vmem:[%s2912_s20 + $0x1] ss:$0 sm:$0xff] }
 0x10d   :  { %2298 = vmatpush3.bf16.msra.mxu1 %v2297_v51  ;;  %v1974_v51 = vld [vmem:[%s2903_s17 + $0x30] sm:$0xff] }
 0x10e   :  { %2305 = vmatprep.subr.bf16.mxu1 %v2384_v0 }
 0x1d7   :  { %v420_v39 = vpop.f32.mrb[2].mxu1 }
 0x1d8   :  { %v421_v40 = vadd.f32 %v1941_v38, %v420_v39  ;;  %v2138_v41 = vpop.f32.mrb[3].mxu1  ;;  %v1955_v38 = vld [vmem:[%s2910_s18] ss:$0 sm:$0xff] }
 0x1da   :  { %2142 = vmatmul.mubr.msk.f32.vlgmr.msra.gmra.mrb[4].mxu0 %vm432_vm6, %v421_v40 }
 0x1db   :  { %2145 = vmatpush3.msk.msra.mxu0 %vm436_vm5, %v516_v42  ;;  %2146 = vmatprep.mubr.msk.f32.mxu0 %vm2385_vm0, %v2386_v6  ;;  %v2676_v23 = vpop.f32.mrb[4].mxu1  ;;  %v1963_v42 = vld [vmem:[%s2902_s23 + $0x8] sm:$0xff] }
 0x1dc   :  { %2154 = vmatprep.subr.mxu0 %v2386_v6  ;;  %v2153_v24 = vpop.f32.mrb[5].mxu1 }
 0x1dd   :  { %v692_v24 = vadd.f32 %v1950_v17, %v2676_v23  ;;  %v1989_v23 = vld [vmem:[%s2909_s21 + $0x30] sm:$0xff] }
 0x1de   :  { %2147 = vmatmul.mubr.msk.f32.vlgmr.msra.gmra.mrb[6].mxu0 %vm432_vm6, %v421_v40 }
 0x1df   :  { %2155 = vmatpush3.msra.mxu0 %v695_v43  ;;  %2156 = vmatprep.mubr.msk.f32.mxu0 %vm2385_vm0, %v2386_v6  ;;  %v1962_v43 = vld [vmem:[%s2901_s1 + $0x8] sm:$0xff] }
 0x1e0   :  { %2299 = vmatprep.subr.bf16.mxu0 %v2384_v0 }
 0x1e2   :  { %2157 = vmatmul.mubr.msk.f32.vlgmr.msra.gmra.mrb[8].mxu0 %vm621_vm7, %v612_v44  ;;  %v1967_v44 = vld [vmem:[%s2900_s15 + $0x8] sm:$0xff] }
 0x1e3   :  { %2178 = vmatprep.mubr.msk.f32.mxu0 %vm2385_vm0, %v2386_v6  ;;  %2301 = vmatpush3.bf16.msra.mxu0 %v2300_v19 }
 0x1e4   :  { %2302 = vmatprep.subr.bf16.mxu0 %v2384_v0 }
 0x1e7   :  { %2304 = vmatpush3.bf16.msra.mxu0 %v2303_v28  ;;  %v1982_v28 = vld [vmem:[%s2908_s19 + $0x38] sm:$0xff] }
 0x1e8   :  { %2192 = vmatprep.subr.mxu0 %v2386_v6  ;;  %v2321_v29 = vpack.c.bf16 %v1982_v28, %v1981_v27  ;;  %v2009_v28 = vld [vmem:[%s2910_s18 + $0x2] ss:$0 sm:$0xff] }
 0x2ad   :  { %v506_v53 = vpop.f32.mrb[4].mxu0 }
 0x2ae   :  { %v507_v54 = vadd.f32 %v1943_v52, %v506_v53  ;;  %v2143_v55 = vpop.f32.mrb[5].mxu0  ;;  %v1975_v52 = vld [vmem:[%s2903_s17 + $0x38] sm:$0xff] }
 0x2af   :  { %v2315_v53 = vpack.c.bf16 %v1975_v52, %v1974_v51  ;;  %v1979_v55 = vld [vmem:[%s2908_s19 + $0x20] sm:$0xff] }
 0x2b0   :  { %v1946_v56 = vmul.f32 -1.442695, %v507_v54  ;;  %v2389_v54 = vmov 1  }
 0x2b1   :  { %v593_v57 = vpop.f32.mrb[6].mxu0 }
 0x2b2   :  { %2358 = vpow2.f32 %v1946_v56  ;;  %v2148_v58 = vpop.f32.mrb[7].mxu0  ;;  %v594_v9 = vadd.f32 %v1947_v4, %v593_v57  ;;  %v1980_v56 = vld [vmem:[%s2908_s19 + $0x28] sm:$0xff]  ;;  %v1969_v4 = vld [vmem:[%s2905_s16 + $0x1] ss:$0 sm:$0xff] }
 0x2b3   :  { %v2318_v57 = vpack.c.bf16 %v1980_v56, %v1979_v55  ;;  %v1957_v58 = vld [vmem:[%s2912_s20] ss:$0 sm:$0xff] }
 0x2b5   :  { %v769_v60 = vpop.f32.mrb[8].mxu0 }
 0x2b6   :  { %v770_v61 = vadd.f32 %v1952_v59, %v769_v60  ;;  %v2158_v62 = vpop.f32.mrb[9].mxu0 }
 0x2b8   :  { %v774_v63 = vmin.f32 %v770_v61, 0.0  ;;  %vm773_vm8 = vcmp.gt.f32.partialorder %v770_v61, 0.0 }
 0x2ba   :  { %v775_v1 = vmul.f32 1.442695, %v774_v63 }
 0x2bc   :  { %v2359_v2 = vpop.eup %2358  ;;  %2360 = vpow2.f32 %v775_v1 }
 0x2bd   :  { %v513_v3 = vadd.f32 1.0, %v2359_v2 }
 0x2bf   :  { %2362 = vrcp.f32 %v513_v3 }
 0x2c6   :  { %v2361_v5 = vpop.eup %2360 }
 0x2c7   :  { %v1954_v8 = vadd.f32 -1.0, %v2361_v5 }
 0x2c9   :  { %v2363_v10 = vpop.eup %2362  ;;  %v778_v11 = vsel %vm773_vm8, %v770_v61, %v1954_v8 }
 0x2ca   :  { %v597_v13 = vmul.f32 %v2363_v10, %v594_v9  ;;  %2168 = vmatmul.mubr.msk.f32.vlgmr.msra.gmra.mrb[6].mxu1 %vm350_vm3, %v778_v11 }
 0x2cb   :  { %2189 = vmatprep.mubr.msk.f32.mxu1 %vm2385_vm0, %v2386_v6  ;;  %2307 = vmatpush3.bf16.msra.mxu1 %v2306_v22 }
 0x2cc   :  { %v598_v14 = vadd.f32 %v597_v13, %v165_v12  ;;  %2308 = vmatprep.subr.bf16.mxu1 %v2384_v0  ;;  %v1987_v13 = vld [vmem:[%s2909_s21 + $0x20] sm:$0xff] }
 0x2ce   :  { %v599_v15 = vmul.f32 0.999995, %v598_v14  ;;  %v1988_v14 = vld [vmem:[%s2909_s21 + $0x28] sm:$0xff] }
 0x2cf   :  { %2310 = vmatpush3.bf16.msra.mxu1 %v2309_v30  ;;  %v2324_v19 = vpack.c.bf16 %v1988_v14, %v1987_v13  ;;  %v1990_v30 = vld [vmem:[%s2909_s21 + $0x38] sm:$0xff] }
 0x2d0   :  { %v600_v16 = vsel %vm432_vm6, %v599_v15, -inf  ;;  %2311 = vmatprep.subr.bf16.mxu1 %v2384_v0 }
 0x2d1   :  { %601 = vmax.xlane.f32.xlu0 %v600_v16 }
 0x35e   :  { %v602_v31 = vpop.xlane.xlu0 %601 }
 0x35f   :  { %v603_v32 = vsub.f32 %v599_v15, %v602_v31  ;;  %v1960_v15 = vld [vmem:[%s2913_s22] ss:$0 sm:$0xff]  ;;  %v2327_v31 = vpack.c.bf16 %v1990_v30, %v1989_v23 }
 0x361   :  { %v604_v33 = vmul.f32 1.442695, %v603_v32  ;;  %v1977_v32 = vld [vmem:[%s2910_s18 + $0x1] ss:$0 sm:$0xff] }
 0x363   :  { %2364 = vpow2.f32 %v604_v33 }
 0x36d   :  { %v2365_v34 = vpop.eup %2364 }
 0x36e   :  { %v606_v35 = vsel %vm432_vm6, %v2365_v34, 0.0 }
 0x36f   :  { %607 = vadd.xlane.f32.xlu0 %v606_v35 }
 0x39d   :  { %v859_v39 = vpop.f32.mrb[6].mxu1 }
 0x39e   :  { %v860_v40 = vadd.f32 %v1955_v38, %v859_v39  ;;  %v2169_v41 = vpop.f32.mrb[7].mxu1  ;;  %v1999_v38 = vld [vmem:[%s2900_s15 + $0x10] sm:$0xff]  ;;  %v2004_v39 = vld [vmem:[%s2903_s17 + $0x40] sm:$0xff] }
 0x3a0   :  { %2179 = vmatmul.mubr.msk.f32.vlgmr.msra.gmra.mrb[10].mxu0 %vm350_vm3, %v860_v40  ;;  %2190 = vmatmul.mubr.msk.f32.vlgmr.msra.gmra.mrb[8].mxu1 %vm350_vm3, %v860_v40  ;;  %v2005_v40 = vld [vmem:[%s2903_s17 + $0x48] sm:$0xff] }
 0x3a1   :  { %2193 = vmatpush3.msra.mxu0 %v1963_v42  ;;  %2194 = vmatprep.mubr.msk.f32.mxu0 %vm2385_vm0, %v2386_v6  ;;  %v2330_v41 = vpack.c.bf16 %v2005_v40, %v2004_v39  ;;  %v2006_v42 = vld [vmem:[%s2903_s17 + $0x50] sm:$0xff]  ;;  %v2024_v40 = vld [vmem:[%s2913_s22 + $0x2] ss:$0 sm:$0xff] }
 0x3a2   :  { %2197 = vmatprep.subr.mxu0 %v2386_v6  ;;  %2210 = vmatprep.mubr.msk.f32.mxu1 %vm2385_vm0, %v2386_v6 }
 0x3a3   :  { %2313 = vmatpush3.bf16.msra.mxu1 %v2312_v50 }
 0x3a4   :  { %2195 = vmatmul.mubr.msk.f32.vlgmr.msra.gmra.mrb[12].mxu0 %vm621_vm7, %v1962_v43  ;;  %2314 = vmatprep.subr.bf16.mxu1 %v2384_v0 }
 0x3a5   :  { %2198 = vmatpush3.msra.mxu0 %v1967_v44  ;;  %2199 = vmatprep.mubr.msk.f32.mxu0 %vm2385_vm0, %v2386_v6 }
 0x3a6   :  { %2317 = vmatprep.subr.bf16.mxu0 %v2384_v0 }
 0x3a7   :  { %2316 = vmatpush3.bf16.msra.mxu1 %v2315_v53 }
 0x3a8   :  { %2200 = vmatmul.mubr.msk.f32.vlgmr.msra.gmra.mrb[14].mxu0 %vm621_vm7, %v1962_v43  ;;  %2323 = vmatprep.subr.bf16.mxu1 %v2384_v0  ;;  %v2007_v43 = vld [vmem:[%s2903_s17 + $0x58] sm:$0xff] }
 0x3a9   :  { %2221 = vmatprep.mubr.msk.f32.mxu0 %vm2385_vm0, %v2386_v6  ;;  %2319 = vmatpush3.bf16.msra.mxu0 %v2318_v57  ;;  %v2333_v44 = vpack.c.bf16 %v2007_v43, %v2006_v42  ;;  %v2001_v57 = vld [vmem:[%s2905_s16 + $0x2] ss:$0 sm:$0xff] }
 0x3aa   :  { %2320 = vmatprep.subr.bf16.mxu0 %v2384_v0 }
 0x3ad   :  { %2322 = vmatpush3.bf16.msra.mxu0 %v2321_v29 }
 0x3ae   :  { %2235 = vmatprep.subr.mxu0 %v2386_v6 }
 0x3fc   :  { %v608_v45 = vpop.xlane.xlu0 %607 }
 0x3fd   :  { %2366 = vrcp.f32 %v608_v45  ;;  %v2011_v45 = vld [vmem:[%s2908_s19 + $0x40] sm:$0xff] }
 0x407   :  { %v2367_v46 = vpop.eup %2366 }
 0x408   :  { %v610_v49 = vmul.f32 %v2367_v46, %v2365_v34  ;;  %v2012_v46 = vld [vmem:[%s2908_s19 + $0x48] sm:$0xff] }
 0x409   :  { %v2336_v47 = vpack.c.bf16 %v2012_v46, %v2011_v45 }
 0x40a   :  { %1920 = vperm.xlu0 %2355, %v610_v49   ;;  %611 = vst.msk [vmem:[%s2911_s26] sm:$0xff] %vm432_vm6, %v610_v49  ;;  %1039 = vperm.xlu1 %2353, %v610_v49  }
 0x40e   :  { %2354 = vset.pattern.permute.xlu1 %v2389_v54 }
 0x40f   :  { %1479 = vperm.xlu1 %2354, %v610_v49  }
 0x473   :  { %v943_v59 = vpop.f32.mrb[10].mxu0  ;;  %v1030_v60 = vpop.f32.mrb[8].mxu1 }
 0x474   :  { %v944_v61 = vadd.f32 %v1957_v58, %v943_v59  ;;  %v2180_v62 = vpop.f32.mrb[11].mxu0  ;;  %v2191_v63 = vpop.f32.mrb[9].mxu1  ;;  %v1031_v20 = vadd.f32 %v1960_v15, %v1030_v60 }
 0x476   :  { %v1959_v1 = vmul.f32 -1.442695, %v944_v61 }
 0x477   :  { %v2747_v2 = vpop.f32.mrb[12].mxu0 }
 0x478   :  { %2368 = vpow2.f32 %v1959_v1  ;;  %v2196_v3 = vpop.f32.mrb[13].mxu0 }
 0x479   :  { %v2019_v3 = vld [vmem:[%s2909_s21 + $0x40] sm:$0xff] }
 0x47b   :  { %v1204_v5 = vpop.f32.mrb[14].mxu0 }
 0x47c   :  { %v1205_v7 = vadd.f32 %v1969_v4, %v1204_v5  ;;  %v2201_v8 = vpop.f32.mrb[15].mxu0  ;;  %v2020_v4 = vld [vmem:[%s2909_s21 + $0x48] sm:$0xff]  ;;  %v1992_v5 = vld [vmem:[%s2913_s22 + $0x1] ss:$0 sm:$0xff] }
 0x47d   :  { %v1965_v8 = vld [vmem:[%s2914_s24 + $0x1] ss:$0 sm:$0xff] }
 0x47e   :  { %v1209_v9 = vmin.f32 %v1205_v7, 0.0  ;;  %vm1208_vm9 = vcmp.gt.f32.partialorder %v1205_v7, 0.0  ;;  %v1125_v15 = vadd.f32 %v1965_v8, %v2747_v2  ;;  %v2013_v2 = vld [vmem:[%s2908_s19 + $0x50] sm:$0xff] }
 0x480   :  { %v1210_v10 = vmul.f32 1.442695, %v1209_v9 }
 0x482   :  { %v2369_v11 = vpop.eup %2368  ;;  %2370 = vpow2.f32 %v1210_v10  ;;  %v2342_v10 = vpack.c.bf16 %v2020_v4, %v2019_v3 }
 0x483   :  { %v950_v12 = vadd.f32 1.0, %v2369_v11 }
 0x485   :  { %2372 = vrcp.f32 %v950_v12 }
 0x489   :  { %v1040_v13 = vpop.permute.xlu1 %1039 }
 0x48c   :  { %v2371_v16 = vpop.eup %2370 }
 0x48d   :  { %v1971_v18 = vadd.f32 -1.0, %v2371_v16 }
 0x48f   :  { %v2373_v21 = vpop.eup %2372  ;;  %v1213_v22 = vsel %vm1208_vm9, %v1205_v7, %v1971_v18 }
 0x490   :  { %v1034_v25 = vmul.f32 %v2373_v21, %v1031_v20  ;;  %2211 = vmatmul.mubr.msk.f32.vlgmr.msra.gmra.mrb[10].mxu1 %vm350_vm3, %v1213_v22  ;;  %v1480_v20 = vpop.permute.xlu1 %1479 }
 0x491   :  { %2325 = vmatpush3.bf16.msra.mxu1 %v2324_v19  ;;  %2232 = vmatprep.mubr.msk.f32.mxu1 %vm2385_vm0, %v2386_v6 }
 0x492   :  { %v2768_v26 = vadd.f32 %v1034_v25, %v692_v24  ;;  %2326 = vmatprep.subr.bf16.mxu1 %v2384_v0  ;;  %v2014_v25 = vld [vmem:[%s2908_s19 + $0x58] sm:$0xff] }
 0x494   :  { %v1036_v17 = vmul.f32 0.999995, %v2768_v26  ;;  %v2339_v26 = vpack.c.bf16 %v2014_v25, %v2013_v2 }
 0x495   :  { %2328 = vmatpush3.bf16.msra.mxu1 %v2327_v31  ;;  %v2016_v31 = vld [vmem:[%s2912_s20 + $0x2] ss:$0 sm:$0xff] }
 0x496   :  { %2329 = vmatprep.subr.bf16.mxu1 %v2384_v0  ;;  %v1042_v21 = vmul.f32 %v1040_v13, %v1036_v17 }
 0x563   :  { %v1296_v33 = vpop.f32.mrb[10].mxu1 }
 0x564   :  { %v1297_v34 = vadd.f32 %v1977_v32, %v1296_v33  ;;  %v2212_v35 = vpop.f32.mrb[11].mxu1 }
 0x566   :  { %2222 = vmatmul.mubr.msk.f32.vlgmr.msra.gmra.mrb[16].mxu0 %vm350_vm3, %v1297_v34  ;;  %2233 = vmatmul.mubr.msk.f32.vlgmr.msra.gmra.mrb[12].mxu1 %vm350_vm3, %v1297_v34 }
 0x567   :  { %2236 = vmatpush3.msra.mxu0 %v1995_v36  ;;  %2237 = vmatprep.mubr.msk.f32.mxu0 %vm2385_vm0, %v2386_v6 }
 0x568   :  { %2240 = vmatprep.subr.mxu0 %v2386_v6  ;;  %2253 = vmatprep.mubr.msk.f32.mxu1 %vm2385_vm0, %v2386_v6 }
 0x569   :  { %2331 = vmatpush3.bf16.msra.mxu1 %v2330_v41  ;;  %v1997_v41 = vld [vmem:[%s2914_s24 + $0x2] ss:$0 sm:$0xff] }
 0x56a   :  { %2238 = vmatmul.mubr.msk.f32.vlgmr.msra.gmra.mrb[18].mxu0 %vm621_vm7, %v1994_v37  ;;  %2332 = vmatprep.subr.bf16.mxu1 %v2384_v0 }
 0x56b   :  { %2241 = vmatpush3.msra.mxu0 %v1999_v38  ;;  %2242 = vmatprep.mubr.msk.f32.mxu0 %vm2385_vm0, %v2386_v6 }
 0x56c   :  { %2335 = vmatprep.subr.bf16.mxu0 %v2384_v0 }
 0x56d   :  { %2334 = vmatpush3.bf16.msra.mxu1 %v2333_v44 }
 0x56e   :  { %2243 = vmatmul.mubr.msk.f32.vlgmr.msra.gmra.mrb[20].mxu0 %vm621_vm7, %v1994_v37  ;;  %2341 = vmatprep.subr.bf16.mxu1 %v2384_v0 }
 0x56f   :  { %2264 = vmatprep.mubr.msk.f32.mxu0 %vm2385_vm0, %v2386_v6  ;;  %2337 = vmatpush3.bf16.msra.mxu0 %v2336_v47 }
 0x570   :  { %2338 = vmatprep.subr.bf16.mxu0 %v2384_v0 }
 0x573   :  { %2340 = vmatpush3.bf16.msra.mxu0 %v2339_v26 }
 0x639   :  { %v1382_v49 = vpop.f32.mrb[16].mxu0  ;;  %v1471_v50 = vpop.f32.mrb[12].mxu1 }
 0x63a   :  { %v1383_v51 = vadd.f32 %v1984_v48, %v1382_v49  ;;  %v2223_v52 = vpop.f32.mrb[17].mxu0  ;;  %v2234_v53 = vpop.f32.mrb[13].mxu1  ;;  %v1472_v11 = vadd.f32 %v1992_v5, %v1471_v50 }
 0x63b   :  { %v1921_v48 = vpop.permute.xlu0 %1920 }
 0x63c   :  { %v1986_v54 = vmul.f32 -1.442695, %v1383_v51 }
 0x63d   :  { %v2835_v55 = vpop.f32.mrb[18].mxu0 }
 0x63e   :  { %2374 = vpow2.f32 %v1986_v54  ;;  %v2239_v56 = vpop.f32.mrb[19].mxu0  ;;  %v1566_v44 = vadd.f32 %v1997_v41, %v2835_v55 }
 0x641   :  { %v1645_v58 = vpop.f32.mrb[20].mxu0 }
 0x642   :  { %v1646_v59 = vadd.f32 %v2001_v57, %v1645_v58  ;;  %v2244_v60 = vpop.f32.mrb[21].mxu0 }
 0x644   :  { %v1650_v61 = vmin.f32 %v1646_v59, 0.0  ;;  %vm1649_vm10 = vcmp.gt.f32.partialorder %v1646_v59, 0.0 }
 0x646   :  { %v1651_v62 = vmul.f32 1.442695, %v1650_v61 }
 0x648   :  { %v2375_v63 = vpop.eup %2374  ;;  %2376 = vpow2.f32 %v1651_v62 }
 0x649   :  { %v1389_v1 = vadd.f32 1.0, %v2375_v63 }
 0x64b   :  { %2378 = vrcp.f32 %v1389_v1 }
 0x652   :  { %v2377_v7 = vpop.eup %2376 }
 0x653   :  { %v2003_v9 = vadd.f32 -1.0, %v2377_v7 }
 0x655   :  { %v2379_v12 = vpop.eup %2378  ;;  %v1654_v14 = vsel %vm1649_vm10, %v1646_v59, %v2003_v9 }
 0x656   :  { %v1475_v16 = vmul.f32 %v2379_v12, %v1472_v11  ;;  %2254 = vmatmul.mubr.msk.f32.vlgmr.msra.gmra.mrb[14].mxu1 %vm350_vm3, %v1654_v14 }
 0x657   :  { %2343 = vmatpush3.bf16.msra.mxu1 %v2342_v10  ;;  %2275 = vmatprep.mubr.msk.f32.mxu1 %vm2385_vm0, %v2386_v6  ;;  %v2021_v6 = vld [vmem:[%s2909_s21 + $0x50] sm:$0xff] }
 0x658   :  { %v1476_v18 = vadd.f32 %v1475_v16, %v1125_v15  ;;  %2344 = vmatprep.subr.bf16.mxu1 %v2384_v0  ;;  %v2022_v0 = vld [vmem:[%s2909_s21 + $0x58] sm:$0xff] }
 0x659   :  { %v2345_v27 = vpack.c.bf16 %v2022_v0, %v2021_v6 }
 0x65a   :  { %v1477_v19 = vmul.f32 0.999995, %v1476_v18 }
 0x65b   :  { %2346 = vmatpush3.bf16.msra.mxu1 %v2345_v27 }
 0x65c   :  { %v1482_v22 = vmul.f32 %v1480_v20, %v1477_v19 }
 0x65e   :  { %v1483_v24 = vadd.f32 %v1482_v22, %v1042_v21 }
 0x729   :  { %v1737_v23 = vpop.f32.mrb[14].mxu1 }
 0x72a   :  { %v1738_v29 = vadd.f32 %v2009_v28, %v1737_v23  ;;  %v2255_v30 = vpop.f32.mrb[15].mxu1 }
 0x72c   :  { %2265 = vmatmul.mubr.msk.f32.vlgmr.msra.gmra.mrb[22].mxu0 %vm350_vm3, %v1738_v29  ;;  %2276 = vmatmul.mubr.msk.f32.vlgmr.msra.gmra.mrb[16].mxu1 %vm350_vm3, %v1738_v29 }
 0x7ff   :  { %v1823_v32 = vpop.f32.mrb[22].mxu0  ;;  %v1912_v33 = vpop.f32.mrb[16].mxu1 }
 0x800   :  { %v1824_v34 = vadd.f32 %v2016_v31, %v1823_v32  ;;  %v2266_v35 = vpop.f32.mrb[23].mxu0  ;;  %v2277_v36 = vpop.f32.mrb[17].mxu1  ;;  %v1913_v42 = vadd.f32 %v2024_v40, %v1912_v33 }
 0x802   :  { %v2018_v37 = vmul.f32 -1.442695, %v1824_v34 }
 0x804   :  { %2380 = vpow2.f32 %v2018_v37 }
 0x80e   :  { %v2381_v38 = vpop.eup %2380 }
 0x80f   :  { %v1830_v39 = vadd.f32 1.0, %v2381_v38 }
 0x811   :  { %2382 = vrcp.f32 %v1830_v39 }
 0x81b   :  { %v2383_v43 = vpop.eup %2382 }
 0x81c   :  { %v1916_v45 = vmul.f32 %v2383_v43, %v1913_v42 }
 0x81e   :  { %v1917_v46 = vadd.f32 %v1916_v45, %v1566_v44 }
 0x820   :  { %v1918_v47 = vmul.f32 0.999995, %v1917_v46 }
 0x822   :  { %v1923_v49 = vmul.f32 %v1921_v48, %v1918_v47 }
 0x824   :  { %v1924_v50 = vadd.f32 %v1923_v49, %v1483_v24 }
 0x826   :  { %1925 = vst.msk [vmem:[%s2915_s25] sm:$0xff] %vm350_vm3, %v1924_v50 }

// kernel: _lambda_.6
= control target key start
LH: loop header
LB: loop body
LE: loop exit
PB: predicated region body
PF: predicated region fallthrough
CT: control target
= control target key end

     0   :  { %vm97_vm0 = vcmask 261120   ;;  %vm267_vm1 = vcmask 130048   ;;  %vm479_vm4 = vcmask 1043456   ;;  %vm472_vm5 = vcmask 31744   ;;  %s3975_s3 = inlined_call_operand.vmem [shape: f32[32,32], index: 3, kind: input, shape index: {}]   ;;  %s3976_s0 = inlined_call_operand.vmem [shape: f32[16,32], index: 0, kind: input, shape index: {}]   ;;  %s3977_s5 = inlined_call_operand.vmem [shape: f32[16,32], index: 5, kind: input, shape index: {}]   ;;  %s3978_s2 = inlined_call_operand.vmem [shape: f32[16,16], index: 2, kind: input, shape index: {}]   ;;  %s3979_s13 = inlined_call_operand.vmem [shape: f32[32,4], index: 13, kind: input, shape index: {}]   ;;  %s3980_s7 = inlined_call_operand.vmem [shape: f32[32,4], index: 7, kind: input, shape index: {}]   ;;  %s3981_s4 = inlined_call_operand.vmem [shape: f32[1,32], index: 4, kind: input, shape index: {}]   ;;  %s3982_s6 = inlined_call_operand.vmem [shape: f32[1,32], index: 6, kind: input, shape index: {}]   ;;  %s3983_s11 = inlined_call_operand.vmem [shape: f32[4,4], index: 11, kind: input, shape index: {}]   ;;  %s3984_s9 = inlined_call_operand.vmem [shape: f32[4,4], index: 9, kind: input, shape index: {}]   ;;  %s3985_s15 = inlined_call_operand.vmem [shape: f32[4,8,32], index: 15, kind: input, shape index: {}]   ;;  %s3986_s8 = inlined_call_operand.vmem [shape: f32[1,4], index: 8, kind: input, shape index: {}]   ;;  %s3987_s1 = inlined_call_operand.vmem [shape: f32[4,16,8], index: 1, kind: input, shape index: {}]   ;;  %s3988_s23 = inlined_call_operand.vmem [shape: f32[4,8,32], index: 23, kind: input, shape index: {}]   ;;  %s3989_s17 = inlined_call_operand.vmem [shape: f32[4,32,32], index: 17, kind: input, shape index: {}]   ;;  %s3990_s10 = inlined_call_operand.vmem [shape: f32[1,4], index: 10, kind: input, shape index: {}]   ;;  %s3991_s16 = inlined_call_operand.vmem [shape: f32[4,1,32], index: 16, kind: input, shape index: {}]   ;;  %s3992_s12 = inlined_call_operand.vmem [shape: f32[1,4], index: 12, kind: input, shape index: {}]   ;;  %s3993_s14 = inlined_call_operand.vmem [shape: f32[1,4], index: 14, kind: input, shape index: {}]   ;;  %s3994_s19 = inlined_call_operand.vmem [shape: f32[4,32,32], index: 19, kind: input, shape index: {}]   ;;  %s3995_s21 = inlined_call_operand.vmem [shape: f32[4,32,32], index: 21, kind: input, shape index: {}]   ;;  %s3996_s18 = inlined_call_operand.vmem [shape: f32[4,1,32], index: 18, kind: input, shape index: {}]   ;;  %s3997_s26 = inlined_call_operand.vmem [shape: f32[16,4], index: 26, kind: output, shape index: {1}]   ;;  %s3998_s20 = inlined_call_operand.vmem [shape: f32[4,1,32], index: 20, kind: input, shape index: {}]   ;;  %s3999_s22 = inlined_call_operand.vmem [shape: f32[4,1,32], index: 22, kind: input, shape index: {}]   ;;  %s4000_s24 = inlined_call_operand.vmem [shape: f32[4,1,32], index: 24, kind: input, shape index: {}]   ;;  %s4001_s25 = inlined_call_operand.vmem [shape: f32[16,32], index: 25, kind: output, shape index: {0}]  }
   0x1   :  { %4009 = sst [smem:[#allocation2_spill]] %s3975_s3  ;;  %v2685_v48 = vld [vmem:[%s3986_s8] ss:$0 sm:$0xff]  ;;  %vm696_vm6 = vcmask 64512   ;;  %v687_v54 = vld [vmem:[%s3987_s1 + $0x8] sm:$0xff]  ;;  %v875_v59 = vld [vmem:[%s3989_s17 + $0x10] sm:$0xff] }
   0x2   :  { %4010 = sst [smem:[#allocation3_spill]] %s3976_s0  ;;  %v686_v53 = vld [vmem:[%s3987_s1] sm:$0xff]  ;;  %v874_v57 = vld [vmem:[%s3989_s17 + $0x8] sm:$0xff]  ;;  %v876_v60 = vld [vmem:[%s3989_s17 + $0x18] sm:$0xff] }
   0x3   :  { %4011 = sst [smem:[#allocation4_spill]] %s3977_s5  ;;  %v688_v55 = vld [vmem:[%s3988_s23] sm:$0xff]  ;;  %v3215_v61 = vpack.c.bf16 %v876_v60, %v875_v59 }
   0x4   :  { %4012 = sst [smem:[#allocation5_spill]] %s3978_s2  ;;  %s4022_s0 = sld [smem:[#allocation4_spill]]  ;;  %v873_v56 = vld [vmem:[%s3989_s17] sm:$0xff] }
   0x5   :  { %4013 = sst [smem:[#allocation6_spill]] %s3979_s13  ;;  %s4023_s29 = sld [smem:[#allocation5_spill]]  ;;  %v3211_v58 = vpack.c.bf16 %v874_v57, %v873_v56  ;;  %v2688_v62 = vld [vmem:[%s3990_s10] ss:$0 sm:$0xff]  ;;  %v2719_v56 = vld [vmem:[%s3988_s23 + $0x8] sm:$0xff] }
   0x6   :  { %4014 = sst [smem:[#allocation7_spill]] %s3980_s7  ;;  %s4021_s7 = sld [smem:[#allocation3_spill]] }
   0x7   :  { %4015 = sst [smem:[#allocation8_spill]] %s3981_s4  ;;  %s4025_s13 = sld [smem:[#allocation7_spill]] }
   0x8   :  { %4016 = sst [smem:[#allocation9_spill]] %s3982_s6  ;;  %s4020_s6 = sld [smem:[#allocation2_spill]] }
   0x9   :  { %4017 = sst [smem:[#allocation10_spill]] %s3983_s11 }
   0xa   :  { %4018 = sst [smem:[#allocation11_spill]] %s3984_s9  ;;  %v265_v7 = vld [vmem:[%s4022_s0] sm:$0xff]  ;;  %v266_v8 = vld [vmem:[%s4022_s0 + $0x8] sm:$0xff]  ;;  %s4026_s0 = sld [smem:[#allocation8_spill]] }
   0xb   :  { %4019 = sst [smem:[#allocation12_spill]] %s3985_s15  ;;  %v3199_v9 = vpack.c.bf16 %v266_v8, %v265_v7  ;;  %v84_v11 = vld [vmem:[%s4023_s29] sm:$0xff]  ;;  %v85_v12 = vld [vmem:[%s4023_s29 + $0x8] sm:$0xff]  ;;  %s4024_s15 = sld [smem:[#allocation6_spill]] }
   0xc   :  { %v82_v5 = vld [vmem:[%s4021_s7] sm:$0xff]  ;;  %v83_v10 = vld [vmem:[%s4021_s7 + $0x8] sm:$0xff]  ;;  %s4029_s9 = sld [smem:[#allocation11_spill]]  ;;  %s4030_s7 = sld [smem:[#allocation12_spill]] }
   0xd   :  { %2980 = vmatprep.mubr.msk.f32.mxu1 %vm97_vm0, %v82_v5  ;;  %2969 = vmatprep.mubr.msk.f32.mxu0 %vm97_vm0, %v82_v5  ;;  %v372_v19 = vld [vmem:[%s4025_s13] sm:$0xff]  ;;  %v373_v20 = vld [vmem:[%s4025_s13 + $0x8] sm:$0xff]  ;;  %v374_v22 = vld [vmem:[%s4025_s13 + $0x10] sm:$0xff] }
   0xe   :  { %v179_v0 = vld [vmem:[%s4020_s6] sm:$0xff]  ;;  %v180_v1 = vld [vmem:[%s4020_s6 + $0x8] sm:$0xff]  ;;  %v181_v2 = vld [vmem:[%s4020_s6 + $0x10] sm:$0xff]  ;;  %v3203_v21 = vpack.c.bf16 %v373_v20, %v372_v19 }
   0xf   :  { %v3191_v3 = vpack.c.bf16 %v180_v1, %v179_v0  ;;  %v182_v4 = vld [vmem:[%s4020_s6 + $0x18] sm:$0xff]  ;;  %s4027_s6 = sld [smem:[#allocation9_spill]]  ;;  %v2701_v5 = vld [vmem:[%s3991_s16] ss:$0 sm:$0xff] }
  0x10   :  { %v3195_v6 = vpack.c.bf16 %v182_v4, %v181_v2  ;;  %v375_v23 = vld [vmem:[%s4025_s13 + $0x18] sm:$0xff]  ;;  %v2677_v25 = vld [vmem:[%s4026_s0] ss:$0 sm:$0xff]  ;;  %s4028_s13 = sld [smem:[#allocation10_spill]] }
  0x11   :  { %3192 = vmatprep.subr.bf16.mxu1 %v3191_v3  ;;  %v86_v13 = vld [vmem:[%s4024_s15] sm:$0xff]  ;;  %v87_v14 = vld [vmem:[%s4024_s15 + $0x8] sm:$0xff]  ;;  %v88_v16 = vld [vmem:[%s4024_s15 + $0x10] sm:$0xff]  ;;  %v3207_v24 = vpack.c.bf16 %v375_v23, %v374_v22 }
  0x12   :  { %3194 = vmatpush3.bf16.msra.mxu1 %v3191_v3  ;;  %v3183_v15 = vpack.c.bf16 %v87_v14, %v86_v13  ;;  %v89_v17 = vld [vmem:[%s4024_s15 + $0x18] sm:$0xff]  ;;  %v464_v46 = vld [vmem:[%s4029_s9] sm:$0xf] }
  0x13   :  { %3196 = vmatprep.subr.bf16.mxu1 %v3195_v6  ;;  %v3187_v18 = vpack.c.bf16 %v89_v17, %v88_v16  ;;  %v778_v47 = vld [vmem:[%s4030_s7] sm:$0xff] }
  0x14   :  { %3184 = vmatprep.subr.bf16.mxu0 %v3183_v15 }
  0x15   :  { %3186 = vmatpush3.bf16.msra.mxu0 %v3183_v15  ;;  %v2682_v27 = vld [vmem:[%s4027_s6] ss:$0 sm:$0xff] }
  0x16   :  { %3198 = vmatpush3.bf16.msra.mxu1 %v3195_v6  ;;  %3188 = vmatprep.subr.bf16.mxu0 %v3187_v18  ;;  %v570_v45 = vld [vmem:[%s4028_s13] sm:$0xf] }
  0x17   :  { %3200 = vmatprep.subr.bf16.mxu1 %v3199_v9 }
  0x19   :  { %2981 = vmatmul.mubr.msk.f32.vlgmr.msra.gmra.mrb[0].mxu1 %vm97_vm0, %v83_v10  ;;  %3190 = vmatpush3.bf16.msra.mxu0 %v3187_v18 }
  0x1a   :  { %3202 = vmatpush3.bf16.msra.mxu1 %v3199_v9  ;;  %2987 = vmatprep.mubr.msk.f32.mxu1 %vm267_vm1, %v84_v11 }
  0x1b   :  { %3204 = vmatprep.subr.bf16.mxu0 %v3203_v21  ;;  %3001 = vmatprep.subr.msk.mxu1 %vm479_vm4, %v464_v46 }
  0x1c   :  { %2970 = vmatmul.mubr.msk.f32.vlgmr.msra.gmra.mrb[0].mxu0 %vm97_vm0, %v83_v10 }
  0x1d   :  { %3206 = vmatpush3.bf16.msra.mxu0 %v3203_v21 }
  0x1e   :  { %3208 = vmatprep.subr.bf16.mxu0 %v3207_v24 }
  0x21   :  { %2988 = vmatmul.mubr.msk.f32.vlgmr.msra.gmra.mrb[0].mxu1 %vm267_vm1, %v85_v12  ;;  %3210 = vmatpush3.bf16.msra.mxu0 %v3207_v24  ;;  %v2694_v24 = vld [vmem:[%s3992_s12] ss:$0 sm:$0xff] }
  0x22   :  { %3006 = vmatprep.subr.msk.mxu0 %vm479_vm4, %v570_v45  ;;  %3002 = vmatpush3.msk.msra.mxu1 %vm479_vm4, %v464_v46  ;;  %v1070_v46 = vld [vmem:[%s3995_s21 + $0x8] sm:$0xff] }
  0x23   :  { %3011 = vmatprep.subr.mxu1 %v688_v55 }
  0xef   :  { %v3596_v43 = vpop.f32.mrb[0].mxu0 }
  0xf0   :  { %v3598_v44 = vpop.f32.mrb[1].mxu0 }
  0xf4   :  { %v2989_v26 = vpop.f32.mrb[0].mxu1 }
  0xf5   :  { %v3307_v28 = vadd.f32 %v2989_v26, %v2677_v25  ;;  %v340_v29 = vpop.f32.mrb[1].mxu1  ;;  %v2674_v26 = vld [vmem:[%s3993_s14] ss:$0 sm:$0xff] }
  0xf6   :  { %v3308_v30 = vadd.f32 %v2677_v25, %v340_v29 }
  0xf7   :  { %v359_v31 = vadd.f32 %v3307_v28, %v2682_v27 }
  0xf8   :  { %v358_v32 = vadd.f32 %v3308_v30, %v2682_v27 }
  0xf9   :  { %v363_v33 = vmin.f32 %v359_v31, 0.0  ;;  %vm361_vm3 = vcmp.gt.f32.partialorder %v359_v31, 0.0 }
  0xfa   :  { %v362_v34 = vmin.f32 %v358_v32, 0.0  ;;  %vm360_vm2 = vcmp.gt.f32.partialorder %v358_v32, 0.0 }
  0xfb   :  { %v366_v35 = vmul.f32 1.442695, %v363_v33 }
  0xfc   :  { %v364_v36 = vmul.f32 1.442695, %v362_v34  ;;  %v171_v34 = vadd.f32 %v2674_v26, %v3598_v44 }
  0xfd   :  { %3323 = vpow2.f32 %v366_v35 }
  0xfe   :  { %3325 = vpow2.f32 %v364_v36 }
 0x107   :  { %v3324_v37 = vpop.eup %3323 }
 0x108   :  { %v3326_v38 = vpop.eup %3325  ;;  %v2684_v39 = vadd.f32 -1.0, %v3324_v37 }
 0x109   :  { %v2683_v40 = vadd.f32 -1.0, %v3326_v38 }
 0x10a   :  { %v371_v42 = vsel %vm361_vm3, %v359_v31, %v2684_v39 }
 0x10b   :  { %v370_v41 = vsel %vm360_vm2, %v358_v32, %v2683_v40  ;;  %v176_v32 = vadd.f32 %v3596_v43, %v2674_v26  ;;  %v966_v43 = vld [vmem:[%s3994_s19 + $0x8] sm:$0xff]  ;;  %v3394_v26 = vmov 2  }
 0x10c   :  { %2998 = vmatprep.mubr.msk.f32.mxu0 %vm97_vm0, %v370_v41 }
 0x10d   :  { %2999 = vmatmul.mubr.msk.f32.vlgmr.msra.gmra.mrb[2].mxu0 %vm97_vm0, %v371_v42  ;;  %v965_v42 = vld [vmem:[%s3994_s19] sm:$0xff] }
 0x10e   :  { %3007 = vmatpush3.msk.msra.mxu0 %vm479_vm4, %v570_v45  ;;  %v3219_v44 = vpack.c.bf16 %v966_v43, %v965_v42  ;;  %v1069_v45 = vld [vmem:[%s3995_s21] sm:$0xff] }
 0x10f   :  { %3016 = vmatprep.subr.mxu0 %v778_v47 }
 0x1e0   :  { %v3000_v49 = vpop.f32.mrb[2].mxu0 }
 0x1e1   :  { %v455_v50 = vpop.f32.mrb[3].mxu0  ;;  %v461_v52 = vadd.f32 %v3000_v49, %v2685_v48 }
 0x1e2   :  { %v456_v51 = vadd.f32 %v2685_v48, %v455_v50  ;;  %v967_v50 = vld [vmem:[%s3994_s19 + $0x10] sm:$0xff] }
 0x1e4   :  { %3003 = vmatprep.mubr.msk.f32.mxu1 %vm472_vm5, %v456_v51  ;;  %3008 = vmatprep.mubr.msk.f32.mxu0 %vm472_vm5, %v456_v51  ;;  %v968_v51 = vld [vmem:[%s3994_s19 + $0x18] sm:$0xff] }
 0x1e5   :  { %3004 = vmatmul.mubr.msk.f32.vlgmr.msra.gmra.mrb[2].mxu1 %vm472_vm5, %v461_v52  ;;  %3009 = vmatmul.mubr.msk.f32.vlgmr.msra.gmra.mrb[4].mxu0 %vm472_vm5, %v461_v52  ;;  %v1071_v52 = vld [vmem:[%s3995_s21 + $0x10] sm:$0xff] }
 0x1e6   :  { %3017 = vmatpush3.msra.mxu0 %v778_v47  ;;  %3018 = vmatprep.mubr.msk.f32.mxu0 %vm696_vm6, %v686_v53  ;;  %v3227_v47 = vpack.c.bf16 %v1070_v46, %v1069_v45 }
 0x1e7   :  { %3013 = vmatprep.mubr.msk.f32.mxu1 %vm696_vm6, %v686_v53  ;;  %3012 = vmatpush3.msra.mxu1 %v688_v55  ;;  %v3223_v53 = vpack.c.bf16 %v968_v51, %v967_v50 }
 0x1e8   :  { %3212 = vmatprep.subr.bf16.mxu1 %v3211_v58  ;;  %3220 = vmatprep.subr.bf16.mxu0 %v3219_v44 }
 0x1e9   :  { %3019 = vmatmul.mubr.msk.f32.vlgmr.msra.gmra.mrb[6].mxu0 %vm696_vm6, %v687_v54  ;;  %3014 = vmatmul.mubr.msk.f32.vlgmr.msra.gmra.mrb[4].mxu1 %vm696_vm6, %v687_v54  ;;  %v1072_v54 = vld [vmem:[%s3995_s21 + $0x18] sm:$0xff] }
 0x1ea   :  { %3214 = vmatpush3.bf16.msra.mxu1 %v3211_v58  ;;  %3222 = vmatpush3.bf16.msra.mxu0 %v3219_v44  ;;  %v3231_v55 = vpack.c.bf16 %v1072_v54, %v1071_v52  ;;  %v2726_v44 = vld [vmem:[%s3991_s16 + $0x1] ss:$0 sm:$0xff] }
 0x1eb   :  { %3216 = vmatprep.subr.bf16.mxu1 %v3215_v61  ;;  %3224 = vmatprep.subr.bf16.mxu0 %v3223_v53 }
 0x1ee   :  { %3218 = vmatpush3.bf16.msra.mxu1 %v3215_v61  ;;  %3226 = vmatpush3.bf16.msra.mxu0 %v3223_v53 }
 0x1ef   :  { %3228 = vmatprep.subr.bf16.mxu1 %v3227_v47  ;;  %3054 = vmatprep.subr.mxu0 %v2719_v56 }
 0x2b8   :  { %v3005_v63 = vpop.f32.mrb[2].mxu1  ;;  %v3010_v0 = vpop.f32.mrb[4].mxu0 }
 0x2b9   :  { %v555_v1 = vadd.f32 %v3005_v63, %v2688_v62  ;;  %v549_v2 = vpop.f32.mrb[3].mxu1  ;;  %v647_v3 = vpop.f32.mrb[5].mxu0  ;;  %v653_v28 = vadd.f32 %v3010_v0, %v2694_v24 }
 0x2ba   :  { %v550_v4 = vadd.f32 %v2688_v62, %v549_v2  ;;  %v648_v30 = vadd.f32 %v2694_v24, %v647_v3  ;;  %v3391_v3 = vmov 0   ;;  %v3392_v24 = vmov 3  }
 0x2bb   :  { %v2693_v6 = vmul.f32 -1.442695, %v555_v1  ;;  %3315 = vset.pattern.permute.xlu0 %v3391_v3  ;;  %3316 = vset.pattern.permute.xlu1 %v3391_v3 }
 0x2bc   :  { %v2692_v7 = vmul.f32 -1.442695, %v550_v4  ;;  %v3020_v8 = vpop.f32.mrb[6].mxu0  ;;  %v3671_v48 = vpop.f32.mrb[4].mxu1  ;;  %v2706_v4 = vld [vmem:[%s3996_s18] ss:$0 sm:$0xff] }
 0x2bd   :  { %3327 = vpow2.f32 %v2693_v6  ;;  %v858_v9 = vadd.f32 %v3020_v8, %v2701_v5  ;;  %v852_v10 = vpop.f32.mrb[7].mxu0  ;;  %v3673_v49 = vpop.f32.mrb[5].mxu1 }
 0x2be   :  { %3329 = vpow2.f32 %v2692_v7  ;;  %v853_v11 = vadd.f32 %v2701_v5, %v852_v10  ;;  %v2724_v10 = vld [vmem:[%s4030_s7 + $0x8] sm:$0xff] }
 0x2bf   :  { %v864_v12 = vmin.f32 %v858_v9, 0.0  ;;  %vm862_vm8 = vcmp.gt.f32.partialorder %v858_v9, 0.0 }
 0x2c0   :  { %v863_v13 = vmin.f32 %v853_v11, 0.0  ;;  %vm861_vm7 = vcmp.gt.f32.partialorder %v853_v11, 0.0 }
 0x2c1   :  { %v867_v14 = vmul.f32 1.442695, %v864_v12 }
 0x2c2   :  { %v865_v15 = vmul.f32 1.442695, %v863_v13 }
 0x2c3   :  { %3331 = vpow2.f32 %v867_v14  ;;  %v2731_v14 = vld [vmem:[%s3989_s17 + $0x20] sm:$0xff] }
 0x2c4   :  { %3333 = vpow2.f32 %v865_v15  ;;  %v2732_v15 = vld [vmem:[%s3989_s17 + $0x28] sm:$0xff] }
 0x2c7   :  { %v3328_v16 = vpop.eup %3327 }
 0x2c8   :  { %v3330_v17 = vpop.eup %3329  ;;  %v565_v18 = vadd.f32 1.0, %v3328_v16 }
 0x2c9   :  { %v564_v19 = vadd.f32 1.0, %v3330_v17  ;;  %v3235_v17 = vpack.c.bf16 %v2732_v15, %v2731_v14  ;;  %v2752_v15 = vld [vmem:[%s3995_s21 + $0x38] sm:$0xff] }
 0x2ca   :  { %3335 = vrcp.f32 %v565_v18 }
 0x2cb   :  { %3337 = vrcp.f32 %v564_v19  ;;  %v2733_v19 = vld [vmem:[%s3989_s17 + $0x30] sm:$0xff] }
 0x2cd   :  { %v3332_v20 = vpop.eup %3331 }
 0x2ce   :  { %v3334_v21 = vpop.eup %3333  ;;  %v2705_v22 = vadd.f32 -1.0, %v3332_v20  ;;  %v2734_v20 = vld [vmem:[%s3989_s17 + $0x38] sm:$0xff] }
 0x2cf   :  { %v2704_v23 = vadd.f32 -1.0, %v3334_v21 }
 0x2d0   :  { %v872_v27 = vsel %vm862_vm8, %v858_v9, %v2705_v22  ;;  %v2717_v9 = vld [vmem:[%s3987_s1 + $0x10] sm:$0xff]  ;;  %v3239_v22 = vpack.c.bf16 %v2734_v20, %v2733_v19 }
 0x2d1   :  { %v871_v25 = vsel %vm861_vm7, %v853_v11, %v2704_v23  ;;  %v2718_v11 = vld [vmem:[%s3987_s1 + $0x18] sm:$0xff] }
 0x2d2   :  { %3029 = vmatprep.mubr.msk.f32.mxu1 %vm97_vm0, %v871_v25  ;;  %v3393_v25 = vmov 1  }
 0x2d3   :  { %3030 = vmatmul.mubr.msk.f32.vlgmr.msra.gmra.mrb[6].mxu1 %vm97_vm0, %v872_v27  ;;  %v2739_v27 = vld [vmem:[%s3994_s19 + $0x20] sm:$0xff] }
 0x2d4   :  { %v3336_v29 = vpop.eup %3335  ;;  %3230 = vmatpush3.bf16.msra.mxu1 %v3227_v47 }
 0x2d5   :  { %v3338_v31 = vpop.eup %3337  ;;  %v657_v33 = vmul.f32 %v3336_v29, %v653_v28  ;;  %3232 = vmatprep.subr.bf16.mxu1 %v3231_v55  ;;  %v2740_v28 = vld [vmem:[%s3994_s19 + $0x28] sm:$0xff]  ;;  %v2749_v29 = vld [vmem:[%s3995_s21 + $0x20] sm:$0xff] }
 0x2d6   :  { %v656_v35 = vmul.f32 %v3338_v31, %v648_v30  ;;  %v3243_v30 = vpack.c.bf16 %v2740_v28, %v2739_v27  ;;  %v2750_v31 = vld [vmem:[%s3995_s21 + $0x28] sm:$0xff] }
 0x2d7   :  { %v659_v36 = vadd.f32 %v657_v33, %v176_v32  ;;  %v3251_v32 = vpack.c.bf16 %v2750_v31, %v2749_v29  ;;  %v2709_v33 = vld [vmem:[%s3998_s20] ss:$0 sm:$0xff]  ;;  %v2772_v27 = vld [vmem:[%s3989_s17 + $0x48] sm:$0xff]  ;;  %v2773_v29 = vld [vmem:[%s3989_s17 + $0x50] sm:$0xff] }
 0x2d8   :  { %v658_v37 = vadd.f32 %v656_v35, %v171_v34  ;;  %3234 = vmatpush3.bf16.msra.mxu1 %v3231_v55 }
 0x2d9   :  { %v661_v40 = vmul.f32 0.999995, %v659_v36  ;;  %3236 = vmatprep.subr.bf16.mxu1 %v3235_v17 }
 0x2da   :  { %v660_v38 = vmul.f32 0.999995, %v658_v37 }
 0x2db   :  { %v665_v41 = vsel %vm472_vm5, %v661_v40, -inf }
 0x2dc   :  { %v662_v39 = vsel %vm472_vm5, %v660_v38, -inf }
 0x2dd   :  { %663 = vmax.xlane.f32.xlu0 %v662_v39 }
 0x2e1   :  { %666 = vmax.xlane.f32.xlu0 %v665_v41 }
 0x36a   :  { %v664_v57 = vpop.xlane.xlu0 %663 }
 0x36b   :  { %v668_v58 = vsub.f32 %v660_v38, %v664_v57 }
 0x36d   :  { %v670_v59 = vmul.f32 1.442695, %v668_v58 }
 0x36e   :  { %v667_v60 = vpop.xlane.xlu0 %666 }
 0x36f   :  { %3339 = vpow2.f32 %v670_v59  ;;  %v669_v61 = vsub.f32 %v661_v40, %v667_v60  ;;  %v2714_v59 = vld [vmem:[%s3999_s22] ss:$0 sm:$0xff] }
 0x371   :  { %v672_v62 = vmul.f32 1.442695, %v669_v61 }
 0x373   :  { %3341 = vpow2.f32 %v672_v62  ;;  %v2698_v62 = vld [vmem:[%s4000_s24] ss:$0 sm:$0xff] }
 0x379   :  { %v3340_v63 = vpop.eup %3339 }
 0x37a   :  { %v674_v0 = vsel %vm472_vm5, %v3340_v63, 0.0 }
 0x37b   :  { %675 = vadd.xlane.f32.xlu1 %v674_v0 }
 0x37d   :  { %v3342_v1 = vpop.eup %3341 }
 0x37e   :  { %v677_v2 = vsel %vm472_vm5, %v3342_v1, 0.0 }
 0x37f   :  { %678 = vadd.xlane.f32.xlu1 %v677_v2 }
 0x3a6   :  { %v3031_v5 = vpop.f32.mrb[6].mxu1 }
 0x3a7   :  { %v956_v6 = vpop.f32.mrb[7].mxu1  ;;  %v962_v8 = vadd.f32 %v3031_v5, %v2706_v4  ;;  %v775_v5 = vadd.f32 %v3671_v48, %v2698_v62  ;;  %v2741_v48 = vld [vmem:[%s3994_s19 + $0x30] sm:$0xff] }
 0x3a8   :  { %v957_v7 = vadd.f32 %v2706_v4, %v956_v6 }
 0x3aa   :  { %3040 = vmatprep.mubr.msk.f32.mxu0 %vm97_vm0, %v957_v7  ;;  %3051 = vmatprep.mubr.msk.f32.mxu1 %vm97_vm0, %v957_v7 }
 0x3ab   :  { %3041 = vmatmul.mubr.msk.f32.vlgmr.msra.gmra.mrb[8].mxu0 %vm97_vm0, %v962_v8  ;;  %3052 = vmatmul.mubr.msk.f32.vlgmr.msra.gmra.mrb[8].mxu1 %vm97_vm0, %v962_v8  ;;  %v770_v8 = vadd.f32 %v2698_v62, %v3673_v49  ;;  %v2751_v49 = vld [vmem:[%s3995_s21 + $0x30] sm:$0xff] }
 0x3ac   :  { %3055 = vmatpush3.msra.mxu0 %v2719_v56  ;;  %3056 = vmatprep.mubr.msk.f32.mxu0 %vm696_vm6, %v2717_v9 }
 0x3ad   :  { %3059 = vmatprep.subr.mxu0 %v2724_v10  ;;  %3238 = vmatpush3.bf16.msra.mxu1 %v3235_v17  ;;  %v2759_v17 = vld [vmem:[%s3988_s23 + $0x10] sm:$0xff] }
 0x3ae   :  { %3240 = vmatprep.subr.bf16.mxu1 %v3239_v22 }
 0x3af   :  { %3057 = vmatmul.mubr.msk.f32.vlgmr.msra.gmra.mrb[10].mxu0 %vm696_vm6, %v2718_v11 }
 0x3b0   :  { %3060 = vmatpush3.msra.mxu0 %v2724_v10  ;;  %3061 = vmatprep.mubr.msk.f32.mxu0 %vm696_vm6, %v2717_v9 }
 0x3b1   :  { %3242 = vmatpush3.bf16.msra.mxu1 %v3239_v22  ;;  %3244 = vmatprep.subr.bf16.mxu0 %v3243_v30 }
 0x3b2   :  { %3252 = vmatprep.subr.bf16.mxu1 %v3251_v32 }
 0x3b3   :  { %3062 = vmatmul.mubr.msk.f32.vlgmr.msra.gmra.mrb[12].mxu0 %vm696_vm6, %v2718_v11 }
 0x3b4   :  { %3246 = vmatpush3.bf16.msra.mxu0 %v3243_v30  ;;  %v2774_v30 = vld [vmem:[%s3989_s17 + $0x58] sm:$0xff] }
 0x3b5   :  { %v3263_v31 = vpack.c.bf16 %v2774_v30, %v2773_v29 }
 0x408   :  { %v676_v12 = vpop.xlane.xlu1 %675 }
 0x409   :  { %3343 = vrcp.f32 %v676_v12 }
 0x40c   :  { %v679_v13 = vpop.xlane.xlu1 %678 }
 0x40d   :  { %3345 = vrcp.f32 %v679_v13  ;;  %v2742_v13 = vld [vmem:[%s3994_s19 + $0x38] sm:$0xff] }
 0x40e   :  { %v3247_v14 = vpack.c.bf16 %v2742_v13, %v2741_v48 }
 0x410   :  { %3248 = vmatprep.subr.bf16.mxu0 %v3247_v14 }
 0x411   :  { %3250 = vmatpush3.bf16.msra.mxu0 %v3247_v14 }
 0x412   :  { %3097 = vmatprep.subr.mxu0 %v2759_v17 }
 0x413   :  { %v3344_v16 = vpop.eup %3343 }
 0x414   :  { %v681_v18 = vmul.f32 %v3344_v16, %v3340_v63  ;;  %v3255_v16 = vpack.c.bf16 %v2752_v15, %v2751_v49 }
 0x416   :  { %684 = vst.msk [vmem:[%s3997_s26] sm:$0xff] %vm472_vm5, %v681_v18  ;;  %1163 = vperm.xlu0 %3315, %v681_v18  }
 0x417   :  { %v3346_v21 = vpop.eup %3345 }
 0x418   :  { %v683_v23 = vmul.f32 %v3346_v21, %v3342_v1 }
 0x41a   :  { %685 = vst.msk [vmem:[%s3997_s26 + $0x8] sm:$0xff] %vm472_vm5, %v683_v23  ;;  %1168 = vperm.xlu1 %3316, %v683_v23   ;;  %3322 = vset.pattern.permute.xlu0 %v3392_v24 }
 0x41e   :  { %3317 = vset.pattern.permute.xlu1 %v3393_v25 }
 0x41f   :  { %1663 = vperm.xlu1 %3317, %v683_v23  }
 0x423   :  { %3318 = vset.pattern.permute.xlu1 %v3394_v26 }
 0x424   :  { %2160 = vperm.xlu1 %3318, %v683_v23  }
 0x428   :  { %3319 = vset.pattern.permute.xlu1 %v3393_v25  ;;  %v2758_v25 = vld [vmem:[%s3987_s1 + $0x28] sm:$0xff] }
 0x429   :  { %1659 = vperm.xlu1 %3319, %v681_v18  }
 0x42d   :  { %3320 = vset.pattern.permute.xlu1 %v3394_v26  ;;  %v2771_v26 = vld [vmem:[%s3989_s17 + $0x40] sm:$0xff] }
 0x42e   :  { %2156 = vperm.xlu1 %3320, %v681_v18   ;;  %v3259_v28 = vpack.c.bf16 %v2772_v27, %v2771_v26 }
 0x432   :  { %3321 = vset.pattern.permute.xlu1 %v3392_v24  ;;  %v2764_v24 = vld [vmem:[%s4030_s7 + $0x10] sm:$0xff] }
 0x433   :  { %2653 = vperm.xlu1 %3321, %v681_v18   ;;  %v2736_v18 = vld [vmem:[%s3996_s18 + $0x1] ss:$0 sm:$0xff] }
 0x437   :  { %2657 = vperm.xlu1 %3321, %v683_v23   ;;  %v2757_v23 = vld [vmem:[%s3987_s1 + $0x20] sm:$0xff] }
 0x47e   :  { %v3042_v34 = vpop.f32.mrb[8].mxu0  ;;  %v3053_v35 = vpop.f32.mrb[8].mxu1 }
 0x47f   :  { %v1054_v36 = vadd.f32 %v3042_v34, %v2709_v33  ;;  %v1048_v37 = vpop.f32.mrb[9].mxu0  ;;  %v1146_v38 = vpop.f32.mrb[9].mxu1  ;;  %v1152_v0 = vadd.f32 %v3053_v35, %v2714_v59  ;;  %v2789_v34 = vld [vmem:[%s3995_s21 + $0x40] sm:$0xff] }
 0x480   :  { %v1049_v39 = vadd.f32 %v2709_v33, %v1048_v37  ;;  %v1147_v3 = vadd.f32 %v2714_v59, %v1146_v38  ;;  %v2780_v33 = vld [vmem:[%s3994_s19 + $0x48] sm:$0xff]  ;;  %v2744_v38 = vld [vmem:[%s3998_s20 + $0x1] ss:$0 sm:$0xff] }
 0x481   :  { %v2713_v40 = vmul.f32 -1.442695, %v1054_v36  ;;  %v2790_v36 = vld [vmem:[%s3995_s21 + $0x48] sm:$0xff] }
 0x482   :  { %v2712_v41 = vmul.f32 -1.442695, %v1049_v39  ;;  %v3747_v42 = vpop.f32.mrb[10].mxu0  ;;  %v3275_v37 = vpack.c.bf16 %v2790_v36, %v2789_v34 }
 0x483   :  { %3347 = vpow2.f32 %v2713_v40  ;;  %v3749_v43 = vpop.f32.mrb[11].mxu0 }
 0x484   :  { %3349 = vpow2.f32 %v2712_v41 }
 0x486   :  { %v3063_v45 = vpop.f32.mrb[12].mxu0 }
 0x487   :  { %v1349_v46 = vadd.f32 %v3063_v45, %v2726_v44  ;;  %v1343_v47 = vpop.f32.mrb[13].mxu0 }
 0x488   :  { %v1344_v50 = vadd.f32 %v2726_v44, %v1343_v47 }
 0x489   :  { %v1355_v51 = vmin.f32 %v1349_v46, 0.0  ;;  %vm1353_vm10 = vcmp.gt.f32.partialorder %v1349_v46, 0.0 }
 0x48a   :  { %v1354_v52 = vmin.f32 %v1344_v50, 0.0  ;;  %vm1352_vm9 = vcmp.gt.f32.partialorder %v1344_v50, 0.0 }
 0x48b   :  { %v1358_v53 = vmul.f32 1.442695, %v1355_v51 }
 0x48c   :  { %v1356_v54 = vmul.f32 1.442695, %v1354_v52 }
 0x48d   :  { %v3348_v55 = vpop.eup %3347  ;;  %3351 = vpow2.f32 %v1358_v53  ;;  %v2766_v53 = vld [vmem:[%s3991_s16 + $0x2] ss:$0 sm:$0xff] }
 0x48e   :  { %v3350_v56 = vpop.eup %3349  ;;  %v1064_v57 = vadd.f32 1.0, %v3348_v55  ;;  %3353 = vpow2.f32 %v1356_v54 }
 0x48f   :  { %v1063_v58 = vadd.f32 1.0, %v3350_v56 }
 0x490   :  { %3355 = vrcp.f32 %v1064_v57 }
 0x491   :  { %3357 = vrcp.f32 %v1063_v58 }
 0x495   :  { %v1164_v26 = vpop.permute.xlu0 %1163 }
 0x497   :  { %v3352_v60 = vpop.eup %3351 }
 0x498   :  { %v3354_v61 = vpop.eup %3353  ;;  %v2730_v63 = vadd.f32 -1.0, %v3352_v60 }
 0x499   :  { %v2729_v1 = vadd.f32 -1.0, %v3354_v61 }
 0x49a   :  { %v3356_v2 = vpop.eup %3355  ;;  %v1363_v10 = vsel %vm1353_vm10, %v1349_v46, %v2730_v63 }
 0x49b   :  { %v3358_v4 = vpop.eup %3357  ;;  %v1156_v6 = vmul.f32 %v3356_v2, %v1152_v0  ;;  %v1362_v7 = vsel %vm1352_vm9, %v1344_v50, %v2729_v1  ;;  %v1169_v1 = vpop.permute.xlu1 %1168 }
 0x49c   :  { %v1155_v9 = vmul.f32 %v3358_v4, %v1147_v3  ;;  %3072 = vmatprep.mubr.msk.f32.mxu1 %vm97_vm0, %v1362_v7  ;;  %v2754_v4 = vld [vmem:[%s3999_s22 + $0x1] ss:$0 sm:$0xff] }
 0x49d   :  { %v3763_v11 = vadd.f32 %v1156_v6, %v775_v5  ;;  %3073 = vmatmul.mubr.msk.f32.vlgmr.msra.gmra.mrb[10].mxu1 %vm97_vm0, %v1363_v10  ;;  %v2721_v7 = vld [vmem:[%s4000_s24 + $0x1] ss:$0 sm:$0xff] }
 0x49e   :  { %v3766_v12 = vadd.f32 %v1155_v9, %v770_v8  ;;  %3254 = vmatpush3.bf16.msra.mxu1 %v3251_v32  ;;  %v2779_v32 = vld [vmem:[%s3994_s19 + $0x40] sm:$0xff]  ;;  %v1264_v14 = vadd.f32 %v3747_v42, %v2721_v7 }
 0x49f   :  { %3256 = vmatprep.subr.bf16.mxu1 %v3255_v16  ;;  %v3267_v35 = vpack.c.bf16 %v2780_v33, %v2779_v32  ;;  %v1664_v3 = vpop.permute.xlu1 %1663  ;;  %v2791_v33 = vld [vmem:[%s3995_s21 + $0x50] sm:$0xff] }
 0x4a2   :  { %3258 = vmatpush3.bf16.msra.mxu1 %v3255_v16 }
 0x4a3   :  { %3260 = vmatprep.subr.bf16.mxu1 %v3259_v28  ;;  %v3844_v15 = vpop.permute.xlu1 %2160 }
 0x570   :  { %v3074_v19 = vpop.f32.mrb[10].mxu1 }
 0x571   :  { %v1449_v20 = vpop.f32.mrb[11].mxu1  ;;  %v1455_v22 = vadd.f32 %v3074_v19, %v2736_v18 }
 0x572   :  { %v1450_v21 = vadd.f32 %v2736_v18, %v1449_v20  ;;  %v1259_v18 = vadd.f32 %v2721_v7, %v3749_v43 }
 0x574   :  { %3083 = vmatprep.mubr.msk.f32.mxu0 %vm97_vm0, %v1450_v21  ;;  %3094 = vmatprep.mubr.msk.f32.mxu1 %vm97_vm0, %v1450_v21  ;;  %v1160_v21 = vmul.f32 0.999995, %v3763_v11  ;;  %v2781_v11 = vld [vmem:[%s3994_s19 + $0x50] sm:$0xff] }
 0x575   :  { %3084 = vmatmul.mubr.msk.f32.vlgmr.msra.gmra.mrb[14].mxu0 %vm97_vm0, %v1455_v22  ;;  %3095 = vmatmul.mubr.msk.f32.vlgmr.msra.gmra.mrb[12].mxu1 %vm97_vm0, %v1455_v22 }
 0x576   :  { %3098 = vmatpush3.msra.mxu0 %v2759_v17  ;;  %3099 = vmatprep.mubr.msk.f32.mxu0 %vm696_vm6, %v2757_v23  ;;  %v1172_v27 = vmul.f32 %v1169_v1, %v1160_v21 }
 0x577   :  { %3102 = vmatprep.subr.mxu0 %v2764_v24  ;;  %3262 = vmatpush3.bf16.msra.mxu1 %v3259_v28  ;;  %v1660_v28 = vpop.permute.xlu1 %1659 }
 0x578   :  { %3264 = vmatprep.subr.bf16.mxu1 %v3263_v31 }
 0x579   :  { %3100 = vmatmul.mubr.msk.f32.vlgmr.msra.gmra.mrb[16].mxu0 %vm696_vm6, %v2758_v25 }
 0x57a   :  { %3103 = vmatpush3.msra.mxu0 %v2764_v24  ;;  %3104 = vmatprep.mubr.msk.f32.mxu0 %vm696_vm6, %v2757_v23  ;;  %v1159_v23 = vmul.f32 0.999995, %v3766_v12  ;;  %v2782_v12 = vld [vmem:[%s3994_s19 + $0x58] sm:$0xff] }
 0x57b   :  { %3266 = vmatpush3.bf16.msra.mxu1 %v3263_v31  ;;  %3268 = vmatprep.subr.bf16.mxu0 %v3267_v35  ;;  %v3271_v34 = vpack.c.bf16 %v2782_v12, %v2781_v11 }
 0x57c   :  { %3276 = vmatprep.subr.bf16.mxu1 %v3275_v37  ;;  %v1171_v43 = vmul.f32 %v1164_v26, %v1159_v23 }
 0x57d   :  { %3105 = vmatmul.mubr.msk.f32.vlgmr.msra.gmra.mrb[18].mxu0 %vm696_vm6, %v2758_v25 }
 0x57e   :  { %3270 = vmatpush3.bf16.msra.mxu0 %v3267_v35  ;;  %v2792_v35 = vld [vmem:[%s3995_s21 + $0x58] sm:$0xff] }
 0x57f   :  { %v3279_v36 = vpack.c.bf16 %v2792_v35, %v2791_v33  ;;  %3272 = vmatprep.subr.bf16.mxu0 %v3271_v34 }
 0x582   :  { %3274 = vmatpush3.bf16.msra.mxu0 %v3271_v34 }
 0x648   :  { %v3085_v39 = vpop.f32.mrb[14].mxu0  ;;  %v3096_v40 = vpop.f32.mrb[12].mxu1 }
 0x649   :  { %v1549_v41 = vadd.f32 %v3085_v39, %v2744_v38  ;;  %v1543_v44 = vpop.f32.mrb[15].mxu0  ;;  %v1643_v45 = vpop.f32.mrb[13].mxu1  ;;  %v1649_v9 = vadd.f32 %v3096_v40, %v2754_v4 }
 0x64a   :  { %v1544_v46 = vadd.f32 %v2744_v38, %v1543_v44  ;;  %v1644_v13 = vadd.f32 %v2754_v4, %v1643_v45  ;;  %v2776_v38 = vld [vmem:[%s3996_s18 + $0x2] ss:$0 sm:$0xff]  ;;  %v2797_v45 = vld [vmem:[%s3987_s1 + $0x30] sm:$0xff] }
 0x64b   :  { %v2748_v47 = vmul.f32 -1.442695, %v1549_v41 }
 0x64c   :  { %v2747_v50 = vmul.f32 -1.442695, %v1544_v46  ;;  %v3830_v51 = vpop.f32.mrb[16].mxu0  ;;  %v2804_v46 = vld [vmem:[%s4030_s7 + $0x18] sm:$0xff] }
 0x64d   :  { %3359 = vpow2.f32 %v2748_v47  ;;  %v3832_v52 = vpop.f32.mrb[17].mxu0  ;;  %v2798_v47 = vld [vmem:[%s3987_s1 + $0x38] sm:$0xff] }
 0x64e   :  { %3361 = vpow2.f32 %v2747_v50  ;;  %v2811_v50 = vld [vmem:[%s3989_s17 + $0x60] sm:$0xff] }
 0x650   :  { %v3106_v54 = vpop.f32.mrb[18].mxu0 }
 0x651   :  { %v1846_v55 = vadd.f32 %v3106_v54, %v2766_v53  ;;  %v1840_v56 = vpop.f32.mrb[19].mxu0 }
 0x652   :  { %v1841_v57 = vadd.f32 %v2766_v53, %v1840_v56  ;;  %v2812_v53 = vld [vmem:[%s3989_s17 + $0x68] sm:$0xff]  ;;  %v2814_v56 = vld [vmem:[%s3989_s17 + $0x78] sm:$0xff] }
 0x653   :  { %v1852_v58 = vmin.f32 %v1846_v55, 0.0  ;;  %vm1850_vm12 = vcmp.gt.f32.partialorder %v1846_v55, 0.0  ;;  %v3283_v54 = vpack.c.bf16 %v2812_v53, %v2811_v50  ;;  %v2822_v53 = vld [vmem:[%s3994_s19 + $0x78] sm:$0xff] }
 0x654   :  { %v1851_v59 = vmin.f32 %v1841_v57, 0.0  ;;  %vm1849_vm11 = vcmp.gt.f32.partialorder %v1841_v57, 0.0 }
 0x655   :  { %v1855_v60 = vmul.f32 1.442695, %v1852_v58  ;;  %v2819_v58 = vld [vmem:[%s3994_s19 + $0x60] sm:$0xff] }
 0x656   :  { %v1853_v61 = vmul.f32 1.442695, %v1851_v59  ;;  %v2820_v59 = vld [vmem:[%s3994_s19 + $0x68] sm:$0xff] }
 0x657   :  { %v3360_v62 = vpop.eup %3359  ;;  %3363 = vpow2.f32 %v1855_v60  ;;  %v2829_v60 = vld [vmem:[%s3995_s21 + $0x60] sm:$0xff] }
 0x658   :  { %v3362_v63 = vpop.eup %3361  ;;  %v1559_v0 = vadd.f32 1.0, %v3360_v62  ;;  %3365 = vpow2.f32 %v1853_v61  ;;  %v3291_v61 = vpack.c.bf16 %v2820_v59, %v2819_v58  ;;  %v2830_v62 = vld [vmem:[%s3995_s21 + $0x68] sm:$0xff] }
 0x659   :  { %v1558_v2 = vadd.f32 1.0, %v3362_v63  ;;  %v3299_v63 = vpack.c.bf16 %v2830_v62, %v2829_v60  ;;  %v2824_v60 = vld [vmem:[%s3998_s20 + $0x3] ss:$0 sm:$0xff] }
 0x65a   :  { %3367 = vrcp.f32 %v1559_v0  ;;  %v2784_v0 = vld [vmem:[%s3998_s20 + $0x2] ss:$0 sm:$0xff] }
 0x65b   :  { %3369 = vrcp.f32 %v1558_v2 }
 0x661   :  { %v3364_v5 = vpop.eup %3363 }
 0x662   :  { %v3366_v6 = vpop.eup %3365  ;;  %v2770_v8 = vadd.f32 -1.0, %v3364_v5 }
 0x663   :  { %v2769_v10 = vadd.f32 -1.0, %v3366_v6 }
 0x664   :  { %v3368_v48 = vpop.eup %3367  ;;  %v1860_v20 = vsel %vm1850_vm12, %v1846_v55, %v2770_v8  ;;  %v2813_v55 = vld [vmem:[%s3989_s17 + $0x70] sm:$0xff] }
 0x665   :  { %v3370_v49 = vpop.eup %3369  ;;  %v1653_v16 = vmul.f32 %v3368_v48, %v1649_v9  ;;  %v1859_v17 = vsel %vm1849_vm11, %v1841_v57, %v2769_v10  ;;  %v3287_v57 = vpack.c.bf16 %v2814_v56, %v2813_v55  ;;  %v2806_v48 = vld [vmem:[%s3991_s16 + $0x3] ss:$0 sm:$0xff] }
 0x666   :  { %v1652_v19 = vmul.f32 %v3370_v49, %v1644_v13  ;;  %3115 = vmatprep.mubr.msk.f32.mxu1 %vm97_vm0, %v1859_v17 }
 0x667   :  { %v1655_v22 = vadd.f32 %v1653_v16, %v1264_v14  ;;  %3116 = vmatmul.mubr.msk.f32.vlgmr.msra.gmra.mrb[14].mxu1 %vm97_vm0, %v1860_v20 }
 0x668   :  { %v1654_v24 = vadd.f32 %v1652_v19, %v1259_v18  ;;  %3278 = vmatpush3.bf16.msra.mxu1 %v3275_v37  ;;  %v2799_v37 = vld [vmem:[%s3988_s23 + $0x18] sm:$0xff] }
 0x669   :  { %v1657_v42 = vmul.f32 0.999995, %v1655_v22  ;;  %3280 = vmatprep.subr.bf16.mxu1 %v3279_v36  ;;  %3140 = vmatprep.subr.mxu0 %v2799_v37 }
 0x66a   :  { %v1656_v25 = vmul.f32 0.999995, %v1654_v24 }
 0x66b   :  { %v1667_v29 = vmul.f32 %v1664_v3, %v1657_v42  ;;  %v2794_v42 = vld [vmem:[%s3999_s22 + $0x2] ss:$0 sm:$0xff] }
 0x66c   :  { %v1666_v30 = vmul.f32 %v1660_v28, %v1656_v25  ;;  %3282 = vmatpush3.bf16.msra.mxu1 %v3279_v36 }
 0x66d   :  { %v3851_v31 = vadd.f32 %v1667_v29, %v1172_v27  ;;  %3284 = vmatprep.subr.bf16.mxu1 %v3283_v54  ;;  %v2761_v27 = vld [vmem:[%s4000_s24 + $0x2] ss:$0 sm:$0xff] }
 0x66e   :  { %v3853_v32 = vadd.f32 %v1666_v30, %v1171_v43  ;;  %v1761_v33 = vadd.f32 %v3830_v51, %v2761_v27  ;;  %v1756_v36 = vadd.f32 %v2761_v27, %v3832_v52  ;;  %v2821_v52 = vld [vmem:[%s3994_s19 + $0x70] sm:$0xff] }
 0x66f   :  { %v3295_v55 = vpack.c.bf16 %v2822_v53, %v2821_v52 }
 0x73a   :  { %v3117_v39 = vpop.f32.mrb[14].mxu1 }
 0x73b   :  { %v1946_v40 = vpop.f32.mrb[15].mxu1  ;;  %v1952_v44 = vadd.f32 %v3117_v39, %v2776_v38 }
 0x73c   :  { %v1947_v41 = vadd.f32 %v2776_v38, %v1946_v40 }
 0x73e   :  { %3126 = vmatprep.mubr.msk.f32.mxu0 %vm97_vm0, %v1947_v41  ;;  %3137 = vmatprep.mubr.msk.f32.mxu1 %vm97_vm0, %v1947_v41 }
 0x73f   :  { %3127 = vmatmul.mubr.msk.f32.vlgmr.msra.gmra.mrb[20].mxu0 %vm97_vm0, %v1952_v44  ;;  %3138 = vmatmul.mubr.msk.f32.vlgmr.msra.gmra.mrb[16].mxu1 %vm97_vm0, %v1952_v44 }
 0x740   :  { %3141 = vmatpush3.msra.mxu0 %v2799_v37  ;;  %3142 = vmatprep.mubr.msk.f32.mxu0 %vm696_vm6, %v2797_v45 }
 0x741   :  { %3145 = vmatprep.subr.mxu0 %v2804_v46  ;;  %3286 = vmatpush3.bf16.msra.mxu1 %v3283_v54  ;;  %v2831_v54 = vld [vmem:[%s3995_s21 + $0x70] sm:$0xff] }
 0x742   :  { %3288 = vmatprep.subr.bf16.mxu1 %v3287_v57 }
 0x743   :  { %3143 = vmatmul.mubr.msk.f32.vlgmr.msra.gmra.mrb[22].mxu0 %vm696_vm6, %v2798_v47 }
 0x744   :  { %3146 = vmatpush3.msra.mxu0 %v2804_v46  ;;  %3147 = vmatprep.mubr.msk.f32.mxu0 %vm696_vm6, %v2797_v45  ;;  %v2157_v45 = vpop.permute.xlu1 %2156 }
 0x745   :  { %3290 = vmatpush3.bf16.msra.mxu1 %v3287_v57  ;;  %3292 = vmatprep.subr.bf16.mxu0 %v3291_v61 }
 0x746   :  { %3300 = vmatprep.subr.bf16.mxu1 %v3299_v63 }
 0x747   :  { %3148 = vmatmul.mubr.msk.f32.vlgmr.msra.gmra.mrb[24].mxu0 %vm696_vm6, %v2798_v47 }
 0x748   :  { %3294 = vmatpush3.bf16.msra.mxu0 %v3291_v61 }
 0x749   :  { %3296 = vmatprep.subr.bf16.mxu0 %v3295_v55 }
 0x74c   :  { %3298 = vmatpush3.bf16.msra.mxu0 %v3295_v55 }
 0x812   :  { %v3128_v1 = vpop.f32.mrb[20].mxu0  ;;  %v3139_v2 = vpop.f32.mrb[16].mxu1 }
 0x813   :  { %v2046_v3 = vadd.f32 %v3128_v1, %v2784_v0  ;;  %v2040_v4 = vpop.f32.mrb[21].mxu0  ;;  %v2140_v5 = vpop.f32.mrb[17].mxu1  ;;  %v2146_v29 = vadd.f32 %v3139_v2, %v2794_v42 }
 0x814   :  { %v2041_v6 = vadd.f32 %v2784_v0, %v2040_v4  ;;  %v2141_v11 = vadd.f32 %v2794_v42, %v2140_v5 }
 0x815   :  { %v2788_v7 = vmul.f32 -1.442695, %v2046_v3 }
 0x816   :  { %v2787_v8 = vmul.f32 -1.442695, %v2041_v6  ;;  %v3917_v9 = vpop.f32.mrb[22].mxu0 }
 0x817   :  { %3371 = vpow2.f32 %v2788_v7  ;;  %v3919_v10 = vpop.f32.mrb[23].mxu0 }
 0x818   :  { %3373 = vpow2.f32 %v2787_v8 }
 0x81a   :  { %v3149_v13 = vpop.f32.mrb[24].mxu0 }
 0x81b   :  { %v2343_v49 = vadd.f32 %v3149_v13, %v2806_v48  ;;  %v2337_v14 = vpop.f32.mrb[25].mxu0  ;;  %v2801_v13 = vld [vmem:[%s4000_s24 + $0x3] ss:$0 sm:$0xff] }
 0x81c   :  { %v2338_v16 = vadd.f32 %v2806_v48, %v2337_v14  ;;  %v2834_v48 = vld [vmem:[%s3999_s22 + $0x3] ss:$0 sm:$0xff] }
 0x81d   :  { %v2349_v17 = vmin.f32 %v2343_v49, 0.0  ;;  %vm2347_vm14 = vcmp.gt.f32.partialorder %v2343_v49, 0.0 }
 0x81e   :  { %v2348_v18 = vmin.f32 %v2338_v16, 0.0  ;;  %vm2346_vm13 = vcmp.gt.f32.partialorder %v2338_v16, 0.0 }
 0x81f   :  { %v2352_v19 = vmul.f32 1.442695, %v2349_v17 }
 0x820   :  { %v2350_v20 = vmul.f32 1.442695, %v2348_v18 }
 0x821   :  { %v3372_v21 = vpop.eup %3371  ;;  %3375 = vpow2.f32 %v2352_v19  ;;  %v2258_v19 = vadd.f32 %v3917_v9, %v2801_v13 }
 0x822   :  { %v3374_v22 = vpop.eup %3373  ;;  %v2056_v23 = vadd.f32 1.0, %v3372_v21  ;;  %3377 = vpow2.f32 %v2350_v20  ;;  %v2253_v21 = vadd.f32 %v2801_v13, %v3919_v10 }
 0x823   :  { %v2055_v24 = vadd.f32 1.0, %v3374_v22 }
 0x824   :  { %3379 = vrcp.f32 %v2056_v23 }
 0x825   :  { %3381 = vrcp.f32 %v2055_v24 }
 0x82b   :  { %v3376_v25 = vpop.eup %3375 }
 0x82c   :  { %v3378_v26 = vpop.eup %3377  ;;  %v2810_v28 = vadd.f32 -1.0, %v3376_v25 }
 0x82d   :  { %v2809_v43 = vadd.f32 -1.0, %v3378_v26 }
 0x82e   :  { %v3380_v30 = vpop.eup %3379  ;;  %v2357_v38 = vsel %vm2347_vm14, %v2343_v49, %v2810_v28 }
 0x82f   :  { %v3382_v12 = vpop.eup %3381  ;;  %v2150_v34 = vmul.f32 %v3380_v30, %v2146_v29  ;;  %v2356_v35 = vsel %vm2346_vm13, %v2338_v16, %v2809_v43  ;;  %v2654_v16 = vpop.permute.xlu1 %2653 }
 0x830   :  { %v2149_v37 = vmul.f32 %v3382_v12, %v2141_v11  ;;  %3158 = vmatprep.mubr.msk.f32.mxu1 %vm97_vm0, %v2356_v35 }
 0x831   :  { %v2152_v39 = vadd.f32 %v2150_v34, %v1761_v33  ;;  %3159 = vmatmul.mubr.msk.f32.vlgmr.msra.gmra.mrb[18].mxu1 %vm97_vm0, %v2357_v38 }
 0x832   :  { %v2151_v40 = vadd.f32 %v2149_v37, %v1756_v36  ;;  %3302 = vmatpush3.bf16.msra.mxu1 %v3299_v63 }
 0x833   :  { %v2154_v41 = vmul.f32 0.999995, %v2152_v39  ;;  %v2658_v25 = vpop.permute.xlu1 %2657 }
 0x834   :  { %v2153_v44 = vmul.f32 0.999995, %v2151_v40 }
 0x835   :  { %v2164_v46 = vmul.f32 %v3844_v15, %v2154_v41  ;;  %v2832_v15 = vld [vmem:[%s3995_s21 + $0x78] sm:$0xff] }
 0x836   :  { %v2163_v51 = vmul.f32 %v2157_v45, %v2153_v44 }
 0x837   :  { %v2166_v47 = vadd.f32 %v2164_v46, %v3851_v31  ;;  %v3303_v31 = vpack.c.bf16 %v2832_v15, %v2831_v54 }
 0x838   :  { %v2165_v50 = vadd.f32 %v2163_v51, %v3853_v32  ;;  %v2816_v32 = vld [vmem:[%s3996_s18 + $0x3] ss:$0 sm:$0xff] }
 0x839   :  { %3304 = vmatprep.subr.bf16.mxu1 %v3303_v31 }
 0x83a   :  { %3306 = vmatpush3.bf16.msra.mxu1 %v3303_v31 }
 0x904   :  { %v3160_v56 = vpop.f32.mrb[18].mxu1 }
 0x905   :  { %v2443_v57 = vpop.f32.mrb[19].mxu1  ;;  %v2449_v59 = vadd.f32 %v3160_v56, %v2816_v32 }
 0x906   :  { %v2444_v58 = vadd.f32 %v2816_v32, %v2443_v57 }
 0x908   :  { %3169 = vmatprep.mubr.msk.f32.mxu0 %vm97_vm0, %v2444_v58  ;;  %3180 = vmatprep.mubr.msk.f32.mxu1 %vm97_vm0, %v2444_v58 }
 0x909   :  { %3170 = vmatmul.mubr.msk.f32.vlgmr.msra.gmra.mrb[26].mxu0 %vm97_vm0, %v2449_v59  ;;  %3181 = vmatmul.mubr.msk.f32.vlgmr.msra.gmra.mrb[20].mxu1 %vm97_vm0, %v2449_v59 }
 0x9dc   :  { %v3171_v61 = vpop.f32.mrb[26].mxu0  ;;  %v3182_v62 = vpop.f32.mrb[20].mxu1 }
 0x9dd   :  { %v2543_v63 = vadd.f32 %v3171_v61, %v2824_v60  ;;  %v2537_v0 = vpop.f32.mrb[27].mxu0  ;;  %v2637_v1 = vpop.f32.mrb[21].mxu1  ;;  %v2643_v49 = vadd.f32 %v3182_v62, %v2834_v48 }
 0x9de   :  { %v2538_v2 = vadd.f32 %v2824_v60, %v2537_v0  ;;  %v2638_v17 = vadd.f32 %v2834_v48, %v2637_v1 }
 0x9df   :  { %v2828_v3 = vmul.f32 -1.442695, %v2543_v63 }
 0x9e0   :  { %v2827_v4 = vmul.f32 -1.442695, %v2538_v2 }
 0x9e1   :  { %3383 = vpow2.f32 %v2828_v3 }
 0x9e2   :  { %3385 = vpow2.f32 %v2827_v4 }
 0x9eb   :  { %v3384_v5 = vpop.eup %3383 }
 0x9ec   :  { %v3386_v6 = vpop.eup %3385  ;;  %v2553_v7 = vadd.f32 1.0, %v3384_v5 }
 0x9ed   :  { %v2552_v8 = vadd.f32 1.0, %v3386_v6 }
 0x9ee   :  { %3387 = vrcp.f32 %v2553_v7 }
 0x9ef   :  { %3389 = vrcp.f32 %v2552_v8 }
 0x9f8   :  { %v3388_v14 = vpop.eup %3387 }
 0x9f9   :  { %v3390_v18 = vpop.eup %3389  ;;  %v2647_v20 = vmul.f32 %v3388_v14, %v2643_v49 }
 0x9fa   :  { %v2646_v22 = vmul.f32 %v3390_v18, %v2638_v17 }
 0x9fb   :  { %v2649_v23 = vadd.f32 %v2647_v20, %v2258_v19 }
 0x9fc   :  { %v2648_v24 = vadd.f32 %v2646_v22, %v2253_v21 }
 0x9fd   :  { %v2651_v42 = vmul.f32 0.999995, %v2649_v23 }
 0x9fe   :  { %v2650_v26 = vmul.f32 0.999995, %v2648_v24 }
 0x9ff   :  { %v2661_v27 = vmul.f32 %v2658_v25, %v2651_v42 }
 0xa00   :  { %v2660_v28 = vmul.f32 %v2654_v16, %v2650_v26 }
 0xa01   :  { %v2663_v29 = vadd.f32 %v2661_v27, %v2166_v47 }
 0xa02   :  { %v2662_v43 = vadd.f32 %v2660_v28, %v2165_v50 }
 0xa03   :  { %2665 = vst.msk [vmem:[%s4001_s25 + $0x8] sm:$0xff] %vm97_vm0, %v2663_v29 }
 0xa04   :  { %2664 = vst.msk [vmem:[%s4001_s25] sm:$0xff] %vm97_vm0, %v2662_v43 }

// kernel: _lambda_.11
= control target key start
LH: loop header
LB: loop body
LE: loop exit
PB: predicated region body
PF: predicated region fallthrough
CT: control target
= control target key end

     0   :  { %s1604_s0 = inlined_call_operand.vmem [shape: f32[8,32], index: 0, kind: input, shape index: {}]   ;;  %s1605_s1 = inlined_call_operand.vmem [shape: f32[8,32], index: 1, kind: input, shape index: {}]   ;;  %s1606_s2 = inlined_call_operand.vmem [shape: f32[32,32], index: 2, kind: input, shape index: {}]   ;;  %s1607_s3 = inlined_call_operand.vmem [shape: f32[1,32], index: 3, kind: input, shape index: {}]   ;;  %s1608_s4 = inlined_call_operand.vmem [shape: f32[32,32], index: 4, kind: input, shape index: {}]   ;;  %s1609_s5 = inlined_call_operand.vmem [shape: f32[1,32], index: 5, kind: input, shape index: {}]   ;;  %s1610_s6 = inlined_call_operand.vmem [shape: f32[32,32], index: 6, kind: input, shape index: {}]   ;;  %s1611_s7 = inlined_call_operand.vmem [shape: f32[1,32], index: 7, kind: input, shape index: {}]   ;;  %s1612_s8 = inlined_call_operand.vmem [shape: f32[32,32], index: 8, kind: input, shape index: {}]   ;;  %s1613_s9 = inlined_call_operand.vmem [shape: f32[1,32], index: 9, kind: input, shape index: {}]   ;;  %s1614_s10 = inlined_call_operand.vmem [shape: f32[32,32], index: 10, kind: input, shape index: {}]   ;;  %s1615_s11 = inlined_call_operand.vmem [shape: f32[1,32], index: 11, kind: input, shape index: {}]   ;;  %s1616_s12 = inlined_call_operand.vmem [shape: f32[32,32], index: 12, kind: input, shape index: {}]   ;;  %s1617_s13 = inlined_call_operand.vmem [shape: f32[1,32], index: 13, kind: input, shape index: {}]   ;;  %s1618_s14 = inlined_call_operand.vmem [shape: f32[32,32], index: 14, kind: input, shape index: {}]   ;;  %s1619_s15 = inlined_call_operand.vmem [shape: f32[1,32], index: 15, kind: input, shape index: {}]   ;;  %s1620_s16 = inlined_call_operand.vmem [shape: f32[32,32], index: 16, kind: input, shape index: {}]   ;;  %s1621_s17 = inlined_call_operand.vmem [shape: f32[1,32], index: 17, kind: input, shape index: {}]   ;;  %s1622_s18 = inlined_call_operand.vmem [shape: f32[32,32], index: 18, kind: input, shape index: {}]   ;;  %s1623_s19 = inlined_call_operand.vmem [shape: f32[1,32], index: 19, kind: input, shape index: {}]   ;;  %s1624_s20 = inlined_call_operand.vmem [shape: f32[32,3], index: 20, kind: input, shape index: {}]   ;;  %s1625_s21 = inlined_call_operand.vmem [shape: f32[1,3], index: 21, kind: input, shape index: {}]   ;;  %s1626_s22 = inlined_call_operand.hbm [shape: f32[8,32], index: 22, kind: output, shape index: {0}]   ;;  %s1627_s23 = inlined_call_operand.vmem [shape: f32[8,3], index: 23, kind: output, shape index: {1}]  }
   0x1   :  { %1631 = sst [smem:[#allocation5_spill]] %s1604_s0 }
   0x2   :  { %1632 = sst [smem:[#allocation6_spill]] %s1605_s1 }
   0x3   :  { %1633 = sst [smem:[#allocation7_spill]] %s1606_s2 }
   0x4   :  { %1634 = sst [smem:[#allocation8_spill]] %s1607_s3 }
   0x5   :  { %1635 = sst [smem:[#allocation9_spill]] %s1608_s4 }
   0x6   :  { %1636 = sst [smem:[#allocation10_spill]] %s1609_s5 }
   0x7   :  { %1637 = sst [smem:[#allocation11_spill]] %s1610_s6 }
   0x8   :  { %1638 = sst [smem:[#allocation12_spill]] %s1611_s7 }
   0x9   :  { %s1639_s24 = sld [smem:[#allocation7_spill]]  ;;  %v1249_v3 = vmov 0.0|0.0   ;;  %vm1250_vm0 = vmmov 0   ;;  %v1251_v6 = vmov 0.0   ;;  %s1640_s28 = sld [smem:[#allocation9_spill]] }
   0xa   :  { %1147 = vmatprep.subr.bf16.mxu0 %v1249_v3  ;;  %1045 = vmatprep.mubr.msk.f32.mxu0 %vm1250_vm0, %v1251_v6 }
   0xb   :  { %1153 = vmatprep.subr.bf16.mxu1 %v1249_v3  ;;  %1056 = vmatprep.mubr.msk.f32.mxu1 %vm1250_vm0, %v1251_v6 }
   0xf   :  { %v77_v0 = vld [vmem:[%s1639_s24] sm:$0xff]  ;;  %v78_v1 = vld [vmem:[%s1639_s24 + $0x8] sm:$0xff]  ;;  %v79_v2 = vld [vmem:[%s1639_s24 + $0x10] sm:$0xff] }
  0x10   :  { %v1148_v4 = vpack.c.bf16 %v78_v1, %v77_v0  ;;  %v80_v5 = vld [vmem:[%s1639_s24 + $0x18] sm:$0xff]  ;;  %v162_v7 = vld [vmem:[%s1640_s28] sm:$0xff]  ;;  %v163_v8 = vld [vmem:[%s1640_s28 + $0x8] sm:$0xff] }
  0x11   :  { %v1151_v9 = vpack.c.bf16 %v80_v5, %v79_v2  ;;  %v1154_v10 = vpack.c.bf16 %v163_v8, %v162_v7 }
  0x12   :  { %1149 = vmatpush3.bf16.msra.mxu0 %v1148_v4 }
  0x13   :  { %29 = vsyncpa [#allocation3], 0  ;;  %1150 = vmatprep.subr.bf16.mxu0 %v1249_v3  ;;  %s1641_s30 = sld [smem:[#allocation11_spill]]  ;;  %1155 = vmatpush3.bf16.msra.mxu1 %v1154_v10  ;;  %s1642_s26 = sld [smem:[#allocation5_spill]]  ;;  %vm88_vm1 = vcmask 261120   ;;  %v164_v15 = vld [vmem:[%s1640_s28 + $0x10] sm:$0xff] }
  0x14   :  { %1156 = vmatprep.subr.bf16.mxu1 %v1249_v3  ;;  %v165_v16 = vld [vmem:[%s1640_s28 + $0x18] sm:$0xff]  ;;  %s1643_s5 = sld [smem:[#allocation8_spill]]  ;;  %v337_v25 = vld [vmem:[%s1612_s8] sm:$0xff]  ;;  %v338_v26 = vld [vmem:[%s1612_s8 + $0x8] sm:$0xff]  ;;  %s1644_s0 = sld [smem:[#allocation10_spill]] }
  0x15   :  { %v1157_v18 = vpack.c.bf16 %v165_v16, %v164_v15  ;;  %v1166_v27 = vpack.c.bf16 %v338_v26, %v337_v25  ;;  %v339_v28 = vld [vmem:[%s1612_s8 + $0x10] sm:$0xff]  ;;  %v340_v29 = vld [vmem:[%s1612_s8 + $0x18] sm:$0xff]  ;;  %s1645_s24 = sld [smem:[#allocation6_spill]]  ;;  %s1646_s28 = sld [smem:[#allocation12_spill]]  ;;  %v427_v48 = vld [vmem:[%s1614_s10] sm:$0xff] }
  0x16   :  { %1152 = vmatpush3.bf16.msra.mxu0 %v1151_v9  ;;  %v1169_v30 = vpack.c.bf16 %v340_v29, %v339_v28  ;;  %v428_v49 = vld [vmem:[%s1614_s10 + $0x8] sm:$0xff]  ;;  %v429_v51 = vld [vmem:[%s1614_s10 + $0x10] sm:$0xff]  ;;  %v430_v52 = vld [vmem:[%s1614_s10 + $0x18] sm:$0xff] }
  0x17   :  { %1159 = vmatprep.subr.bf16.mxu0 %v1249_v3  ;;  %1158 = vmatpush3.bf16.msra.mxu1 %v1157_v18  ;;  %v1172_v50 = vpack.c.bf16 %v428_v49, %v427_v48  ;;  %v1175_v53 = vpack.c.bf16 %v430_v52, %v429_v51  ;;  %v511_v54 = vld [vmem:[%s1616_s12] sm:$0xff]  ;;  %v512_v55 = vld [vmem:[%s1616_s12 + $0x8] sm:$0xff]  ;;  %v513_v7 = vld [vmem:[%s1616_s12 + $0x10] sm:$0xff] }
  0x18   :  { %1165 = vmatprep.subr.bf16.mxu1 %v1249_v3  ;;  %v1178_v56 = vpack.c.bf16 %v512_v55, %v511_v54  ;;  %v970_v57 = vld [vmem:[%s1613_s9] ss:$0 sm:$0xff]  ;;  %v602_v0 = vld [vmem:[%s1618_s14 + $0x8] sm:$0xff]  ;;  %v514_v8 = vld [vmem:[%s1616_s12 + $0x18] sm:$0xff] }
  0x19   :  { %v252_v11 = vld [vmem:[%s1641_s30] sm:$0xff]  ;;  %v253_v12 = vld [vmem:[%s1641_s30 + $0x8] sm:$0xff]  ;;  %v254_v17 = vld [vmem:[%s1641_s30 + $0x10] sm:$0xff]  ;;  %v1181_v10 = vpack.c.bf16 %v514_v8, %v513_v7 }
  0x1a   :  { %v74_v13 = vld [vmem:[%s1642_s26] sm:$0xff]  ;;  %v1160_v14 = vpack.c.bf16 %v253_v12, %v252_v11  ;;  %v255_v19 = vld [vmem:[%s1641_s30 + $0x18] sm:$0xff]  ;;  %v603_v9 = vld [vmem:[%s1618_s14 + $0x10] sm:$0xff] }
  0x1b   :  { %1046 = vmatmul.mubr.msk.f32.vlgmr.msra.gmra.mrb[0].mxu0 %vm88_vm1, %v74_v13  ;;  %v1163_v20 = vpack.c.bf16 %v255_v19, %v254_v17  ;;  %v963_v21 = vld [vmem:[%s1643_s5] ss:$0 sm:$0xff]  ;;  %v604_v11 = vld [vmem:[%s1618_s14 + $0x18] sm:$0xff]  ;;  %v686_v18 = vld [vmem:[%s1620_s16 + $0x8] sm:$0xff] }
  0x1c   :  { %1161 = vmatpush3.bf16.msra.mxu0 %v1160_v14  ;;  %1067 = vmatprep.mubr.msk.f32.mxu0 %vm1250_vm0, %v1251_v6  ;;  %v965_v31 = vld [vmem:[%s1644_s0] ss:$0 sm:$0xff]  ;;  %v1187_v12 = vpack.c.bf16 %v604_v11, %v603_v9  ;;  %v777_v25 = vld [vmem:[%s1622_s18 + $0x10] sm:$0xff] }
  0x1d   :  { %1162 = vmatprep.subr.bf16.mxu0 %v1249_v3  ;;  %v1456_v40 = vld [vmem:[%s1645_s24] sm:$0xff] }
  0x1e   :  { %v968_v41 = vld [vmem:[%s1646_s28] ss:$0 sm:$0xff]  ;;  %v76_v42 = vmul.f32 0.999995, %v1456_v40 }
  0x1f   :  { %v601_v63 = vld [vmem:[%s1618_s14] sm:$0xff] }
  0x20   :  { %1164 = vmatpush3.bf16.msra.mxu0 %v1163_v20  ;;  %v1184_v4 = vpack.c.bf16 %v602_v0, %v601_v63  ;;  %v973_v13 = vld [vmem:[%s1615_s11] ss:$0 sm:$0xff] }
  0x21   :  { %1171 = vmatprep.subr.bf16.mxu0 %v1249_v3  ;;  %v685_v17 = vld [vmem:[%s1620_s16] sm:$0xff] }
  0x22   :  { %v775_v19 = vld [vmem:[%s1622_s18] sm:$0xff]  ;;  %v1190_v20 = vpack.c.bf16 %v686_v18, %v685_v17 }
  0x23   :  { %v975_v29 = vld [vmem:[%s1617_s13] ss:$0 sm:$0xff] }
  0xee   :  { %v158_v22 = vpop.f32.mrb[0].mxu0 }
  0xef   :  { %v159_v23 = vadd.f32 %v963_v21, %v158_v22  ;;  %v1047_v24 = vpop.f32.mrb[1].mxu0  ;;  %v776_v21 = vld [vmem:[%s1622_s18 + $0x8] sm:$0xff] }
  0xf0   :  { %v1196_v22 = vpack.c.bf16 %v776_v21, %v775_v19  ;;  %v688_v24 = vld [vmem:[%s1620_s16 + $0x18] sm:$0xff] }
  0xf1   :  { %1057 = vmatmul.mubr.msk.f32.vlgmr.msra.gmra.mrb[0].mxu1 %vm88_vm1, %v159_v23  ;;  %1068 = vmatmul.mubr.msk.f32.vlgmr.msra.gmra.mrb[2].mxu0 %vm88_vm1, %v159_v23  ;;  %v687_v23 = vld [vmem:[%s1620_s16 + $0x10] sm:$0xff] }
  0xf2   :  { %1078 = vmatprep.mubr.msk.f32.mxu1 %vm1250_vm0, %v1251_v6  ;;  %1089 = vmatprep.mubr.msk.f32.mxu0 %vm1250_vm0, %v1251_v6  ;;  %v1193_v26 = vpack.c.bf16 %v688_v24, %v687_v23 }
  0xf3   :  { %1167 = vmatpush3.bf16.msra.mxu1 %v1166_v27  ;;  %1173 = vmatpush3.bf16.msra.mxu0 %v1172_v50  ;;  %v778_v27 = vld [vmem:[%s1622_s18 + $0x18] sm:$0xff]  ;;  %v980_v50 = vld [vmem:[%s1621_s17] ss:$0 sm:$0xff]  ;;  %s1252_s17 = smov [#allocation2]  }
  0xf4   :  { %1168 = vmatprep.subr.bf16.mxu1 %v1249_v3  ;;  %1174 = vmatprep.subr.bf16.mxu0 %v1249_v3  ;;  %v1199_v28 = vpack.c.bf16 %v778_v27, %v777_v25 }
  0xf7   :  { %1170 = vmatpush3.bf16.msra.mxu1 %v1169_v30  ;;  %1176 = vmatpush3.bf16.msra.mxu0 %v1175_v53 }
  0xf8   :  { %1177 = vmatprep.subr.bf16.mxu1 %v1249_v3  ;;  %1183 = vmatprep.subr.bf16.mxu0 %v1249_v3 }
 0x1c4   :  { %v242_v32 = vpop.f32.mrb[0].mxu1  ;;  %v329_v33 = vpop.f32.mrb[2].mxu0 }
 0x1c5   :  { %v243_v34 = vadd.f32 %v965_v31, %v242_v32  ;;  %v1058_v35 = vpop.f32.mrb[1].mxu1  ;;  %v1069_v36 = vpop.f32.mrb[3].mxu0  ;;  %v330_v43 = vadd.f32 %v968_v41, %v329_v33 }
 0x1c7   :  { %v967_v37 = vmul.f32 -1.442695, %v243_v34 }
 0x1c9   :  { %1211 = vpow2.f32 %v967_v37 }
 0x1d3   :  { %v1212_v38 = vpop.eup %1211 }
 0x1d4   :  { %v249_v39 = vadd.f32 1.0, %v1212_v38  ;;  %v978_v38 = vld [vmem:[%s1619_s15] ss:$0 sm:$0xff] }
 0x1d6   :  { %1213 = vrcp.f32 %v249_v39 }
 0x1e0   :  { %v1214_v44 = vpop.eup %1213 }
 0x1e1   :  { %v333_v45 = vmul.f32 %v1214_v44, %v330_v43 }
 0x1e3   :  { %v334_v46 = vadd.f32 %v333_v45, %v76_v42  ;;  %v859_v45 = vld [vmem:[%s1624_s20] sm:$0xff] }
 0x1e5   :  { %v1462_v47 = vmul.f32 0.999995, %v334_v46  ;;  %v860_v46 = vld [vmem:[%s1624_s20 + $0x8] sm:$0xff] }
 0x1e6   :  { %v1202_v48 = vpack.c.bf16 %v860_v46, %v859_v45 }
 0x1e7   :  { %336 = vst.msk [vmem:[#allocation2] sm:$0xff] %vm88_vm1, %v1462_v47  ;;  %1079 = vmatmul.mubr.msk.f32.vlgmr.msra.gmra.mrb[2].mxu1 %vm88_vm1, %v1462_v47 }
 0x1e8   :  { %1100 = vmatprep.mubr.msk.f32.mxu1 %vm1250_vm0, %v1251_v6  ;;  %1179 = vmatpush3.bf16.msra.mxu1 %v1178_v56 }
 0x1e9   :  { %1180 = vmatprep.subr.bf16.mxu1 %v1249_v3 }
 0x1ec   :  { %1182 = vmatpush3.bf16.msra.mxu1 %v1181_v10 }
 0x1ed   :  { %1189 = vmatprep.subr.bf16.mxu1 %v1249_v3 }
 0x2ba   :  { %v417_v58 = vpop.f32.mrb[2].mxu1 }
 0x2bb   :  { %v418_v59 = vadd.f32 %v970_v57, %v417_v58  ;;  %v1080_v60 = vpop.f32.mrb[3].mxu1  ;;  %v983_v58 = vld [vmem:[%s1623_s19] ss:$0 sm:$0xff] }
 0x2bd   :  { %v422_v61 = vmin.f32 %v418_v59, 0.0  ;;  %vm421_vm2 = vcmp.gt.f32.partialorder %v418_v59, 0.0 }
 0x2bf   :  { %v423_v62 = vmul.f32 1.442695, %v422_v61 }
 0x2c1   :  { %1215 = vpow2.f32 %v423_v62 }
 0x2cb   :  { %v1216_v1 = vpop.eup %1215 }
 0x2cc   :  { %v972_v2 = vadd.f32 -1.0, %v1216_v1 }
 0x2ce   :  { %v426_v5 = vsel %vm421_vm2, %v418_v59, %v972_v2 }
 0x2cf   :  { %1090 = vmatmul.mubr.msk.f32.vlgmr.msra.gmra.mrb[4].mxu0 %vm88_vm1, %v426_v5 }
 0x2d0   :  { %1185 = vmatpush3.bf16.msra.mxu0 %v1184_v4  ;;  %1111 = vmatprep.mubr.msk.f32.mxu0 %vm1250_vm0, %v1251_v6 }
 0x2d1   :  { %1186 = vmatprep.subr.bf16.mxu0 %v1249_v3 }
 0x2d4   :  { %1188 = vmatpush3.bf16.msra.mxu0 %v1187_v12 }
 0x2d5   :  { %1195 = vmatprep.subr.bf16.mxu0 %v1249_v3 }
 0x3a2   :  { %v507_v14 = vpop.f32.mrb[4].mxu0 }
 0x3a3   :  { %v508_v15 = vadd.f32 %v973_v13, %v507_v14  ;;  %v1091_v16 = vpop.f32.mrb[5].mxu0 }
 0x3a5   :  { %1101 = vmatmul.mubr.msk.f32.vlgmr.msra.gmra.mrb[4].mxu1 %vm88_vm1, %v508_v15  ;;  %1112 = vmatmul.mubr.msk.f32.vlgmr.msra.gmra.mrb[6].mxu0 %vm88_vm1, %v508_v15 }
 0x3a6   :  { %1122 = vmatprep.mubr.msk.f32.mxu1 %vm1250_vm0, %v1251_v6  ;;  %1133 = vmatprep.mubr.msk.f32.mxu0 %vm1250_vm0, %v1251_v6 }
 0x3a7   :  { %1191 = vmatpush3.bf16.msra.mxu1 %v1190_v20  ;;  %1197 = vmatpush3.bf16.msra.mxu0 %v1196_v22 }
 0x3a8   :  { %1192 = vmatprep.subr.bf16.mxu1 %v1249_v3  ;;  %1198 = vmatprep.subr.bf16.mxu0 %v1249_v3 }
 0x3ab   :  { %1194 = vmatpush3.bf16.msra.mxu1 %v1193_v26  ;;  %1200 = vmatpush3.bf16.msra.mxu0 %v1199_v28 }
 0x3ac   :  { %1201 = vmatprep.subr.bf16.mxu1 %v1249_v3 }
 0x478   :  { %v591_v30 = vpop.f32.mrb[4].mxu1  ;;  %v678_v31 = vpop.f32.mrb[6].mxu0 }
 0x479   :  { %v592_v32 = vadd.f32 %v975_v29, %v591_v30  ;;  %v1102_v33 = vpop.f32.mrb[5].mxu1  ;;  %v1113_v34 = vpop.f32.mrb[7].mxu0  ;;  %v679_v39 = vadd.f32 %v978_v38, %v678_v31 }
 0x47b   :  { %v977_v35 = vmul.f32 -1.442695, %v592_v32 }
 0x47d   :  { %1217 = vpow2.f32 %v977_v35 }
 0x487   :  { %v1218_v36 = vpop.eup %1217 }
 0x488   :  { %v598_v37 = vadd.f32 1.0, %v1218_v36 }
 0x48a   :  { %1219 = vrcp.f32 %v598_v37 }
 0x494   :  { %v1220_v41 = vpop.eup %1219 }
 0x495   :  { %v682_v42 = vmul.f32 %v1220_v41, %v679_v39 }
 0x497   :  { %v683_v43 = vadd.f32 %v682_v42, %v1462_v47  ;;  %v861_v47 = vld [vmem:[%s1624_s20 + $0x10] sm:$0xff] }
 0x499   :  { %v684_v44 = vmul.f32 0.999995, %v683_v43 }
 0x49b   :  { %1123 = vmatmul.mubr.msk.f32.vlgmr.msra.gmra.mrb[6].mxu1 %vm88_vm1, %v684_v44  ;;  %1134 = vmatmul.mubr.msk.f32.vlgmr.msra.gmra.mrb[8].mxu0 %vm88_vm1, %v684_v44 }
 0x49c   :  { %1144 = vmatprep.mubr.msk.f32.mxu1 %vm1250_vm0, %v1251_v6  ;;  %1203 = vmatpush3.bf16.msra.mxu1 %v1202_v48  ;;  %v862_v6 = vld [vmem:[%s1624_s20 + $0x18] sm:$0xff]  ;;  %s951_s20 = sshll.u32 %s1252_s17, 4  ;;  %s952_s20 = int_to_ptr.vmem [resolvable:$true] %s951_s20 }
 0x49d   :  { %1204 = vmatprep.subr.bf16.mxu1 %v1249_v3  ;;  %v1205_v49 = vpack.c.bf16 %v862_v6, %v861_v47  ;;  %s1225_s10 = scalar_lea.vmem %s952_s20, 128  ;;  %p1230_p1 = scmp.lt.s32.totalorder %s952_s20, %s952_s20 }
 0x49e   :  { %p1226_p0 = scmp.ne.s32.totalorder %s952_s20, %s1225_s10  ;;  %p1231_p2 = scmp.lt.s32.totalorder %s1225_s10, %s1225_s10 }
 0x4a0   :  { %1206 = vmatpush3.bf16.msra.mxu1 %v1205_v49  ;;  %p1232_p3 = por %p1231_p2, %p1230_p1 }
 0x4a2   :  { %p1233_p4 = pnand %p1232_p3, %p1226_p0 }
 0x56e   :  { %v765_v51 = vpop.f32.mrb[6].mxu1  ;;  %v852_v52 = vpop.f32.mrb[8].mxu0 }
 0x56f   :  { %v766_v53 = vadd.f32 %v980_v50, %v765_v51  ;;  %v1124_v54 = vpop.f32.mrb[7].mxu1  ;;  %v1135_v55 = vpop.f32.mrb[9].mxu0  ;;  %v853_v59 = vadd.f32 %v983_v58, %v852_v52 }
 0x571   :  { %v982_v3 = vmul.f32 -1.442695, %v766_v53 }
 0x573   :  { %1221 = vpow2.f32 %v982_v3 }
 0x57d   :  { %v1222_v56 = vpop.eup %1221 }
 0x57e   :  { %v772_v57 = vadd.f32 1.0, %v1222_v56 }
 0x580   :  { %1223 = vrcp.f32 %v772_v57 }
 0x58a   :  { %v1224_v60 = vpop.eup %1223 }
 0x58b   :  { %v856_v61 = vmul.f32 %v1224_v60, %v853_v59 }
 0x58d   :  { %v857_v62 = vadd.f32 %v856_v61, %v1456_v40 }
 0x58f   :  { %v858_v63 = vmul.f32 0.999995, %v857_v62 }
 0x591   :  { %1145 = vmatmul.mubr.msk.f32.vlgmr.msra.gmra.mrb[8].mxu1 %vm88_vm1, %v858_v63 }
 0x592   :  { %1236 = shalt.err (!%p1233_p4)
}
 0x593   :  { %s1237_s28 = scalar_lea.hbm %s1626_s22, 128 }
 0x594   :  { %p1238_p5 = scmp.ne.s32.totalorder %s1626_s22, %s1237_s28  ;;  %p1241_p6 = scmp.lt.u32.totalorder %s1237_s28, %s1626_s22 }
 0x596   :  { %p1243_p7 = pnand %p1241_p6, %p1238_p5 }
 0x598   :  { %1246 = shalt.err (!%p1243_p7)
}
 0x599   :  { %954 = dma.vmem_to_hbm [thread:$0]  %s952_s20, 128, %s1626_s22, [#allocation3]   ;;  %v985_v40 = vld [vmem:[%s1625_s21] ss:$0 sm:$0xff]  ;;  %vm943_vm3 = vcmask 23552  }
 0x664   :  { %v939_v0 = vpop.f32.mrb[8].mxu1 }
 0x665   :  { %v940_v1 = vadd.f32 %v985_v40, %v939_v0  ;;  %v1146_v2 = vpop.f32.mrb[9].mxu1 }
 0x667   :  { %944 = vst.msk [vmem:[%s1627_s23] sm:$0xff] %vm943_vm3, %v940_v1 }
 0x668   :  { %1247 = dma.done.wait [#allocation3], 128  }
 0x669   :  { %1248 = vsyncadd [#allocation3], 4294967168 }
 0x66a   :  { %962 = vsyncpa [#allocation3], 1 }

// kernel: _lambda_.10
= control target key start
LH: loop header
LB: loop body
LE: loop exit
PB: predicated region body
PF: predicated region fallthrough
CT: control target
= control target key end

     0   :  { %vm49_vm0 = vcmask 64512   ;;  %v1567_v2 = vmov 0.0   ;;  %vm1568_vm1 = vmmov 0   ;;  %s1815_s0 = inlined_call_operand.vmem [shape: f32[8,4,8], index: 0, kind: input, shape index: {}]   ;;  %s1816_s1 = inlined_call_operand.vmem [shape: f32[8,8,8], index: 1, kind: input, shape index: {}]   ;;  %s1817_s2 = inlined_call_operand.vmem [shape: f32[8,8,8], index: 2, kind: input, shape index: {}]   ;;  %s1818_s3 = inlined_call_operand.vmem [shape: f32[8,4,8], index: 3, kind: output, shape index: {0}]   ;;  %s1819_s4 = inlined_call_operand.hbm [shape: f32[2,4,8], index: 4, kind: output, shape index: {1}]  }
   0x1   :  { %v33_v0 = vld [vmem:[%s1816_s1] sm:$0xff]  ;;  %1426 = vmatprep.subr.mxu0 %v1567_v2  ;;  %1428 = vmatprep.mubr.msk.f32.mxu0 %vm1568_vm1, %v1567_v2  ;;  %v34_v4 = vld [vmem:[%s1816_s1 + $0x8] sm:$0xff]  ;;  %v35_v7 = vld [vmem:[%s1816_s1 + $0x10] sm:$0xff] }
   0x2   :  { %v17_v1 = vld [vmem:[%s1815_s0] sm:$0xf]  ;;  %v18_v5 = vld [vmem:[%s1815_s0 + $0x4] sm:$0xf]  ;;  %1427 = vmatpush3.xpose.msk.msra.mxu0 %vm49_vm0, %v33_v0  ;;  %1431 = vmatprep.subr.mxu1 %v1567_v2  ;;  %v19_v6 = vld [vmem:[%s1815_s0 + $0x8] sm:$0xf] }
   0x3   :  { %v25_v3 = vmul.f32 0.35355338, %v17_v1  ;;  %1436 = vmatprep.subr.mxu0 %v1567_v2  ;;  %1432 = vmatpush3.xpose.msk.msra.mxu1 %vm49_vm0, %v34_v4  ;;  %v26_v8 = vmul.f32 0.35355338, %v18_v5  ;;  %v20_v9 = vld [vmem:[%s1815_s0 + $0xc] sm:$0xf] }
   0x4   :  { %1433 = vmatprep.mubr.msk.f32.mxu1 %vm1568_vm1, %v1567_v2  ;;  %1441 = vmatprep.subr.mxu1 %v1567_v2  ;;  %v27_v10 = vmul.f32 0.35355338, %v19_v6  ;;  %v36_v11 = vld [vmem:[%s1816_s1 + $0x18] sm:$0xff]  ;;  %v21_v12 = vld [vmem:[%s1815_s0 + $0x10] sm:$0xf]  ;;  %v37_v13 = vld [vmem:[%s1816_s1 + $0x20] sm:$0xff] }
   0x5   :  { %1429 = vmatmul.mubr.msk.f32.vlgmr.msra.gmra.mrb[0].mxu0 %vm49_vm0, %v25_v3  ;;  %v28_v14 = vmul.f32 0.35355338, %v20_v9 }
   0x6   :  { %1437 = vmatpush3.xpose.msk.msra.mxu0 %vm49_vm0, %v35_v7  ;;  %1438 = vmatprep.mubr.msk.f32.mxu0 %vm1568_vm1, %v1567_v2 }
   0x7   :  { %1434 = vmatmul.mubr.msk.f32.vlgmr.msra.gmra.mrb[0].mxu1 %vm49_vm0, %v26_v8  ;;  %1446 = vmatprep.subr.mxu0 %v1567_v2 }
   0x8   :  { %10 = vsyncpa [#allocation3], 0  ;;  %1442 = vmatpush3.xpose.msk.msra.mxu1 %vm49_vm0, %v36_v11  ;;  %1443 = vmatprep.mubr.msk.f32.mxu1 %vm1568_vm1, %v1567_v2  ;;  %v22_v15 = vld [vmem:[%s1815_s0 + $0x14] sm:$0xf]  ;;  %v29_v16 = vmul.f32 0.35355338, %v21_v12 }
   0x9   :  { %1439 = vmatmul.mubr.msk.f32.vlgmr.msra.gmra.mrb[2].mxu0 %vm49_vm0, %v27_v10  ;;  %1451 = vmatprep.subr.mxu1 %v1567_v2  ;;  %v38_v17 = vld [vmem:[%s1816_s1 + $0x28] sm:$0xff]  ;;  %v23_v18 = vld [vmem:[%s1815_s0 + $0x18] sm:$0xf]  ;;  %v39_v19 = vld [vmem:[%s1816_s1 + $0x30] sm:$0xff]  ;;  %v30_v20 = vmul.f32 0.35355338, %v22_v15 }
   0xa   :  { %1447 = vmatpush3.xpose.msk.msra.mxu0 %vm49_vm0, %v37_v13  ;;  %1448 = vmatprep.mubr.msk.f32.mxu0 %vm1568_vm1, %v1567_v2  ;;  %v24_v21 = vld [vmem:[%s1815_s0 + $0x1c] sm:$0xf]  ;;  %v31_v22 = vmul.f32 0.35355338, %v23_v18  ;;  %vm658_vm2 = vcmask 60416  }
   0xb   :  { %1444 = vmatmul.mubr.msk.f32.vlgmr.msra.gmra.mrb[2].mxu1 %vm49_vm0, %v28_v14  ;;  %1456 = vmatprep.subr.mxu0 %v1567_v2  ;;  %v40_v23 = vld [vmem:[%s1816_s1 + $0x38] sm:$0xff]  ;;  %v32_v24 = vmul.f32 0.35355338, %v24_v21 }
   0xc   :  { %1452 = vmatpush3.xpose.msk.msra.mxu1 %vm49_vm0, %v38_v17  ;;  %1453 = vmatprep.mubr.msk.f32.mxu1 %vm1568_vm1, %v1567_v2 }
   0xd   :  { %1449 = vmatmul.mubr.msk.f32.vlgmr.msra.gmra.mrb[4].mxu0 %vm49_vm0, %v29_v16  ;;  %1461 = vmatprep.subr.mxu1 %v1567_v2 }
   0xe   :  { %1457 = vmatpush3.xpose.msk.msra.mxu0 %vm49_vm0, %v39_v19  ;;  %1458 = vmatprep.mubr.msk.f32.mxu0 %vm1568_vm1, %v1567_v2 }
   0xf   :  { %1454 = vmatmul.mubr.msk.f32.vlgmr.msra.gmra.mrb[4].mxu1 %vm49_vm0, %v30_v20  ;;  %1466 = vmatprep.subr.mxu0 %v1567_v2 }
  0x10   :  { %1462 = vmatpush3.xpose.msk.msra.mxu1 %vm49_vm0, %v40_v23  ;;  %1463 = vmatprep.mubr.msk.f32.mxu1 %vm1568_vm1, %v1567_v2 }
  0x11   :  { %1459 = vmatmul.mubr.msk.f32.vlgmr.msra.gmra.mrb[6].mxu0 %vm49_vm0, %v31_v22  ;;  %1471 = vmatprep.subr.mxu1 %v1567_v2 }
  0x12   :  { %1468 = vmatprep.mubr.msk.f32.mxu0 %vm1568_vm1, %v1567_v2 }
  0x13   :  { %1464 = vmatmul.mubr.msk.f32.vlgmr.msra.gmra.mrb[6].mxu1 %vm49_vm0, %v32_v24 }
  0x14   :  { %1473 = vmatprep.mubr.msk.f32.mxu1 %vm1568_vm1, %v1567_v2 }
  0xd8   :  { %v122_v25 = vpop.f32.mrb[0].mxu0 }
  0xd9   :  { %v1430_v26 = vpop.f32.mrb[1].mxu0  ;;  %v659_v27 = vsel %vm658_vm2, %v122_v25, -inf }
  0xda   :  { %660 = vmax.xlane.f32.xlu0 %v659_v27  ;;  %v198_v28 = vpop.f32.mrb[0].mxu1  ;;  %v41_v26 = vld [vmem:[%s1817_s2] sm:$0xff]  ;;  %v42_v27 = vld [vmem:[%s1817_s2 + $0x8] sm:$0xff] }
  0xdb   :  { %v1435_v29 = vpop.f32.mrb[1].mxu1  ;;  %v662_v30 = vsel %vm658_vm2, %v198_v28, -inf  ;;  %1467 = vmatpush3.msra.mxu0 %v41_v26  ;;  %1472 = vmatpush3.msra.mxu1 %v42_v27 }
  0xdc   :  { %v274_v31 = vpop.f32.mrb[2].mxu0  ;;  %1476 = vmatprep.subr.mxu0 %v1567_v2  ;;  %1481 = vmatprep.subr.mxu1 %v1567_v2 }
  0xdd   :  { %v1440_v32 = vpop.f32.mrb[3].mxu0  ;;  %v665_v33 = vsel %vm658_vm2, %v274_v31, -inf }
  0xde   :  { %663 = vmax.xlane.f32.xlu0 %v662_v30  ;;  %666 = vmax.xlane.f32.xlu1 %v665_v33  ;;  %v350_v34 = vpop.f32.mrb[2].mxu1 }
  0xdf   :  { %v1445_v35 = vpop.f32.mrb[3].mxu1  ;;  %v668_v36 = vsel %vm658_vm2, %v350_v34, -inf }
  0xe0   :  { %v426_v37 = vpop.f32.mrb[4].mxu0 }
  0xe1   :  { %v671_v38 = vsel %vm658_vm2, %v426_v37, -inf  ;;  %v1450_v39 = vpop.f32.mrb[5].mxu0 }
  0xe2   :  { %669 = vmax.xlane.f32.xlu1 %v668_v36  ;;  %672 = vmax.xlane.f32.xlu0 %v671_v38  ;;  %v502_v40 = vpop.f32.mrb[4].mxu1  ;;  %v43_v36 = vld [vmem:[%s1817_s2 + $0x10] sm:$0xff] }
  0xe3   :  { %v1455_v41 = vpop.f32.mrb[5].mxu1  ;;  %v674_v42 = vsel %vm658_vm2, %v502_v40, -inf }
  0xe4   :  { %v578_v43 = vpop.f32.mrb[6].mxu0 }
  0xe5   :  { %v677_v44 = vsel %vm658_vm2, %v578_v43, -inf  ;;  %v1460_v45 = vpop.f32.mrb[7].mxu0 }
  0xe6   :  { %675 = vmax.xlane.f32.xlu1 %v674_v42  ;;  %678 = vmax.xlane.f32.xlu0 %v677_v44  ;;  %v654_v46 = vpop.f32.mrb[6].mxu1  ;;  %v44_v42 = vld [vmem:[%s1817_s2 + $0x18] sm:$0xff]  ;;  %v45_v44 = vld [vmem:[%s1817_s2 + $0x20] sm:$0xff] }
  0xe7   :  { %v1465_v47 = vpop.f32.mrb[7].mxu1  ;;  %v680_v48 = vsel %vm658_vm2, %v654_v46, -inf }
  0xea   :  { %681 = vmax.xlane.f32.xlu1 %v680_v48 }
 0x167   :  { %v661_v49 = vpop.xlane.xlu0 %660 }
 0x168   :  { %v683_v50 = vsub.f32 %v122_v25, %v661_v49  ;;  %v46_v49 = vld [vmem:[%s1817_s2 + $0x28] sm:$0xff] }
 0x16a   :  { %v691_v51 = vmul.f32 1.442695, %v683_v50 }
 0x16b   :  { %v664_v52 = vpop.xlane.xlu0 %663  ;;  %v667_v53 = vpop.xlane.xlu1 %666 }
 0x16c   :  { %1511 = vpow2.f32 %v691_v51  ;;  %v684_v54 = vsub.f32 %v198_v28, %v664_v52  ;;  %v685_v55 = vsub.f32 %v274_v31, %v667_v53  ;;  %v47_v52 = vld [vmem:[%s1817_s2 + $0x30] sm:$0xff] }
 0x16e   :  { %v693_v56 = vmul.f32 1.442695, %v684_v54  ;;  %v695_v57 = vmul.f32 1.442695, %v685_v55 }
 0x16f   :  { %v670_v58 = vpop.xlane.xlu1 %669  ;;  %v673_v59 = vpop.xlane.xlu0 %672 }
 0x170   :  { %1513 = vpow2.f32 %v693_v56  ;;  %v686_v60 = vsub.f32 %v350_v34, %v670_v58  ;;  %v687_v61 = vsub.f32 %v426_v37, %v673_v59 }
 0x171   :  { %1515 = vpow2.f32 %v695_v57  ;;  %v48_v57 = vld [vmem:[%s1817_s2 + $0x38] sm:$0xff]  ;;  %s1569_s2 = smov [#allocation2]  }
 0x172   :  { %v697_v62 = vmul.f32 1.442695, %v686_v60  ;;  %v699_v63 = vmul.f32 1.442695, %v687_v61  ;;  %s1357_s9 = sshll.u32 %s1569_s2, 4  ;;  %s1358_s9 = int_to_ptr.vmem [resolvable:$true] %s1357_s9 }
 0x173   :  { %v676_v0 = vpop.xlane.xlu1 %675  ;;  %v679_v1 = vpop.xlane.xlu0 %678  ;;  %s1543_s10 = scalar_lea.vmem %s1358_s9, 128  ;;  %p1548_p1 = scmp.lt.s32.totalorder %s1358_s9, %s1358_s9 }
 0x174   :  { %1517 = vpow2.f32 %v697_v62  ;;  %v688_v3 = vsub.f32 %v502_v40, %v676_v0  ;;  %v689_v4 = vsub.f32 %v578_v43, %v679_v1  ;;  %p1544_p0 = scmp.ne.s32.totalorder %s1358_s9, %s1543_s10  ;;  %p1549_p2 = scmp.lt.s32.totalorder %s1543_s10, %s1543_s10 }
 0x175   :  { %1519 = vpow2.f32 %v699_v63 }
 0x176   :  { %v1512_v5 = vpop.eup %1511  ;;  %v701_v6 = vmul.f32 1.442695, %v688_v3  ;;  %v703_v7 = vmul.f32 1.442695, %v689_v4  ;;  %p1550_p3 = por %p1549_p2, %p1548_p1 }
 0x177   :  { %v682_v8 = vpop.xlane.xlu1 %681  ;;  %v707_v9 = vsel %vm658_vm2, %v1512_v5, 0.0 }
 0x178   :  { %1521 = vpow2.f32 %v701_v6  ;;  %v690_v10 = vsub.f32 %v654_v46, %v682_v8  ;;  %708 = vadd.xlane.f32.xlu0 %v707_v9  ;;  %p1551_p4 = pnand %p1550_p3, %p1544_p0 }
 0x179   :  { %1523 = vpow2.f32 %v703_v7 }
 0x17a   :  { %v1514_v11 = vpop.eup %1513  ;;  %v705_v12 = vmul.f32 1.442695, %v690_v10 }
 0x17b   :  { %v1516_v13 = vpop.eup %1515  ;;  %v710_v14 = vsel %vm658_vm2, %v1514_v11, 0.0 }
 0x17c   :  { %1525 = vpow2.f32 %v705_v12  ;;  %711 = vadd.xlane.f32.xlu1 %v710_v14  ;;  %v713_v15 = vsel %vm658_vm2, %v1516_v13, 0.0 }
 0x17d   :  { %714 = vadd.xlane.f32.xlu0 %v713_v15 }
 0x17e   :  { %v1518_v16 = vpop.eup %1517 }
 0x17f   :  { %v1520_v17 = vpop.eup %1519  ;;  %v716_v18 = vsel %vm658_vm2, %v1518_v16, 0.0 }
 0x180   :  { %717 = vadd.xlane.f32.xlu1 %v716_v18  ;;  %v719_v19 = vsel %vm658_vm2, %v1520_v17, 0.0 }
 0x181   :  { %720 = vadd.xlane.f32.xlu0 %v719_v19 }
 0x182   :  { %v1704_v20 = vpop.eup %1521 }
 0x183   :  { %v1706_v21 = vpop.eup %1523  ;;  %v722_v22 = vsel %vm658_vm2, %v1704_v20, 0.0 }
 0x184   :  { %723 = vadd.xlane.f32.xlu1 %v722_v22  ;;  %v725_v23 = vsel %vm658_vm2, %v1706_v21, 0.0 }
 0x185   :  { %726 = vadd.xlane.f32.xlu0 %v725_v23 }
 0x186   :  { %v1712_v24 = vpop.eup %1525 }
 0x187   :  { %v728_v25 = vsel %vm658_vm2, %v1712_v24, 0.0 }
 0x188   :  { %729 = vadd.xlane.f32.xlu1 %v728_v25 }
 0x205   :  { %v709_v28 = vpop.xlane.xlu0 %708 }
 0x206   :  { %1527 = vrcp.f32 %v709_v28 }
 0x209   :  { %v712_v29 = vpop.xlane.xlu1 %711 }
 0x20a   :  { %1529 = vrcp.f32 %v712_v29  ;;  %v715_v30 = vpop.xlane.xlu0 %714 }
 0x20b   :  { %1531 = vrcp.f32 %v715_v30 }
 0x20d   :  { %v718_v31 = vpop.xlane.xlu1 %717 }
 0x20e   :  { %1533 = vrcp.f32 %v718_v31  ;;  %v721_v32 = vpop.xlane.xlu0 %720 }
 0x20f   :  { %1535 = vrcp.f32 %v721_v32 }
 0x210   :  { %v1528_v33 = vpop.eup %1527 }
 0x211   :  { %v732_v34 = vmul.f32 %v1528_v33, %v1512_v5  ;;  %v724_v35 = vpop.xlane.xlu1 %723 }
 0x212   :  { %1537 = vrcp.f32 %v724_v35  ;;  %v727_v37 = vpop.xlane.xlu0 %726 }
 0x213   :  { %1539 = vrcp.f32 %v727_v37  ;;  %1469 = vmatmul.mubr.msk.f32.vlgmr.msra.gmra.mrb[8].mxu0 %vm49_vm0, %v732_v34 }
 0x214   :  { %v1530_v38 = vpop.eup %1529  ;;  %1477 = vmatpush3.msra.mxu0 %v43_v36  ;;  %1478 = vmatprep.mubr.msk.f32.mxu0 %vm1568_vm1, %v1567_v2 }
 0x215   :  { %v1532_v39 = vpop.eup %1531  ;;  %v734_v40 = vmul.f32 %v1530_v38, %v1514_v11  ;;  %v730_v41 = vpop.xlane.xlu1 %729  ;;  %1486 = vmatprep.subr.mxu0 %v1567_v2 }
 0x216   :  { %v736_v43 = vmul.f32 %v1532_v39, %v1516_v13  ;;  %1541 = vrcp.f32 %v730_v41 }
 0x217   :  { %v1339_v45 = vadd.f32 %v734_v40, %v732_v34  ;;  %1474 = vmatmul.mubr.msk.f32.vlgmr.msra.gmra.mrb[8].mxu1 %vm49_vm0, %v734_v40 }
 0x218   :  { %v1534_v46 = vpop.eup %1533  ;;  %1479 = vmatmul.mubr.msk.f32.vlgmr.msra.gmra.mrb[10].mxu0 %vm49_vm0, %v736_v43  ;;  %1482 = vmatpush3.msra.mxu1 %v44_v42 }
 0x219   :  { %v1536_v47 = vpop.eup %1535  ;;  %v738_v48 = vmul.f32 %v1534_v46, %v1518_v16  ;;  %1483 = vmatprep.mubr.msk.f32.mxu1 %vm1568_vm1, %v1567_v2  ;;  %1487 = vmatpush3.msra.mxu0 %v45_v44  ;;  %v1340_v50 = vadd.f32 %v1339_v45, %v736_v43 }
 0x21a   :  { %v740_v51 = vmul.f32 %v1536_v47, %v1520_v17  ;;  %1488 = vmatprep.mubr.msk.f32.mxu0 %vm1568_vm1, %v1567_v2  ;;  %1491 = vmatprep.subr.mxu1 %v1567_v2 }
 0x21b   :  { %1484 = vmatmul.mubr.msk.f32.vlgmr.msra.gmra.mrb[10].mxu1 %vm49_vm0, %v738_v48  ;;  %1496 = vmatprep.subr.mxu0 %v1567_v2  ;;  %v1341_v53 = vadd.f32 %v1340_v50, %v738_v48 }
 0x21c   :  { %v1538_v54 = vpop.eup %1537  ;;  %1489 = vmatmul.mubr.msk.f32.vlgmr.msra.gmra.mrb[12].mxu0 %vm49_vm0, %v740_v51  ;;  %1492 = vmatpush3.msra.mxu1 %v46_v49 }
 0x21d   :  { %v1540_v55 = vpop.eup %1539  ;;  %v742_v56 = vmul.f32 %v1538_v54, %v1704_v20  ;;  %1493 = vmatprep.mubr.msk.f32.mxu1 %vm1568_vm1, %v1567_v2  ;;  %1497 = vmatpush3.msra.mxu0 %v47_v52  ;;  %v1342_v58 = vmul.f32 0.25, %v1341_v53 }
 0x21e   :  { %v744_v59 = vmul.f32 %v1540_v55, %v1706_v21  ;;  %1498 = vmatprep.mubr.msk.f32.mxu0 %vm1568_vm1, %v1567_v2  ;;  %1501 = vmatprep.subr.mxu1 %v1567_v2 }
 0x21f   :  { %v1344_v60 = vadd.f32 %v742_v56, %v740_v51  ;;  %1494 = vmatmul.mubr.msk.f32.vlgmr.msra.gmra.mrb[12].mxu1 %vm49_vm0, %v742_v56  ;;  %1343 = vst.msk [vmem:[#allocation2] sm:$0xf] %vm658_vm2, %v1342_v58 }
 0x220   :  { %v1542_v61 = vpop.eup %1541  ;;  %1499 = vmatmul.mubr.msk.f32.vlgmr.msra.gmra.mrb[14].mxu0 %vm49_vm0, %v744_v59  ;;  %1502 = vmatpush3.msra.mxu1 %v48_v57 }
 0x221   :  { %v1345_v62 = vadd.f32 %v1344_v60, %v744_v59  ;;  %v746_v63 = vmul.f32 %v1542_v61, %v1712_v24  ;;  %1503 = vmatprep.mubr.msk.f32.mxu1 %vm1568_vm1, %v1567_v2 }
 0x223   :  { %1504 = vmatmul.mubr.msk.f32.vlgmr.msra.gmra.mrb[14].mxu1 %vm49_vm0, %v746_v63  ;;  %v1346_v0 = vadd.f32 %v1345_v62, %v746_v63 }
 0x225   :  { %v1347_v1 = vmul.f32 0.25, %v1346_v0 }
 0x227   :  { %1349 = vst.msk [vmem:[#allocation2 + $0x4] sm:$0xf] %vm658_vm2, %v1347_v1 }
 0x228   :  { %1554 = shalt.err (!%p1551_p4)
}
 0x229   :  { %s1555_s13 = scalar_lea.hbm %s1819_s4, 128 }
 0x22a   :  { %p1556_p5 = scmp.ne.s32.totalorder %s1819_s4, %s1555_s13  ;;  %p1559_p6 = scmp.lt.u32.totalorder %s1555_s13, %s1819_s4 }
 0x22c   :  { %p1561_p7 = pnand %p1559_p6, %p1556_p5 }
 0x22e   :  { %1564 = shalt.err (!%p1561_p7)
}
 0x22f   :  { %s1570_s18 = smov 64   ;;  %s1571_s19 = smov 4  }
 0x230   :  { %1363 = dma.vmem_to_hbm [thread:$0]  %s1358_s9, 128, %s1819_s4, [#allocation3], %s1570_s18, %s1570_s18, %s1571_s19  }
 0x2e6   :  { %v816_v2 = vpop.f32.mrb[8].mxu0 }
 0x2e7   :  { %1331 = vst.msk [vmem:[%s1818_s3] sm:$0xf] %vm658_vm2, %v816_v2  ;;  %v1470_v3 = vpop.f32.mrb[9].mxu0 }
 0x2ea   :  { %v889_v4 = vpop.f32.mrb[8].mxu1 }
 0x2eb   :  { %1332 = vst.msk [vmem:[%s1818_s3 + $0x4] sm:$0xf] %vm658_vm2, %v889_v4  ;;  %v962_v5 = vpop.f32.mrb[10].mxu0  ;;  %v1475_v6 = vpop.f32.mrb[9].mxu1 }
 0x2ec   :  { %1333 = vst.msk [vmem:[%s1818_s3 + $0x8] sm:$0xf] %vm658_vm2, %v962_v5  ;;  %v1480_v7 = vpop.f32.mrb[11].mxu0 }
 0x2ee   :  { %v1035_v8 = vpop.f32.mrb[10].mxu1 }
 0x2ef   :  { %1334 = vst.msk [vmem:[%s1818_s3 + $0xc] sm:$0xf] %vm658_vm2, %v1035_v8  ;;  %v1108_v9 = vpop.f32.mrb[12].mxu0  ;;  %v1485_v10 = vpop.f32.mrb[11].mxu1 }
 0x2f0   :  { %1335 = vst.msk [vmem:[%s1818_s3 + $0x10] sm:$0xf] %vm658_vm2, %v1108_v9  ;;  %v1490_v11 = vpop.f32.mrb[13].mxu0 }
 0x2f2   :  { %v1181_v12 = vpop.f32.mrb[12].mxu1 }
 0x2f3   :  { %1336 = vst.msk [vmem:[%s1818_s3 + $0x14] sm:$0xf] %vm658_vm2, %v1181_v12  ;;  %v1254_v13 = vpop.f32.mrb[14].mxu0  ;;  %v1495_v14 = vpop.f32.mrb[13].mxu1 }
 0x2f4   :  { %1337 = vst.msk [vmem:[%s1818_s3 + $0x18] sm:$0xf] %vm658_vm2, %v1254_v13  ;;  %v1500_v15 = vpop.f32.mrb[15].mxu0 }
 0x2f6   :  { %v1327_v16 = vpop.f32.mrb[14].mxu1 }
 0x2f7   :  { %1338 = vst.msk [vmem:[%s1818_s3 + $0x1c] sm:$0xf] %vm658_vm2, %v1327_v16  ;;  %v1505_v17 = vpop.f32.mrb[15].mxu1 }
 0x2f8   :  { %1565 = dma.done.wait [#allocation3], 128  }
 0x2f9   :  { %1566 = vsyncadd [#allocation3], 4294967168 }
 0x2fa   :  { %1369 = vsyncpa [#allocation3], 1 }

</bundles_post_ra>
